<compile_context>
chip_gen: v6e
topology: v6e:2x2x1
jax: 0.10.0
libtpu: 0.0.40
codegen_flags: <defaults>
</compile_context>

<pallas_src>
import functools

import jax
import jax.numpy as jnp
from jax.experimental import pallas as pl
from jax.experimental.pallas import tpu as pltpu


_cparams = pltpu.CompilerParams(
    dimension_semantics=("parallel",),
    vmem_limit_bytes=32 * 1024 * 1024,
)


def _polyphase(xp):
    """(N, Hp, Wp, C) -> (N, 2, 2, Hp//2, Wp//2, C), [n,p,q,i,j,c] = xp[n,2i+p,2j+q,c]."""
    N, Hp, Wp, C = xp.shape
    return xp.reshape(N, Hp // 2, 2, Wp // 2, 2, C).transpose(0, 2, 4, 1, 3, 5)


# ----------------------------------------------------------------------------
# Kernel A: conv_first = 3x3 stride-2 conv (+ folded BN + ReLU)
# ----------------------------------------------------------------------------

def _conv_first_kernel(H2, W2, Cin, C, x_ref, w_ref, b_ref, o_ref):
    """x_ref: (1,2,2,Hq,Wq,Cin) f32 polyphased padded input; w_ref: (9*Cin, C) bf16.

    Output o_ref: (1, H2+2, (W2+2)*C) bf16 -- the conv output zero-padded by 1
    and flattened (w, c) -> lane-dense single full-block store.
    """
    f32 = jnp.float32
    # im2col: one K = 9*Cin matmul instead of 9 tiny-K matmuls.
    taps = []
    for kh in range(3):
        for kw in range(3):
            ph, oh = kh % 2, kh // 2
            pw, ow = kw % 2, kw // 2
            taps.append(x_ref[0, ph, pw, oh:oh + H2, ow:ow + W2, :])   # (H2,W2,Cin)
    slab = jnp.concatenate(taps, axis=-1).reshape(H2 * W2, 9 * Cin)
    acc = jnp.dot(slab.astype(jnp.bfloat16), w_ref[...],
                  preferred_element_type=f32)
    y = jnp.maximum(acc + b_ref[...], 0.0).reshape(H2, W2, C)          # f32

    # Assemble the zero-padded, lane-dense output row block and store it once.
    zc = jnp.zeros((H2, C), f32)
    wide = jnp.concatenate([zc] + [y[:, w, :] for w in range(W2)] + [zc], axis=-1)
    zr = jnp.zeros((1, (W2 + 2) * C), f32)
    full = jnp.concatenate([zr, wide, zr], axis=0)                     # (H2+2,(W2+2)*C)
    o_ref[0] = full.astype(o_ref.dtype)


def conv_first(x, w1_flat, b1):
    """x: (N,H,W,Cin) f32; w1_flat: (9*Cin, C) bf16 (BN folded); b1: (1,C) f32."""
    N, H, W, Cin = x.shape
    C = w1_flat.shape[-1]
    H2, W2 = H // 2, W // 2
    Hq, Wq = (H + 2) // 2, (W + 2) // 2
    xp = jnp.pad(x, ((0, 0), (1, 1), (1, 1), (0, 0)))
    xpp = _polyphase(xp)                                               # (N,2,2,Hq,Wq,Cin)
    kern = functools.partial(_conv_first_kernel, H2, W2, Cin, C)
    return pl.pallas_call(
        kern,
        out_shape=jax.ShapeDtypeStruct((N, H2 + 2, (W2 + 2) * C), jnp.bfloat16),
        grid=(N,),
        in_specs=[
            pl.BlockSpec((1, 2, 2, Hq, Wq, Cin), lambda n: (n, 0, 0, 0, 0, 0)),
            pl.BlockSpec((9 * Cin, C), lambda n: (0, 0)),
            pl.BlockSpec((1, C), lambda n: (0, 0)),
        ],
        out_specs=pl.BlockSpec((1, H2 + 2, (W2 + 2) * C), lambda n: (n, 0, 0)),
        compiler_params=_cparams,
    )(xpp, w1_flat, b1)


# ----------------------------------------------------------------------------
# Kernel B: fused [1x1 conv -> 3x3 s2 conv] branch + 3x3 s2 max pool +
#           fuse 3x3 s1 conv over the channel concat (assembled in VMEM)
# ----------------------------------------------------------------------------

def _fused_kernel(H2p, W2p, H4, W4, Cm, C,
                  x_ref, w2_ref, b2_ref, w3_ref, b3_ref, w4_ref, b4_ref,
                  o_ref, cat_ref):
    f32 = jnp.float32

    # --- 1x1 conv (+BN+ReLU) applied to each polyphase component of padded x0.
    #     The pad ring would become relu(bias), so re-zero it: the stride-2 conv
    #     below then sees true zero padding of the mid feature map.
    xmid = {}
    for p in range(2):
        for q in range(2):
            xph = x_ref[0, p, q].astype(f32)                           # (H2p,W2p,C)
            m = jnp.dot(xph.reshape(H2p * W2p, C).astype(jnp.bfloat16), w2_ref[...],
                        preferred_element_type=f32)
            m = jnp.maximum(m + b2_ref[...], 0.0).reshape(H2p, W2p, Cm)
            ri = jax.lax.broadcasted_iota(jnp.int32, (H2p, W2p, Cm), 0)
            ci = jax.lax.broadcasted_iota(jnp.int32, (H2p, W2p, Cm), 1)
            bad_r = (ri == 0) if p == 0 else (ri == H2p - 1)
            bad_c = (ci == 0) if q == 0 else (ci == W2p - 1)
            xmid[(p, q)] = jnp.where(bad_r | bad_c, 0.0, m)            # f32

    # --- branch: 3x3 stride-2 conv (+BN+ReLU) as a single K = 9*Cm matmul.
    taps = []
    for kh in range(3):
        for kw in range(3):
            taps.append(xmid[(kh % 2, kw % 2)][kh // 2:kh // 2 + H4,
                                               kw // 2:kw // 2 + W4, :])
    slab = jnp.concatenate(taps, axis=-1).reshape(H4 * W4, 9 * Cm)
    xl = jnp.dot(slab.astype(jnp.bfloat16), w3_ref[...], preferred_element_type=f32)
    xl = jnp.maximum(xl + b3_ref[...], 0.0).reshape(H4, W4, C)

    # --- pool branch: 3x3 stride-2 max pool of x0.  x0 >= 0 (post-ReLU), so the
    #     zero padding baked into x0 is equivalent to -inf padding here.
    xr = jnp.full((H4, W4, C), -jnp.inf, f32)
    for kh in range(3):
        for kw in range(3):
            xr = jnp.maximum(
                xr, x_ref[0, kh % 2, kw % 2, kh // 2:kh // 2 + H4,
                          kw // 2:kw // 2 + W4, :].astype(f32))

    # --- fuse: assemble zero-padded [x_left | x_right] in a VMEM scratch
    #     (no HBM concat), then one K = 9*2C im2col matmul.
    cat_ref[...] = jnp.zeros_like(cat_ref)
    cat_ref[1:H4 + 1, 1:W4 + 1, :C] = xl.astype(cat_ref.dtype)
    cat_ref[1:H4 + 1, 1:W4 + 1, C:] = xr.astype(cat_ref.dtype)
    taps = []
    for kh in range(3):
        for kw in range(3):
            taps.append(cat_ref[kh:kh + H4, kw:kw + W4, :].astype(f32))
    slab = jnp.concatenate(taps, axis=-1).reshape(H4 * W4, 18 * C)
    y = jnp.dot(slab.astype(jnp.bfloat16), w4_ref[...], preferred_element_type=f32)
    y = jnp.maximum(y + b4_ref[...], 0.0).reshape(H4, W4, C)

    # --- lane-dense output: (H4, W4*C) flattened (w, c) in one full-block store.
    o_ref[0] = jnp.concatenate([y[:, w, :] for w in range(W4)],
                               axis=-1).astype(o_ref.dtype)


def fused_branch_pool_fuse(x0_pad_wide, w2_flat, b2, w3_flat, b3, w4_flat, b4):
    """x0_pad_wide: (N, H2+2, (W2+2)*C) bf16 zero-padded conv_first output."""
    N, Hp, WpC = x0_pad_wide.shape
    C, Cm = w2_flat.shape
    Wp = WpC // C
    H2, W2 = Hp - 2, Wp - 2
    H4, W4 = H2 // 2, W2 // 2
    H2p, W2p = Hp // 2, Wp // 2
    x0p = x0_pad_wide.reshape(N, Hp, Wp, C)
    x0pp = _polyphase(x0p)                                             # (N,2,2,H2p,W2p,C)
    kern = functools.partial(_fused_kernel, H2p, W2p, H4, W4, Cm, C)
    out = pl.pallas_call(
        kern,
        out_shape=jax.ShapeDtypeStruct((N, H4, W4 * C), jnp.float32),
        grid=(N,),
        in_specs=[
            pl.BlockSpec((1, 2, 2, H2p, W2p, C), lambda n: (n, 0, 0, 0, 0, 0)),
            pl.BlockSpec((C, Cm), lambda n: (0, 0)),
            pl.BlockSpec((1, Cm), lambda n: (0, 0)),
            pl.BlockSpec((9 * Cm, C), lambda n: (0, 0)),
            pl.BlockSpec((1, C), lambda n: (0, 0)),
            pl.BlockSpec((18 * C, C), lambda n: (0, 0)),
            pl.BlockSpec((1, C), lambda n: (0, 0)),
        ],
        out_specs=pl.BlockSpec((1, H4, W4 * C), lambda n: (n, 0, 0)),
        scratch_shapes=[pltpu.VMEM((H4 + 2, W4 + 2, 2 * C), jnp.bfloat16)],
        compiler_params=_cparams,
    )(x0pp, w2_flat, b2, w3_flat, b3, w4_flat, b4)
    return out.reshape(N, H4, W4, C)


# ----------------------------------------------------------------------------
# Parameters (BN folded into bf16 conv weights) and StemBlock forward
# ----------------------------------------------------------------------------

def init_stem_params(key, in_channels=3, out_channels=16):
    mid = out_channels // 2

    def conv_w(k, shape):
        fan_in = shape[0] * shape[1] * shape[2]
        return jax.random.normal(k, shape, jnp.float32) / jnp.sqrt(fan_in)

    def bn(k, c):
        k1, k2, k3, k4 = jax.random.split(k, 4)
        gamma = 0.5 + jax.random.uniform(k1, (c,), jnp.float32)
        beta = 0.1 * jax.random.normal(k2, (c,), jnp.float32)
        mean = 0.1 * jax.random.normal(k3, (c,), jnp.float32)
        var = 0.5 + jax.random.uniform(k4, (c,), jnp.float32)
        return gamma, beta, mean, var

    ks = jax.random.split(key, 8)
    return {
        "w1": conv_w(ks[0], (3, 3, in_channels, out_channels)), "bn1": bn(ks[1], out_channels),
        "w2": conv_w(ks[2], (1, 1, out_channels, mid)),          "bn2": bn(ks[3], mid),
        "w3": conv_w(ks[4], (3, 3, mid, out_channels)),          "bn3": bn(ks[5], out_channels),
        "w4": conv_w(ks[6], (3, 3, 2 * out_channels, out_channels)), "bn4": bn(ks[7], out_channels),
    }


def fold_params(raw, eps=1e-5):
    """Fold inference BatchNorm into the conv weights; cast weights to bf16."""
    def fold(w, bn):
        gamma, beta, mean, var = bn
        scale = gamma / jnp.sqrt(var + eps)
        bias = (beta - mean * scale).astype(jnp.float32).reshape(1, -1)
        return (w * scale).astype(jnp.bfloat16), bias

    out = {}
    for i in (1, 2, 3, 4):
        wf, b = fold(raw[f"w{i}"], raw[f"bn{i}"])
        out[f"w{i}"] = wf          # HWIO bf16, BN scale folded
        out[f"b{i}"] = b           # (1, C) f32
    return out


def stem_block_forward(x_nchw, params):
    """StemBlock forward.  Input/output NCHW to match the PyTorch module."""
    x = jnp.transpose(x_nchw, (0, 2, 3, 1)).astype(jnp.float32)        # NHWC
    N, H, W, Cin = x.shape
    assert H % 4 == 0 and W % 4 == 0, "implementation assumes H, W divisible by 4"
    w1, w2, w3, w4 = params["w1"], params["w2"], params["w3"], params["w4"]
    C = w1.shape[-1]
    Cm = w2.shape[-1]

    # conv_first (kernel A): padded, lane-dense bf16 feature map.
    x0pw = conv_first(x, w1.reshape(9 * Cin, C), params["b1"])

    # branch + pool + fuse (kernel B).
    out = fused_branch_pool_fuse(
        x0pw,
        w2.reshape(C, Cm), params["b2"],
        w3.reshape(9 * Cm, C), params["b3"],
        w4.reshape(9 * 2 * C, C), params["b4"])
    return jnp.transpose(out, (0, 3, 1, 2))                            # NCHW


# ----------------------------------------------------------------------------
# Pure-JAX reference (numerics matched: bf16 operands, f32 accumulation)
# ----------------------------------------------------------------------------

def _ref_cbr(x, w, b, stride, pad):
    y = jax.lax.conv_general_dilated(
        x, w, (stride, stride), ((pad, pad), (pad, pad)),
        dimension_numbers=("NHWC", "HWIO", "NHWC"),
        preferred_element_type=jnp.float32)
    return jnp.maximum(y + b.reshape(1, 1, 1, -1), 0.0)


def stem_block_reference(x_nchw, params):
    x = jnp.transpose(x_nchw, (0, 2, 3, 1)).astype(jnp.float32)
    xb = x.astype(jnp.bfloat16)
    x0 = _ref_cbr(xb, params["w1"], params["b1"], 2, 1).astype(jnp.bfloat16)
    xm = _ref_cbr(x0, params["w2"], params["b2"], 1, 0).astype(jnp.bfloat16)
    xl = _ref_cbr(xm, params["w3"], params["b3"], 2, 1).astype(jnp.bfloat16)
    xr = jax.lax.reduce_window(
        x0.astype(jnp.float32), -jnp.inf, jax.lax.max,
        (1, 3, 3, 1), (1, 2, 2, 1),
        ((0, 0), (1, 1), (1, 1), (0, 0))).astype(jnp.bfloat16)
    xc = jnp.concatenate([xl, xr], axis=-1)
    y = _ref_cbr(xc, params["w4"], params["b4"], 1, 1)
    return jnp.transpose(y, (0, 3, 1, 2))


# ----------------------------------------------------------------------------

if __name__ == "__main__":
    key = jax.random.PRNGKey(0)
    k_x, k_p = jax.random.split(key)

    N, Cin, H, W = 2, 3, 16, 16                   # NCHW, as in the PyTorch module
    Cout = 16
    x = jax.random.normal(k_x, (N, Cin, H, W), jnp.float32)
    params = fold_params(init_stem_params(k_p, in_channels=Cin, out_channels=Cout))

    fwd = jax.jit(stem_block_forward)
    out = jax.block_until_ready(fwd(x, params))
    assert out.shape == (N, Cout, H // 4, W // 4), out.shape

    ref = jax.block_until_ready(stem_block_reference(x, params))
    max_err = float(jnp.max(jnp.abs(out - ref)))
    assert jnp.allclose(out, ref, atol=2e-2, rtol=2e-2), max_err

    print("KERNEL_OK")
</pallas_src>

<mosaic_0001>
module attributes {stable_mosaic.version = 11 : i64} {
  func.func @_conv_first_kernel(%arg0: i32, %arg1: memref<1x2x2x9x9x3xf32, #tpu.memory_space<vmem>>, %arg2: memref<27x16xbf16, #tpu.memory_space<vmem>>, %arg3: memref<1x16xf32, #tpu.memory_space<vmem>>, %arg4: memref<1x10x160xbf16, #tpu.memory_space<vmem>>) attributes {dimension_semantics = [#tpu.dimension_semantics<parallel>], iteration_bounds = array<i64: 2>, scalar_prefetch = 0 : i64, scratch_operands = 0 : i64, tpu.core_type = #tpu.core_type<tc>, window_params = [{transform_indices = @transform_0, window_bounds = array<i64: 1, 2, 2, 9, 9, 3>}, {pipeline_mode = #tpu.pipeline_mode<synchronous>, transform_indices = @transform_1, window_bounds = array<i64: 27, 16>}, {pipeline_mode = #tpu.pipeline_mode<synchronous>, transform_indices = @transform_2, window_bounds = array<i64: 1, 16>}, {transform_indices = @transform_3, window_bounds = array<i64: 1, 10, 160>}]} {
    %c0 = arith.constant 0 : index
    %c0_0 = arith.constant 0 : index
    %c0_1 = arith.constant 0 : index
    %c0_2 = arith.constant 0 : index
    %c0_3 = arith.constant 0 : index
    %c0_4 = arith.constant 0 : index
    %0 = vector.load %arg1[%c0, %c0_0, %c0_1, %c0_2, %c0_3, %c0_4] : memref<1x2x2x9x9x3xf32, #tpu.memory_space<vmem>>, vector<1x1x1x8x8x3xf32>
    %1 = vector.shape_cast %0 : vector<1x1x1x8x8x3xf32> to vector<8x8x3xf32>
    %c0_5 = arith.constant 0 : index
    %c0_6 = arith.constant 0 : index
    %c1 = arith.constant 1 : index
    %c0_7 = arith.constant 0 : index
    %c0_8 = arith.constant 0 : index
    %c0_9 = arith.constant 0 : index
    %2 = vector.load %arg1[%c0_5, %c0_6, %c1, %c0_7, %c0_8, %c0_9] : memref<1x2x2x9x9x3xf32, #tpu.memory_space<vmem>>, vector<1x1x1x8x8x3xf32>
    %3 = vector.shape_cast %2 : vector<1x1x1x8x8x3xf32> to vector<8x8x3xf32>
    %c0_10 = arith.constant 0 : index
    %c0_11 = arith.constant 0 : index
    %c0_12 = arith.constant 0 : index
    %c0_13 = arith.constant 0 : index
    %c1_14 = arith.constant 1 : index
    %c0_15 = arith.constant 0 : index
    %4 = vector.load %arg1[%c0_10, %c0_11, %c0_12, %c0_13, %c1_14, %c0_15] : memref<1x2x2x9x9x3xf32, #tpu.memory_space<vmem>>, vector<1x1x1x8x8x3xf32>
    %5 = vector.shape_cast %4 : vector<1x1x1x8x8x3xf32> to vector<8x8x3xf32>
    %c0_16 = arith.constant 0 : index
    %c1_17 = arith.constant 1 : index
    %c0_18 = arith.constant 0 : index
    %c0_19 = arith.constant 0 : index
    %c0_20 = arith.constant 0 : index
    %c0_21 = arith.constant 0 : index
    %6 = vector.load %arg1[%c0_16, %c1_17, %c0_18, %c0_19, %c0_20, %c0_21] : memref<1x2x2x9x9x3xf32, #tpu.memory_space<vmem>>, vector<1x1x1x8x8x3xf32>
    %7 = vector.shape_cast %6 : vector<1x1x1x8x8x3xf32> to vector<8x8x3xf32>
    %c0_22 = arith.constant 0 : index
    %c1_23 = arith.constant 1 : index
    %c1_24 = arith.constant 1 : index
    %c0_25 = arith.constant 0 : index
    %c0_26 = arith.constant 0 : index
    %c0_27 = arith.constant 0 : index
    %8 = vector.load %arg1[%c0_22, %c1_23, %c1_24, %c0_25, %c0_26, %c0_27] : memref<1x2x2x9x9x3xf32, #tpu.memory_space<vmem>>, vector<1x1x1x8x8x3xf32>
    %9 = vector.shape_cast %8 : vector<1x1x1x8x8x3xf32> to vector<8x8x3xf32>
    %c0_28 = arith.constant 0 : index
    %c1_29 = arith.constant 1 : index
    %c0_30 = arith.constant 0 : index
    %c0_31 = arith.constant 0 : index
    %c1_32 = arith.constant 1 : index
    %c0_33 = arith.constant 0 : index
    %10 = vector.load %arg1[%c0_28, %c1_29, %c0_30, %c0_31, %c1_32, %c0_33] : memref<1x2x2x9x9x3xf32, #tpu.memory_space<vmem>>, vector<1x1x1x8x8x3xf32>
    %11 = vector.shape_cast %10 : vector<1x1x1x8x8x3xf32> to vector<8x8x3xf32>
    %c0_34 = arith.constant 0 : index
    %c0_35 = arith.constant 0 : index
    %c0_36 = arith.constant 0 : index
    %c1_37 = arith.constant 1 : index
    %c0_38 = arith.constant 0 : index
    %c0_39 = arith.constant 0 : index
    %12 = vector.load %arg1[%c0_34, %c0_35, %c0_36, %c1_37, %c0_38, %c0_39] : memref<1x2x2x9x9x3xf32, #tpu.memory_space<vmem>>, vector<1x1x1x8x8x3xf32>
    %13 = vector.shape_cast %12 : vector<1x1x1x8x8x3xf32> to vector<8x8x3xf32>
    %c0_40 = arith.constant 0 : index
    %c0_41 = arith.constant 0 : index
    %c1_42 = arith.constant 1 : index
    %c1_43 = arith.constant 1 : index
    %c0_44 = arith.constant 0 : index
    %c0_45 = arith.constant 0 : index
    %14 = vector.load %arg1[%c0_40, %c0_41, %c1_42, %c1_43, %c0_44, %c0_45] : memref<1x2x2x9x9x3xf32, #tpu.memory_space<vmem>>, vector<1x1x1x8x8x3xf32>
    %15 = vector.shape_cast %14 : vector<1x1x1x8x8x3xf32> to vector<8x8x3xf32>
    %c0_46 = arith.constant 0 : index
    %c0_47 = arith.constant 0 : index
    %c0_48 = arith.constant 0 : index
    %c1_49 = arith.constant 1 : index
    %c1_50 = arith.constant 1 : index
    %c0_51 = arith.constant 0 : index
    %16 = vector.load %arg1[%c0_46, %c0_47, %c0_48, %c1_49, %c1_50, %c0_51] : memref<1x2x2x9x9x3xf32, #tpu.memory_space<vmem>>, vector<1x1x1x8x8x3xf32>
    %17 = vector.shape_cast %16 : vector<1x1x1x8x8x3xf32> to vector<8x8x3xf32>
    %18 = tpu.concatenate %1, %3, %5, %7, %9, %11, %13, %15, %17 in 2 : vector<8x8x3xf32>, vector<8x8x3xf32>, vector<8x8x3xf32>, vector<8x8x3xf32>, vector<8x8x3xf32>, vector<8x8x3xf32>, vector<8x8x3xf32>, vector<8x8x3xf32>, vector<8x8x3xf32> -> vector<8x8x27xf32>
    %19 = vector.shape_cast %18 : vector<8x8x27xf32> to vector<64x27xf32>
    %20 = arith.truncf %19 : vector<64x27xf32> to vector<64x27xbf16>
    %c0_52 = arith.constant 0 : index
    %c0_53 = arith.constant 0 : index
    %21 = vector.load %arg2[%c0_52, %c0_53] : memref<27x16xbf16, #tpu.memory_space<vmem>>, vector<27x16xbf16>
    %cst = arith.constant dense<0.000000e+00> : vector<64x16xf32>
    %22 = tpu.matmul %20, %21, %cst {dimension_numbers = #tpu.dot_dimension_numbers<[1], [0], [0], [1], [0, 0, 1, 1], [], []>} : vector<64x27xbf16>, vector<27x16xbf16>, vector<64x16xf32> -> vector<64x16xf32>
    %c0_54 = arith.constant 0 : index
    %c0_55 = arith.constant 0 : index
    %23 = vector.load %arg3[%c0_54, %c0_55] : memref<1x16xf32, #tpu.memory_space<vmem>>, vector<1x16xf32>
    %24 = vector.broadcast %23 : vector<1x16xf32> to vector<64x16xf32>
    %25 = arith.addf %22, %24 : vector<64x16xf32>
    %cst_56 = arith.constant 0.000000e+00 : f32
    %26 = vector.broadcast %cst_56 : f32 to vector<64x16xf32>
    %27 = arith.maximumf %25, %26 : vector<64x16xf32>
    %28 = vector.shape_cast %27 : vector<64x16xf32> to vector<8x8x16xf32>
    %cst_57 = arith.constant 0.000000e+00 : f32
    %29 = vector.broadcast %cst_57 : f32 to vector<8x16xf32>
    %30 = vector.extract_strided_slice %28 {offsets = [0, 0, 0], sizes = [8, 1, 16], strides = [1, 1, 1]} : vector<8x8x16xf32> to vector<8x1x16xf32>
    %31 = vector.shape_cast %30 : vector<8x1x16xf32> to vector<8x16xf32>
    %32 = vector.extract_strided_slice %28 {offsets = [0, 1, 0], sizes = [8, 1, 16], strides = [1, 1, 1]} : vector<8x8x16xf32> to vector<8x1x16xf32>
    %33 = vector.shape_cast %32 : vector<8x1x16xf32> to vector<8x16xf32>
    %34 = vector.extract_strided_slice %28 {offsets = [0, 2, 0], sizes = [8, 1, 16], strides = [1, 1, 1]} : vector<8x8x16xf32> to vector<8x1x16xf32>
    %35 = vector.shape_cast %34 : vector<8x1x16xf32> to vector<8x16xf32>
    %36 = vector.extract_strided_slice %28 {offsets = [0, 3, 0], sizes = [8, 1, 16], strides = [1, 1, 1]} : vector<8x8x16xf32> to vector<8x1x16xf32>
    %37 = vector.shape_cast %36 : vector<8x1x16xf32> to vector<8x16xf32>
    %38 = vector.extract_strided_slice %28 {offsets = [0, 4, 0], sizes = [8, 1, 16], strides = [1, 1, 1]} : vector<8x8x16xf32> to vector<8x1x16xf32>
    %39 = vector.shape_cast %38 : vector<8x1x16xf32> to vector<8x16xf32>
    %40 = vector.extract_strided_slice %28 {offsets = [0, 5, 0], sizes = [8, 1, 16], strides = [1, 1, 1]} : vector<8x8x16xf32> to vector<8x1x16xf32>
    %41 = vector.shape_cast %40 : vector<8x1x16xf32> to vector<8x16xf32>
    %42 = vector.extract_strided_slice %28 {offsets = [0, 6, 0], sizes = [8, 1, 16], strides = [1, 1, 1]} : vector<8x8x16xf32> to vector<8x1x16xf32>
    %43 = vector.shape_cast %42 : vector<8x1x16xf32> to vector<8x16xf32>
    %44 = vector.extract_strided_slice %28 {offsets = [0, 7, 0], sizes = [8, 1, 16], strides = [1, 1, 1]} : vector<8x8x16xf32> to vector<8x1x16xf32>
    %45 = vector.shape_cast %44 : vector<8x1x16xf32> to vector<8x16xf32>
    %46 = tpu.concatenate %29, %31, %33, %35, %37, %39, %41, %43, %45, %29 in 1 : vector<8x16xf32>, vector<8x16xf32>, vector<8x16xf32>, vector<8x16xf32>, vector<8x16xf32>, vector<8x16xf32>, vector<8x16xf32>, vector<8x16xf32>, vector<8x16xf32>, vector<8x16xf32> -> vector<8x160xf32>
    %cst_58 = arith.constant 0.000000e+00 : f32
    %47 = vector.broadcast %cst_58 : f32 to vector<1x160xf32>
    %48 = tpu.concatenate %47, %46, %47 in 0 : vector<1x160xf32>, vector<8x160xf32>, vector<1x160xf32> -> vector<10x160xf32>
    %49 = arith.truncf %48 : vector<10x160xf32> to vector<10x160xbf16>
    %c0_59 = arith.constant 0 : index
    %c0_60 = arith.constant 0 : index
    %c0_61 = arith.constant 0 : index
    %50 = vector.load %arg4[%c0_59, %c0_60, %c0_61] : memref<1x10x160xbf16, #tpu.memory_space<vmem>>, vector<1x10x160xbf16>
    %51 = vector.shape_cast %50 : vector<1x10x160xbf16> to vector<10x160xbf16>
    %52 = vector.shape_cast %49 : vector<10x160xbf16> to vector<1x10x160xbf16>
    tpu.vector_store %arg4[%c0_59, %c0_60, %c0_61], %52 {strides = array<i32>} : memref<1x10x160xbf16, #tpu.memory_space<vmem>>, vector<1x10x160xbf16>,
    return
  }
  func.func @transform_0(%arg0: i32) -> (i32, i32, i32, i32, i32, i32) {
    %c0_i32 = arith.constant 0 : i32
    %c0_i32_0 = arith.constant 0 : i32
    %c0_i32_1 = arith.constant 0 : i32
    %c0_i32_2 = arith.constant 0 : i32
    %c0_i32_3 = arith.constant 0 : i32
    %c0_i32_4 = arith.constant 0 : i32
    return %arg0, %c0_i32, %c0_i32_0, %c0_i32_1, %c0_i32_2, %c0_i32_3 : i32, i32, i32, i32, i32, i32
  }
  func.func @transform_1(%arg0: i32) -> (i32, i32) {
    %c0_i32 = arith.constant 0 : i32
    %c0_i32_0 = arith.constant 0 : i32
    %c0_i32_1 = arith.constant 0 : i32
    return %c0_i32, %c0_i32_0 : i32, i32
  }
  func.func @transform_2(%arg0: i32) -> (i32, i32) {
    %c0_i32 = arith.constant 0 : i32
    %c0_i32_0 = arith.constant 0 : i32
    %c0_i32_1 = arith.constant 0 : i32
    return %c0_i32, %c0_i32_0 : i32, i32
  }
  func.func @transform_3(%arg0: i32) -> (i32, i32, i32) {
    %c0_i32 = arith.constant 0 : i32
    %c0_i32_0 = arith.constant 0 : i32
    %c0_i32_1 = arith.constant 0 : i32
    return %arg0, %c0_i32, %c0_i32_0 : i32, i32, i32
  }
}

module attributes {stable_mosaic.version = 11 : i64} {
  func.func @_fused_kernel(%arg0: i32, %arg1: memref<1x2x2x5x5x16xbf16, #tpu.memory_space<vmem>>, %arg2: memref<16x8xbf16, #tpu.memory_space<vmem>>, %arg3: memref<1x8xf32, #tpu.memory_space<vmem>>, %arg4: memref<72x16xbf16, #tpu.memory_space<vmem>>, %arg5: memref<1x16xf32, #tpu.memory_space<vmem>>, %arg6: memref<288x16xbf16, #tpu.memory_space<vmem>>, %arg7: memref<1x16xf32, #tpu.memory_space<vmem>>, %arg8: memref<1x4x64xf32, #tpu.memory_space<vmem>>, %arg9: memref<6x6x32xbf16, #tpu.memory_space<vmem>>) attributes {dimension_semantics = [#tpu.dimension_semantics<parallel>], iteration_bounds = array<i64: 2>, scalar_prefetch = 0 : i64, scratch_operands = 1 : i64, tpu.core_type = #tpu.core_type<tc>, window_params = [{transform_indices = @transform_0, window_bounds = array<i64: 1, 2, 2, 5, 5, 16>}, {pipeline_mode = #tpu.pipeline_mode<synchronous>, transform_indices = @transform_1, window_bounds = array<i64: 16, 8>}, {pipeline_mode = #tpu.pipeline_mode<synchronous>, transform_indices = @transform_2, window_bounds = array<i64: 1, 8>}, {pipeline_mode = #tpu.pipeline_mode<synchronous>, transform_indices = @transform_3, window_bounds = array<i64: 72, 16>}, {pipeline_mode = #tpu.pipeline_mode<synchronous>, transform_indices = @transform_4, window_bounds = array<i64: 1, 16>}, {pipeline_mode = #tpu.pipeline_mode<synchronous>, transform_indices = @transform_5, window_bounds = array<i64: 288, 16>}, {pipeline_mode = #tpu.pipeline_mode<synchronous>, transform_indices = @transform_6, window_bounds = array<i64: 1, 16>}, {transform_indices = @transform_7, window_bounds = array<i64: 1, 4, 64>}]} {
    %c0 = arith.constant 0 : index
    %c0_0 = arith.constant 0 : index
    %c0_1 = arith.constant 0 : index
    %c0_2 = arith.constant 0 : index
    %c0_3 = arith.constant 0 : index
    %c0_4 = arith.constant 0 : index
    %0 = vector.load %arg1[%c0, %c0_0, %c0_1, %c0_2, %c0_3, %c0_4] : memref<1x2x2x5x5x16xbf16, #tpu.memory_space<vmem>>, vector<1x1x1x5x5x16xbf16>
    %1 = vector.shape_cast %0 : vector<1x1x1x5x5x16xbf16> to vector<5x5x16xbf16>
    %2 = arith.extf %1 : vector<5x5x16xbf16> to vector<5x5x16xf32>
    %3 = vector.shape_cast %2 : vector<5x5x16xf32> to vector<25x16xf32>
    %4 = arith.truncf %3 : vector<25x16xf32> to vector<25x16xbf16>
    %c0_5 = arith.constant 0 : index
    %c0_6 = arith.constant 0 : index
    %5 = vector.load %arg2[%c0_5, %c0_6] : memref<16x8xbf16, #tpu.memory_space<vmem>>, vector<16x8xbf16>
    %cst = arith.constant dense<0.000000e+00> : vector<25x8xf32>
    %6 = tpu.matmul %4, %5, %cst {dimension_numbers = #tpu.dot_dimension_numbers<[1], [0], [0], [1], [0, 0, 1, 1], [], []>} : vector<25x16xbf16>, vector<16x8xbf16>, vector<25x8xf32> -> vector<25x8xf32>
    %c0_7 = arith.constant 0 : index
    %c0_8 = arith.constant 0 : index
    %7 = vector.load %arg3[%c0_7, %c0_8] : memref<1x8xf32, #tpu.memory_space<vmem>>, vector<1x8xf32>
    %8 = vector.broadcast %7 : vector<1x8xf32> to vector<25x8xf32>
    %9 = arith.addf %6, %8 : vector<25x8xf32>
    %cst_9 = arith.constant 0.000000e+00 : f32
    %10 = vector.broadcast %cst_9 : f32 to vector<25x8xf32>
    %11 = arith.maximumf %9, %10 : vector<25x8xf32>
    %12 = vector.shape_cast %11 : vector<25x8xf32> to vector<5x5x8xf32>
    %13 = tpu.iota {dimensions = array<i32: 0>} : vector<5x5x8xi32>
    %14 = tpu.iota {dimensions = array<i32: 1>} : vector<5x5x8xi32>
    %c0_i32 = arith.constant 0 : i32
    %15 = vector.broadcast %c0_i32 : i32 to vector<5x5x8xi32>
    %16 = arith.cmpi eq, %13, %15 : vector<5x5x8xi32>
    %c0_i32_10 = arith.constant 0 : i32
    %17 = vector.broadcast %c0_i32_10 : i32 to vector<5x5x8xi32>
    %18 = arith.cmpi eq, %14, %17 : vector<5x5x8xi32>
    %19 = arith.ori %16, %18 : vector<5x5x8xi1>
    %cst_11 = arith.constant 0.000000e+00 : f32
    %20 = vector.broadcast %cst_11 : f32 to vector<5x5x8xf32>
    %21 = arith.select %19, %20, %12 : vector<5x5x8xi1>, vector<5x5x8xf32>
    %c0_12 = arith.constant 0 : index
    %c0_13 = arith.constant 0 : index
    %c1 = arith.constant 1 : index
    %c0_14 = arith.constant 0 : index
    %c0_15 = arith.constant 0 : index
    %c0_16 = arith.constant 0 : index
    %22 = vector.load %arg1[%c0_12, %c0_13, %c1, %c0_14, %c0_15, %c0_16] : memref<1x2x2x5x5x16xbf16, #tpu.memory_space<vmem>>, vector<1x1x1x5x5x16xbf16>
    %23 = vector.shape_cast %22 : vector<1x1x1x5x5x16xbf16> to vector<5x5x16xbf16>
    %24 = arith.extf %23 : vector<5x5x16xbf16> to vector<5x5x16xf32>
    %25 = vector.shape_cast %24 : vector<5x5x16xf32> to vector<25x16xf32>
    %26 = arith.truncf %25 : vector<25x16xf32> to vector<25x16xbf16>
    %c0_17 = arith.constant 0 : index
    %c0_18 = arith.constant 0 : index
    %27 = vector.load %arg2[%c0_17, %c0_18] : memref<16x8xbf16, #tpu.memory_space<vmem>>, vector<16x8xbf16>
    %cst_19 = arith.constant dense<0.000000e+00> : vector<25x8xf32>
    %28 = tpu.matmul %26, %27, %cst_19 {dimension_numbers = #tpu.dot_dimension_numbers<[1], [0], [0], [1], [0, 0, 1, 1], [], []>} : vector<25x16xbf16>, vector<16x8xbf16>, vector<25x8xf32> -> vector<25x8xf32>
    %c0_20 = arith.constant 0 : index
    %c0_21 = arith.constant 0 : index
    %29 = vector.load %arg3[%c0_20, %c0_21] : memref<1x8xf32, #tpu.memory_space<vmem>>, vector<1x8xf32>
    %30 = vector.broadcast %29 : vector<1x8xf32> to vector<25x8xf32>
    %31 = arith.addf %28, %30 : vector<25x8xf32>
    %cst_22 = arith.constant 0.000000e+00 : f32
    %32 = vector.broadcast %cst_22 : f32 to vector<25x8xf32>
    %33 = arith.maximumf %31, %32 : vector<25x8xf32>
    %34 = vector.shape_cast %33 : vector<25x8xf32> to vector<5x5x8xf32>
    %35 = tpu.iota {dimensions = array<i32: 0>} : vector<5x5x8xi32>
    %36 = tpu.iota {dimensions = array<i32: 1>} : vector<5x5x8xi32>
    %c0_i32_23 = arith.constant 0 : i32
    %37 = vector.broadcast %c0_i32_23 : i32 to vector<5x5x8xi32>
    %38 = arith.cmpi eq, %35, %37 : vector<5x5x8xi32>
    %c4_i32 = arith.constant 4 : i32
    %39 = vector.broadcast %c4_i32 : i32 to vector<5x5x8xi32>
    %40 = arith.cmpi eq, %36, %39 : vector<5x5x8xi32>
    %41 = arith.ori %38, %40 : vector<5x5x8xi1>
    %cst_24 = arith.constant 0.000000e+00 : f32
    %42 = vector.broadcast %cst_24 : f32 to vector<5x5x8xf32>
    %43 = arith.select %41, %42, %34 : vector<5x5x8xi1>, vector<5x5x8xf32>
    %c0_25 = arith.constant 0 : index
    %c1_26 = arith.constant 1 : index
    %c0_27 = arith.constant 0 : index
    %c0_28 = arith.constant 0 : index
    %c0_29 = arith.constant 0 : index
    %c0_30 = arith.constant 0 : index
    %44 = vector.load %arg1[%c0_25, %c1_26, %c0_27, %c0_28, %c0_29, %c0_30] : memref<1x2x2x5x5x16xbf16, #tpu.memory_space<vmem>>, vector<1x1x1x5x5x16xbf16>
    %45 = vector.shape_cast %44 : vector<1x1x1x5x5x16xbf16> to vector<5x5x16xbf16>
    %46 = arith.extf %45 : vector<5x5x16xbf16> to vector<5x5x16xf32>
    %47 = vector.shape_cast %46 : vector<5x5x16xf32> to vector<25x16xf32>
    %48 = arith.truncf %47 : vector<25x16xf32> to vector<25x16xbf16>
    %c0_31 = arith.constant 0 : index
    %c0_32 = arith.constant 0 : index
    %49 = vector.load %arg2[%c0_31, %c0_32] : memref<16x8xbf16, #tpu.memory_space<vmem>>, vector<16x8xbf16>
    %cst_33 = arith.constant dense<0.000000e+00> : vector<25x8xf32>
    %50 = tpu.matmul %48, %49, %cst_33 {dimension_numbers = #tpu.dot_dimension_numbers<[1], [0], [0], [1], [0, 0, 1, 1], [], []>} : vector<25x16xbf16>, vector<16x8xbf16>, vector<25x8xf32> -> vector<25x8xf32>
    %c0_34 = arith.constant 0 : index
    %c0_35 = arith.constant 0 : index
    %51 = vector.load %arg3[%c0_34, %c0_35] : memref<1x8xf32, #tpu.memory_space<vmem>>, vector<1x8xf32>
    %52 = vector.broadcast %51 : vector<1x8xf32> to vector<25x8xf32>
    %53 = arith.addf %50, %52 : vector<25x8xf32>
    %cst_36 = arith.constant 0.000000e+00 : f32
    %54 = vector.broadcast %cst_36 : f32 to vector<25x8xf32>
    %55 = arith.maximumf %53, %54 : vector<25x8xf32>
    %56 = vector.shape_cast %55 : vector<25x8xf32> to vector<5x5x8xf32>
    %57 = tpu.iota {dimensions = array<i32: 0>} : vector<5x5x8xi32>
    %58 = tpu.iota {dimensions = array<i32: 1>} : vector<5x5x8xi32>
    %c4_i32_37 = arith.constant 4 : i32
    %59 = vector.broadcast %c4_i32_37 : i32 to vector<5x5x8xi32>
    %60 = arith.cmpi eq, %57, %59 : vector<5x5x8xi32>
    %c0_i32_38 = arith.constant 0 : i32
    %61 = vector.broadcast %c0_i32_38 : i32 to vector<5x5x8xi32>
    %62 = arith.cmpi eq, %58, %61 : vector<5x5x8xi32>
    %63 = arith.ori %60, %62 : vector<5x5x8xi1>
    %cst_39 = arith.constant 0.000000e+00 : f32
    %64 = vector.broadcast %cst_39 : f32 to vector<5x5x8xf32>
    %65 = arith.select %63, %64, %56 : vector<5x5x8xi1>, vector<5x5x8xf32>
    %c0_40 = arith.constant 0 : index
    %c1_41 = arith.constant 1 : index
    %c1_42 = arith.constant 1 : index
    %c0_43 = arith.constant 0 : index
    %c0_44 = arith.constant 0 : index
    %c0_45 = arith.constant 0 : index
    %66 = vector.load %arg1[%c0_40, %c1_41, %c1_42, %c0_43, %c0_44, %c0_45] : memref<1x2x2x5x5x16xbf16, #tpu.memory_space<vmem>>, vector<1x1x1x5x5x16xbf16>
    %67 = vector.shape_cast %66 : vector<1x1x1x5x5x16xbf16> to vector<5x5x16xbf16>
    %68 = arith.extf %67 : vector<5x5x16xbf16> to vector<5x5x16xf32>
    %69 = vector.shape_cast %68 : vector<5x5x16xf32> to vector<25x16xf32>
    %70 = arith.truncf %69 : vector<25x16xf32> to vector<25x16xbf16>
    %c0_46 = arith.constant 0 : index
    %c0_47 = arith.constant 0 : index
    %71 = vector.load %arg2[%c0_46, %c0_47] : memref<16x8xbf16, #tpu.memory_space<vmem>>, vector<16x8xbf16>
    %cst_48 = arith.constant dense<0.000000e+00> : vector<25x8xf32>
    %72 = tpu.matmul %70, %71, %cst_48 {dimension_numbers = #tpu.dot_dimension_numbers<[1], [0], [0], [1], [0, 0, 1, 1], [], []>} : vector<25x16xbf16>, vector<16x8xbf16>, vector<25x8xf32> -> vector<25x8xf32>
    %c0_49 = arith.constant 0 : index
    %c0_50 = arith.constant 0 : index
    %73 = vector.load %arg3[%c0_49, %c0_50] : memref<1x8xf32, #tpu.memory_space<vmem>>, vector<1x8xf32>
    %74 = vector.broadcast %73 : vector<1x8xf32> to vector<25x8xf32>
    %75 = arith.addf %72, %74 : vector<25x8xf32>
    %cst_51 = arith.constant 0.000000e+00 : f32
    %76 = vector.broadcast %cst_51 : f32 to vector<25x8xf32>
    %77 = arith.maximumf %75, %76 : vector<25x8xf32>
    %78 = vector.shape_cast %77 : vector<25x8xf32> to vector<5x5x8xf32>
    %79 = tpu.iota {dimensions = array<i32: 0>} : vector<5x5x8xi32>
    %80 = tpu.iota {dimensions = array<i32: 1>} : vector<5x5x8xi32>
    %c4_i32_52 = arith.constant 4 : i32
    %81 = vector.broadcast %c4_i32_52 : i32 to vector<5x5x8xi32>
    %82 = arith.cmpi eq, %79, %81 : vector<5x5x8xi32>
    %c4_i32_53 = arith.constant 4 : i32
    %83 = vector.broadcast %c4_i32_53 : i32 to vector<5x5x8xi32>
    %84 = arith.cmpi eq, %80, %83 : vector<5x5x8xi32>
    %85 = arith.ori %82, %84 : vector<5x5x8xi1>
    %cst_54 = arith.constant 0.000000e+00 : f32
    %86 = vector.broadcast %cst_54 : f32 to vector<5x5x8xf32>
    %87 = arith.select %85, %86, %78 : vector<5x5x8xi1>, vector<5x5x8xf32>
    %88 = vector.extract_strided_slice %21 {offsets = [0, 0, 0], sizes = [4, 4, 8], strides = [1, 1, 1]} : vector<5x5x8xf32> to vector<4x4x8xf32>
    %89 = vector.extract_strided_slice %43 {offsets = [0, 0, 0], sizes = [4, 4, 8], strides = [1, 1, 1]} : vector<5x5x8xf32> to vector<4x4x8xf32>
    %90 = vector.extract_strided_slice %21 {offsets = [0, 1, 0], sizes = [4, 4, 8], strides = [1, 1, 1]} : vector<5x5x8xf32> to vector<4x4x8xf32>
    %91 = vector.extract_strided_slice %65 {offsets = [0, 0, 0], sizes = [4, 4, 8], strides = [1, 1, 1]} : vector<5x5x8xf32> to vector<4x4x8xf32>
    %92 = vector.extract_strided_slice %87 {offsets = [0, 0, 0], sizes = [4, 4, 8], strides = [1, 1, 1]} : vector<5x5x8xf32> to vector<4x4x8xf32>
    %93 = vector.extract_strided_slice %65 {offsets = [0, 1, 0], sizes = [4, 4, 8], strides = [1, 1, 1]} : vector<5x5x8xf32> to vector<4x4x8xf32>
    %94 = vector.extract_strided_slice %21 {offsets = [1, 0, 0], sizes = [4, 4, 8], strides = [1, 1, 1]} : vector<5x5x8xf32> to vector<4x4x8xf32>
    %95 = vector.extract_strided_slice %43 {offsets = [1, 0, 0], sizes = [4, 4, 8], strides = [1, 1, 1]} : vector<5x5x8xf32> to vector<4x4x8xf32>
    %96 = vector.extract_strided_slice %21 {offsets = [1, 1, 0], sizes = [4, 4, 8], strides = [1, 1, 1]} : vector<5x5x8xf32> to vector<4x4x8xf32>
    %97 = tpu.concatenate %88, %89, %90, %91, %92, %93, %94, %95, %96 in 2 : vector<4x4x8xf32>, vector<4x4x8xf32>, vector<4x4x8xf32>, vector<4x4x8xf32>, vector<4x4x8xf32>, vector<4x4x8xf32>, vector<4x4x8xf32>, vector<4x4x8xf32>, vector<4x4x8xf32> -> vector<4x4x72xf32>
    %98 = vector.shape_cast %97 : vector<4x4x72xf32> to vector<16x72xf32>
    %99 = arith.truncf %98 : vector<16x72xf32> to vector<16x72xbf16>
    %c0_55 = arith.constant 0 : index
    %c0_56 = arith.constant 0 : index
    %100 = vector.load %arg4[%c0_55, %c0_56] : memref<72x16xbf16, #tpu.memory_space<vmem>>, vector<72x16xbf16>
    %cst_57 = arith.constant dense<0.000000e+00> : vector<16x16xf32>
    %101 = tpu.matmul %99, %100, %cst_57 {dimension_numbers = #tpu.dot_dimension_numbers<[1], [0], [0], [1], [0, 0, 1, 1], [], []>} : vector<16x72xbf16>, vector<72x16xbf16>, vector<16x16xf32> -> vector<16x16xf32>
    %c0_58 = arith.constant 0 : index
    %c0_59 = arith.constant 0 : index
    %102 = vector.load %arg5[%c0_58, %c0_59] : memref<1x16xf32, #tpu.memory_space<vmem>>, vector<1x16xf32>
    %103 = vector.broadcast %102 : vector<1x16xf32> to vector<16x16xf32>
    %104 = arith.addf %101, %103 : vector<16x16xf32>
    %cst_60 = arith.constant 0.000000e+00 : f32
    %105 = vector.broadcast %cst_60 : f32 to vector<16x16xf32>
    %106 = arith.maximumf %104, %105 : vector<16x16xf32>
    %107 = vector.shape_cast %106 : vector<16x16xf32> to vector<4x4x16xf32>
    %cst_61 = arith.constant 0xFF800000 : f32
    %108 = vector.broadcast %cst_61 : f32 to vector<4x4x16xf32>
    %c0_62 = arith.constant 0 : index
    %c0_63 = arith.constant 0 : index
    %c0_64 = arith.constant 0 : index
    %c0_65 = arith.constant 0 : index
    %c0_66 = arith.constant 0 : index
    %c0_67 = arith.constant 0 : index
    %109 = vector.load %arg1[%c0_62, %c0_63, %c0_64, %c0_65, %c0_66, %c0_67] : memref<1x2x2x5x5x16xbf16, #tpu.memory_space<vmem>>, vector<1x1x1x4x4x16xbf16>
    %110 = vector.shape_cast %109 : vector<1x1x1x4x4x16xbf16> to vector<4x4x16xbf16>
    %111 = arith.extf %110 : vector<4x4x16xbf16> to vector<4x4x16xf32>
    %112 = arith.maximumf %108, %111 : vector<4x4x16xf32>
    %c0_68 = arith.constant 0 : index
    %c0_69 = arith.constant 0 : index
    %c1_70 = arith.constant 1 : index
    %c0_71 = arith.constant 0 : index
    %c0_72 = arith.constant 0 : index
    %c0_73 = arith.constant 0 : index
    %113 = vector.load %arg1[%c0_68, %c0_69, %c1_70, %c0_71, %c0_72, %c0_73] : memref<1x2x2x5x5x16xbf16, #tpu.memory_space<vmem>>, vector<1x1x1x4x4x16xbf16>
    %114 = vector.shape_cast %113 : vector<1x1x1x4x4x16xbf16> to vector<4x4x16xbf16>
    %115 = arith.extf %114 : vector<4x4x16xbf16> to vector<4x4x16xf32>
    %116 = arith.maximumf %112, %115 : vector<4x4x16xf32>
    %c0_74 = arith.constant 0 : index
    %c0_75 = arith.constant 0 : index
    %c0_76 = arith.constant 0 : index
    %c0_77 = arith.constant 0 : index
    %c1_78 = arith.constant 1 : index
    %c0_79 = arith.constant 0 : index
    %117 = vector.load %arg1[%c0_74, %c0_75, %c0_76, %c0_77, %c1_78, %c0_79] : memref<1x2x2x5x5x16xbf16, #tpu.memory_space<vmem>>, vector<1x1x1x4x4x16xbf16>
    %118 = vector.shape_cast %117 : vector<1x1x1x4x4x16xbf16> to vector<4x4x16xbf16>
    %119 = arith.extf %118 : vector<4x4x16xbf16> to vector<4x4x16xf32>
    %120 = arith.maximumf %116, %119 : vector<4x4x16xf32>
    %c0_80 = arith.constant 0 : index
    %c1_81 = arith.constant 1 : index
    %c0_82 = arith.constant 0 : index
    %c0_83 = arith.constant 0 : index
    %c0_84 = arith.constant 0 : index
    %c0_85 = arith.constant 0 : index
    %121 = vector.load %arg1[%c0_80, %c1_81, %c0_82, %c0_83, %c0_84, %c0_85] : memref<1x2x2x5x5x16xbf16, #tpu.memory_space<vmem>>, vector<1x1x1x4x4x16xbf16>
    %122 = vector.shape_cast %121 : vector<1x1x1x4x4x16xbf16> to vector<4x4x16xbf16>
    %123 = arith.extf %122 : vector<4x4x16xbf16> to vector<4x4x16xf32>
    %124 = arith.maximumf %120, %123 : vector<4x4x16xf32>
    %c0_86 = arith.constant 0 : index
    %c1_87 = arith.constant 1 : index
    %c1_88 = arith.constant 1 : index
    %c0_89 = arith.constant 0 : index
    %c0_90 = arith.constant 0 : index
    %c0_91 = arith.constant 0 : index
    %125 = vector.load %arg1[%c0_86, %c1_87, %c1_88, %c0_89, %c0_90, %c0_91] : memref<1x2x2x5x5x16xbf16, #tpu.memory_space<vmem>>, vector<1x1x1x4x4x16xbf16>
    %126 = vector.shape_cast %125 : vector<1x1x1x4x4x16xbf16> to vector<4x4x16xbf16>
    %127 = arith.extf %126 : vector<4x4x16xbf16> to vector<4x4x16xf32>
    %128 = arith.maximumf %124, %127 : vector<4x4x16xf32>
    %c0_92 = arith.constant 0 : index
    %c1_93 = arith.constant 1 : index
    %c0_94 = arith.constant 0 : index
    %c0_95 = arith.constant 0 : index
    %c1_96 = arith.constant 1 : index
    %c0_97 = arith.constant 0 : index
    %129 = vector.load %arg1[%c0_92, %c1_93, %c0_94, %c0_95, %c1_96, %c0_97] : memref<1x2x2x5x5x16xbf16, #tpu.memory_space<vmem>>, vector<1x1x1x4x4x16xbf16>
    %130 = vector.shape_cast %129 : vector<1x1x1x4x4x16xbf16> to vector<4x4x16xbf16>
    %131 = arith.extf %130 : vector<4x4x16xbf16> to vector<4x4x16xf32>
    %132 = arith.maximumf %128, %131 : vector<4x4x16xf32>
    %c0_98 = arith.constant 0 : index
    %c0_99 = arith.constant 0 : index
    %c0_100 = arith.constant 0 : index
    %c1_101 = arith.constant 1 : index
    %c0_102 = arith.constant 0 : index
    %c0_103 = arith.constant 0 : index
    %133 = vector.load %arg1[%c0_98, %c0_99, %c0_100, %c1_101, %c0_102, %c0_103] : memref<1x2x2x5x5x16xbf16, #tpu.memory_space<vmem>>, vector<1x1x1x4x4x16xbf16>
    %134 = vector.shape_cast %133 : vector<1x1x1x4x4x16xbf16> to vector<4x4x16xbf16>
    %135 = arith.extf %134 : vector<4x4x16xbf16> to vector<4x4x16xf32>
    %136 = arith.maximumf %132, %135 : vector<4x4x16xf32>
    %c0_104 = arith.constant 0 : index
    %c0_105 = arith.constant 0 : index
    %c1_106 = arith.constant 1 : index
    %c1_107 = arith.constant 1 : index
    %c0_108 = arith.constant 0 : index
    %c0_109 = arith.constant 0 : index
    %137 = vector.load %arg1[%c0_104, %c0_105, %c1_106, %c1_107, %c0_108, %c0_109] : memref<1x2x2x5x5x16xbf16, #tpu.memory_space<vmem>>, vector<1x1x1x4x4x16xbf16>
    %138 = vector.shape_cast %137 : vector<1x1x1x4x4x16xbf16> to vector<4x4x16xbf16>
    %139 = arith.extf %138 : vector<4x4x16xbf16> to vector<4x4x16xf32>
    %140 = arith.maximumf %136, %139 : vector<4x4x16xf32>
    %c0_110 = arith.constant 0 : index
    %c0_111 = arith.constant 0 : index
    %c0_112 = arith.constant 0 : index
    %c1_113 = arith.constant 1 : index
    %c1_114 = arith.constant 1 : index
    %c0_115 = arith.constant 0 : index
    %141 = vector.load %arg1[%c0_110, %c0_111, %c0_112, %c1_113, %c1_114, %c0_115] : memref<1x2x2x5x5x16xbf16, #tpu.memory_space<vmem>>, vector<1x1x1x4x4x16xbf16>
    %142 = vector.shape_cast %141 : vector<1x1x1x4x4x16xbf16> to vector<4x4x16xbf16>
    %143 = arith.extf %142 : vector<4x4x16xbf16> to vector<4x4x16xf32>
    %144 = arith.maximumf %140, %143 : vector<4x4x16xf32>
    %cst_116 = arith.constant 0.000000e+00 : bf16
    %145 = vector.broadcast %cst_116 : bf16 to vector<6x6x32xbf16>
    %c0_117 = arith.constant 0 : index
    %c0_118 = arith.constant 0 : index
    %c0_119 = arith.constant 0 : index
    %146 = vector.load %arg9[%c0_117, %c0_118, %c0_119] : memref<6x6x32xbf16, #tpu.memory_space<vmem>>, vector<6x6x32xbf16>
    tpu.vector_store %arg9[%c0_117, %c0_118, %c0_119], %145 {strides = array<i32>} : memref<6x6x32xbf16, #tpu.memory_space<vmem>>, vector<6x6x32xbf16>,
    %147 = arith.truncf %107 : vector<4x4x16xf32> to vector<4x4x16xbf16>
    %c1_120 = arith.constant 1 : index
    %c1_121 = arith.constant 1 : index
    %c0_122 = arith.constant 0 : index
    %148 = vector.load %arg9[%c1_120, %c1_121, %c0_122] : memref<6x6x32xbf16, #tpu.memory_space<vmem>>, vector<4x4x16xbf16>
    tpu.vector_store %arg9[%c1_120, %c1_121, %c0_122], %147 {strides = array<i32>} : memref<6x6x32xbf16, #tpu.memory_space<vmem>>, vector<4x4x16xbf16>,
    %149 = arith.truncf %144 : vector<4x4x16xf32> to vector<4x4x16xbf16>
    %c1_123 = arith.constant 1 : index
    %c1_124 = arith.constant 1 : index
    %c16 = arith.constant 16 : index
    %150 = vector.load %arg9[%c1_123, %c1_124, %c16] : memref<6x6x32xbf16, #tpu.memory_space<vmem>>, vector<4x4x16xbf16>
    tpu.vector_store %arg9[%c1_123, %c1_124, %c16], %149 {strides = array<i32>} : memref<6x6x32xbf16, #tpu.memory_space<vmem>>, vector<4x4x16xbf16>,
    %c0_125 = arith.constant 0 : index
    %c0_126 = arith.constant 0 : index
    %c0_127 = arith.constant 0 : index
    %151 = vector.load %arg9[%c0_125, %c0_126, %c0_127] : memref<6x6x32xbf16, #tpu.memory_space<vmem>>, vector<4x4x32xbf16>
    %152 = arith.extf %151 : vector<4x4x32xbf16> to vector<4x4x32xf32>
    %c0_128 = arith.constant 0 : index
    %c1_129 = arith.constant 1 : index
    %c0_130 = arith.constant 0 : index
    %153 = vector.load %arg9[%c0_128, %c1_129, %c0_130] : memref<6x6x32xbf16, #tpu.memory_space<vmem>>, vector<4x4x32xbf16>
    %154 = arith.extf %153 : vector<4x4x32xbf16> to vector<4x4x32xf32>
    %c0_131 = arith.constant 0 : index
    %c2 = arith.constant 2 : index
    %c0_132 = arith.constant 0 : index
    %155 = vector.load %arg9[%c0_131, %c2, %c0_132] : memref<6x6x32xbf16, #tpu.memory_space<vmem>>, vector<4x4x32xbf16>
    %156 = arith.extf %155 : vector<4x4x32xbf16> to vector<4x4x32xf32>
    %c1_133 = arith.constant 1 : index
    %c0_134 = arith.constant 0 : index
    %c0_135 = arith.constant 0 : index
    %157 = vector.load %arg9[%c1_133, %c0_134, %c0_135] : memref<6x6x32xbf16, #tpu.memory_space<vmem>>, vector<4x4x32xbf16>
    %158 = arith.extf %157 : vector<4x4x32xbf16> to vector<4x4x32xf32>
    %c1_136 = arith.constant 1 : index
    %c1_137 = arith.constant 1 : index
    %c0_138 = arith.constant 0 : index
    %159 = vector.load %arg9[%c1_136, %c1_137, %c0_138] : memref<6x6x32xbf16, #tpu.memory_space<vmem>>, vector<4x4x32xbf16>
    %160 = arith.extf %159 : vector<4x4x32xbf16> to vector<4x4x32xf32>
    %c1_139 = arith.constant 1 : index
    %c2_140 = arith.constant 2 : index
    %c0_141 = arith.constant 0 : index
    %161 = vector.load %arg9[%c1_139, %c2_140, %c0_141] : memref<6x6x32xbf16, #tpu.memory_space<vmem>>, vector<4x4x32xbf16>
    %162 = arith.extf %161 : vector<4x4x32xbf16> to vector<4x4x32xf32>
    %c2_142 = arith.constant 2 : index
    %c0_143 = arith.constant 0 : index
    %c0_144 = arith.constant 0 : index
    %163 = vector.load %arg9[%c2_142, %c0_143, %c0_144] : memref<6x6x32xbf16, #tpu.memory_space<vmem>>, vector<4x4x32xbf16>
    %164 = arith.extf %163 : vector<4x4x32xbf16> to vector<4x4x32xf32>
    %c2_145 = arith.constant 2 : index
    %c1_146 = arith.constant 1 : index
    %c0_147 = arith.constant 0 : index
    %165 = vector.load %arg9[%c2_145, %c1_146, %c0_147] : memref<6x6x32xbf16, #tpu.memory_space<vmem>>, vector<4x4x32xbf16>
    %166 = arith.extf %165 : vector<4x4x32xbf16> to vector<4x4x32xf32>
    %c2_148 = arith.constant 2 : index
    %c2_149 = arith.constant 2 : index
    %c0_150 = arith.constant 0 : index
    %167 = vector.load %arg9[%c2_148, %c2_149, %c0_150] : memref<6x6x32xbf16, #tpu.memory_space<vmem>>, vector<4x4x32xbf16>
    %168 = arith.extf %167 : vector<4x4x32xbf16> to vector<4x4x32xf32>
    %169 = tpu.concatenate %152, %154, %156, %158, %160, %162, %164, %166, %168 in 2 : vector<4x4x32xf32>, vector<4x4x32xf32>, vector<4x4x32xf32>, vector<4x4x32xf32>, vector<4x4x32xf32>, vector<4x4x32xf32>, vector<4x4x32xf32>, vector<4x4x32xf32>, vector<4x4x32xf32> -> vector<4x4x288xf32>
    %170 = vector.shape_cast %169 : vector<4x4x288xf32> to vector<16x288xf32>
    %171 = arith.truncf %170 : vector<16x288xf32> to vector<16x288xbf16>
    %c0_151 = arith.constant 0 : index
    %c0_152 = arith.constant 0 : index
    %172 = vector.load %arg6[%c0_151, %c0_152] : memref<288x16xbf16, #tpu.memory_space<vmem>>, vector<288x16xbf16>
    %cst_153 = arith.constant dense<0.000000e+00> : vector<16x16xf32>
    %173 = tpu.matmul %171, %172, %cst_153 {dimension_numbers = #tpu.dot_dimension_numbers<[1], [0], [0], [1], [0, 0, 1, 1], [], []>} : vector<16x288xbf16>, vector<288x16xbf16>, vector<16x16xf32> -> vector<16x16xf32>
    %c0_154 = arith.constant 0 : index
    %c0_155 = arith.constant 0 : index
    %174 = vector.load %arg7[%c0_154, %c0_155] : memref<1x16xf32, #tpu.memory_space<vmem>>, vector<1x16xf32>
    %175 = vector.broadcast %174 : vector<1x16xf32> to vector<16x16xf32>
    %176 = arith.addf %173, %175 : vector<16x16xf32>
    %cst_156 = arith.constant 0.000000e+00 : f32
    %177 = vector.broadcast %cst_156 : f32 to vector<16x16xf32>
    %178 = arith.maximumf %176, %177 : vector<16x16xf32>
    %179 = vector.shape_cast %178 : vector<16x16xf32> to vector<4x4x16xf32>
    %180 = vector.extract_strided_slice %179 {offsets = [0, 0, 0], sizes = [4, 1, 16], strides = [1, 1, 1]} : vector<4x4x16xf32> to vector<4x1x16xf32>
    %181 = vector.shape_cast %180 : vector<4x1x16xf32> to vector<4x16xf32>
    %182 = vector.extract_strided_slice %179 {offsets = [0, 1, 0], sizes = [4, 1, 16], strides = [1, 1, 1]} : vector<4x4x16xf32> to vector<4x1x16xf32>
    %183 = vector.shape_cast %182 : vector<4x1x16xf32> to vector<4x16xf32>
    %184 = vector.extract_strided_slice %179 {offsets = [0, 2, 0], sizes = [4, 1, 16], strides = [1, 1, 1]} : vector<4x4x16xf32> to vector<4x1x16xf32>
    %185 = vector.shape_cast %184 : vector<4x1x16xf32> to vector<4x16xf32>
    %186 = vector.extract_strided_slice %179 {offsets = [0, 3, 0], sizes = [4, 1, 16], strides = [1, 1, 1]} : vector<4x4x16xf32> to vector<4x1x16xf32>
    %187 = vector.shape_cast %186 : vector<4x1x16xf32> to vector<4x16xf32>
    %188 = tpu.concatenate %181, %183, %185, %187 in 1 : vector<4x16xf32>, vector<4x16xf32>, vector<4x16xf32>, vector<4x16xf32> -> vector<4x64xf32>
    %c0_157 = arith.constant 0 : index
    %c0_158 = arith.constant 0 : index
    %c0_159 = arith.constant 0 : index
    %189 = vector.load %arg8[%c0_157, %c0_158, %c0_159] : memref<1x4x64xf32, #tpu.memory_space<vmem>>, vector<1x4x64xf32>
    %190 = vector.shape_cast %189 : vector<1x4x64xf32> to vector<4x64xf32>
    %191 = vector.shape_cast %188 : vector<4x64xf32> to vector<1x4x64xf32>
    tpu.vector_store %arg8[%c0_157, %c0_158, %c0_159], %191 {strides = array<i32>} : memref<1x4x64xf32, #tpu.memory_space<vmem>>, vector<1x4x64xf32>,
    return
  }
  func.func @transform_0(%arg0: i32) -> (i32, i32, i32, i32, i32, i32) {
    %c0_i32 = arith.constant 0 : i32
    %c0_i32_0 = arith.constant 0 : i32
    %c0_i32_1 = arith.constant 0 : i32
    %c0_i32_2 = arith.constant 0 : i32
    %c0_i32_3 = arith.constant 0 : i32
    %c0_i32_4 = arith.constant 0 : i32
    return %arg0, %c0_i32, %c0_i32_0, %c0_i32_1, %c0_i32_2, %c0_i32_3 : i32, i32, i32, i32, i32, i32
  }
  func.func @transform_1(%arg0: i32) -> (i32, i32) {
    %c0_i32 = arith.constant 0 : i32
    %c0_i32_0 = arith.constant 0 : i32
    %c0_i32_1 = arith.constant 0 : i32
    return %c0_i32, %c0_i32_0 : i32, i32
  }
  func.func @transform_2(%arg0: i32) -> (i32, i32) {
    %c0_i32 = arith.constant 0 : i32
    %c0_i32_0 = arith.constant 0 : i32
    %c0_i32_1 = arith.constant 0 : i32
    return %c0_i32, %c0_i32_0 : i32, i32
  }
  func.func @transform_3(%arg0: i32) -> (i32, i32) {
    %c0_i32 = arith.constant 0 : i32
    %c0_i32_0 = arith.constant 0 : i32
    %c0_i32_1 = arith.constant 0 : i32
    return %c0_i32, %c0_i32_0 : i32, i32
  }
  func.func @transform_4(%arg0: i32) -> (i32, i32) {
    %c0_i32 = arith.constant 0 : i32
    %c0_i32_0 = arith.constant 0 : i32
    %c0_i32_1 = arith.constant 0 : i32
    return %c0_i32, %c0_i32_0 : i32, i32
  }
  func.func @transform_5(%arg0: i32) -> (i32, i32) {
    %c0_i32 = arith.constant 0 : i32
    %c0_i32_0 = arith.constant 0 : i32
    %c0_i32_1 = arith.constant 0 : i32
    return %c0_i32, %c0_i32_0 : i32, i32
  }
  func.func @transform_6(%arg0: i32) -> (i32, i32) {
    %c0_i32 = arith.constant 0 : i32
    %c0_i32_0 = arith.constant 0 : i32
    %c0_i32_1 = arith.constant 0 : i32
    return %c0_i32, %c0_i32_0 : i32, i32
  }
  func.func @transform_7(%arg0: i32) -> (i32, i32, i32) {
    %c0_i32 = arith.constant 0 : i32
    %c0_i32_0 = arith.constant 0 : i32
    %c0_i32_1 = arith.constant 0 : i32
    return %arg0, %c0_i32, %c0_i32_0 : i32, i32, i32
  }
}

</mosaic_0001>

<bundles_post_ra>
// kernel: stem_block_forward.2
= control target key start
LH: loop header
LB: loop body
LE: loop exit
PB: predicated region body
PF: predicated region fallthrough
CT: control target
= control target key end

     0   :  { %s1276_s12 = smov 0   ;;  %s1739_s0 = inlined_call_operand.vmem [shape: f32[2,2,2,9,9,3], index: 0, kind: input, shape index: {}]   ;;  %s1740_s1 = inlined_call_operand.vmem [shape: bf16[27,16], index: 1, kind: input, shape index: {}]   ;;  %s1741_s2 = inlined_call_operand.vmem [shape: f32[1,16], index: 2, kind: input, shape index: {}]   ;;  %s1742_s3 = inlined_call_operand.vmem [shape: bf16[2,10,160], index: 3, kind: output, shape index: {}]  }
   0x1 LB: > { %s945_s13 = sadd.s32 4294967295, %s1238_s12   ;;  %p949_p0 = scmp.ge.s32.totalorder %s1238_s12, 1  ;;  %s1238_s12 = sphi %s1276_s12, %s13_s12  }
   0x2   : > { %p137_p1 = scmp.lt.s32.totalorder %s1238_s12, 3 }
   0x4   : > { %p138_p2 = pnand %p949_p0, %p137_p1 }
   0x5   : > { %p161_p3 = scmp.lt.s32.totalorder (!%p138_p2), %s945_s13, 1  ;;  %s1240_s18 = smov (!%p138_p2), 6  }
   0x6   : > { %141 = sbr.rel (%p138_p2) target bundleno = 543 (0x21f), region = 32  ;;  %s1241_s19 = smov (!%p138_p2), 3  }
   0x7   : > { %s1242_s20 = smov (!%p138_p2), 9   ;;  %s1243_s21 = smov (!%p138_p2), 12  }
   0x8   : > { %s1244_s22 = smov (!%p138_p2), 15   ;;  %s1245_s23 = smov (!%p138_p2), 18  }
   0x9   : > { %s1247_s26 = smov (!%p138_p2), 21   ;;  %s1248_s29 = smov (!%p138_p2), 24  }
   0xa   : > { %s1249_s5 = smov (!%p138_p2), 32   ;;  %s1250_s6 = smov (!%p138_p2), 16  }
   0xb   : > { %s1744_s13 = smov (!%p161_p3, %s945_s13), 1  ;;  %vm616_vm0 = vcmask 1044480   ;;  %v1230_v54 = vld [vmem:[%s1740_s1 + $0x8] sm:$0x3f]   ;;  %vm617_vm1 = vcmask 1045504   ;;  %v1246_v55 = vmov 65535  }
   0xc   : > { %s1045_s14 = smul.u32 576, %s1744_s13  ;;  %v618_v56 = vsel %vm616_vm0, 4294967295, %v1246_v55  ;;  %v1231_v63 = vld [vmem:[%s1740_s1] sm:$0xff]   ;;  %vm505_vm2 = vcmask 23552   ;;  %vm514_vm3 = vcmask 48128   ;;  %vm523_vm4 = vcmask 72704  }
   0xd   : > { %v619_v59 = vsel %vm617_vm1, %v618_v56, 0  ;;  %vm532_vm5 = vcmask 97280   ;;  %vm541_vm6 = vcmask 121856   ;;  %vm550_vm7 = vcmask 146432   ;;  %s1251_s7 = smov 64   ;;  %s1252_s8 = smov 48  }
   0xe   : > { %s1290_s17 = scalar_lea.vmem %s1739_s0, %s1045_s14  ;;  %v621_v60 = vand.u32 %v1230_v54, %v619_v59  ;;  %vm559_vm8 = vcmask 171008   ;;  %vm568_vm9 = vcmask 195584   ;;  %vm603_vm10 = vcmask 220160   ;;  %s1253_s9 = smov 96  }
   0xf   : > { %v189_v0 = vld [vmem:[%s1290_s17 + $0x1] sm:$0xff]  ;;  %v1294_v1 = vld [vmem:[%s1290_s17 + $0x11] sm:$0xff]  ;;  %vm705_vm11 = vcmask 1041409   ;;  %vm708_vm12 = vcmask 1042434   ;;  %vm711_vm13 = vcmask 1043459   ;;  %vm714_vm14 = vcmask 1044484  }
  0x10   : > { %v953_v2 = vld [vmem:[%s1290_s17 + $0x90] sm:$0xff]  ;;  %v1080_v3 = vpack.i.bf16 %v1294_v1, %v189_v0  ;;  %v1299_v4 = vld [vmem:[%s1290_s17 + $0xa0] sm:$0xff]  ;;  %1029 = vmatprep.subr.bf16.mxu0 %v621_v60  ;;  %1041 = vmatprep.subr.bf16.mxu1 %v621_v60  ;;  %vm717_vm15 = vcmask 1045509   ;;  %vm720_vm0 = vcmask 1046534   ;;  %vm723_vm1 = vcmask 1047559   ;;  %s1254_s10 = smov 80  }
  0x11   : > { %v1302_v5 = vld [vmem:[%s1290_s17 + $0x21] sm:$0xff]  ;;  %v1305_v6 = vld [vmem:[%s1290_s17 + $0x31] sm:$0xff]  ;;  %v1070_v7 = vpack.i.bf16 %v1299_v4, %v953_v2  ;;  %1030 = vmatpush3.bf16.msra.mxu0 %v621_v60  ;;  %1043 = vmatpush3.bf16.msra.mxu1 %v621_v60  ;;  %s1255_s11 = smov 112   ;;  %s1020_s14 = sshll.u32 %s1744_s13, 4 }
  0x12   : > { %v1309_v8 = vld [vmem:[%s1290_s17 + $0xb0] sm:$0xff]  ;;  %v1312_v9 = vld [vmem:[%s1290_s17 + $0xc0] sm:$0xff]  ;;  %1081 = vrot.lane.b32.xlu1 %v1080_v3, %s1240_s18  ;;  %v1085_v10 = vpack.i.bf16 %v1305_v6, %v1302_v5  ;;  %v1175_v0 = vpack.i.bf16 %v1302_v5, %v1294_v1  ;;  %1031 = vmatprep.subr.bf16.mxu0 %v1231_v63 }
  0x13   : > { %1071 = vrot.lane.b32.xlu0 %v1070_v7, %s1241_s19  ;;  %v1075_v11 = vpack.i.bf16 %v1312_v9, %v1309_v8  ;;  %v963_v12 = vld [vmem:[%s1290_s17 + $0x140] sm:$0xff]  ;;  %v964_v13 = vld [vmem:[%s1290_s17 + $0x150] sm:$0xff]  ;;  %v1155_v50 = vpack.i.bf16 %v1309_v8, %v1299_v4  ;;  %1042 = vmatprep.subr.bf16.mxu1 %v1231_v63 }
  0x14   : > { %v961_v14 = vld [vmem:[%s1290_s17 + $0x120] sm:$0xff]  ;;  %v962_v15 = vld [vmem:[%s1290_s17 + $0x130] sm:$0xff]  ;;  %v1095_v16 = vpack.i.bf16 %v964_v13, %v963_v12 }
  0x15   : > { %v1090_v17 = vpack.i.bf16 %v962_v15, %v961_v14  ;;  %v1327_v18 = vld [vmem:[%s1290_s17 + $0xd0] sm:$0xff]  ;;  %v1330_v19 = vld [vmem:[%s1290_s17 + $0xe0] sm:$0xff]  ;;  %1032 = vmatpush3.bf16.msra.mxu0 %v1231_v63  ;;  %1044 = vmatpush3.bf16.msra.mxu1 %v1231_v63 }
  0x16   : > { %1086 = vrot.lane.b32.xlu1 %v1085_v10, %s1240_s18  ;;  %v969_v20 = vld [vmem:[%s1290_s17 + $0x1b0] sm:$0xff]  ;;  %v970_v21 = vld [vmem:[%s1290_s17 + $0x1c0] sm:$0xff]  ;;  %v1105_v22 = vpack.i.bf16 %v1330_v19, %v1327_v18  ;;  %v1170_v2 = vpack.i.bf16 %v1327_v18, %v1312_v9 }
  0x17   : > { %1076 = vrot.lane.b32.xlu0 %v1075_v11, %s1241_s19  ;;  %v1100_v23 = vpack.i.bf16 %v970_v21, %v969_v20  ;;  %v977_v24 = vld [vmem:[%s1290_s17 + $0x121] sm:$0xff]  ;;  %v978_v25 = vld [vmem:[%s1290_s17 + $0x131] sm:$0xff] }
  0x18   : > { %v971_v26 = vld [vmem:[%s1290_s17 + $0x1d0] sm:$0xff]  ;;  %v972_v27 = vld [vmem:[%s1290_s17 + $0x1e0] sm:$0xff]  ;;  %v1115_v28 = vpack.i.bf16 %v978_v25, %v977_v24 }
  0x19   : > { %v1110_v29 = vpack.i.bf16 %v972_v27, %v971_v26  ;;  %v1345_v30 = vld [vmem:[%s1290_s17 + $0x41] sm:$0xff]  ;;  %v1348_v31 = vld [vmem:[%s1290_s17 + $0x51] sm:$0xff] }
  0x1a   : > { %1096 = vrot.lane.b32.xlu1 %v1095_v16, %s1242_s20  ;;  %v1351_v32 = vld [vmem:[%s1290_s17 + $0xf0] sm:$0xff]  ;;  %v1354_v33 = vld [vmem:[%s1290_s17 + $0x100] sm:$0xff]  ;;  %v1125_v34 = vpack.i.bf16 %v1348_v31, %v1345_v30  ;;  %v1190_v12 = vpack.i.bf16 %v1345_v30, %v1305_v6 }
  0x1b   : > { %1091 = vrot.lane.b32.xlu0 %v1090_v17, %s1242_s20  ;;  %v1120_v35 = vpack.i.bf16 %v1354_v33, %v1351_v32  ;;  %v1363_v36 = vld [vmem:[%s1290_s17 + $0x10] sm:$0xff]  ;;  %v1366_v37 = vld [vmem:[%s1290_s17 + $0x20] sm:$0xff]  ;;  %v1210_v21 = vpack.i.bf16 %v1351_v32, %v1330_v19 }
  0x1c   : > { %v979_v38 = vld [vmem:[%s1290_s17 + $0x141] sm:$0xff]  ;;  %v980_v39 = vld [vmem:[%s1290_s17 + $0x151] sm:$0xff]  ;;  %v1135_v40 = vpack.i.bf16 %v1366_v37, %v1363_v36 }
  0x1d   : > { %v1130_v41 = vpack.i.bf16 %v980_v39, %v979_v38  ;;  %v965_v42 = vld [vmem:[%s1290_s17 + $0x160] sm:$0xff]  ;;  %v966_v43 = vld [vmem:[%s1290_s17 + $0x170] sm:$0xff] }
  0x1e   : > { %1106 = vrot.lane.b32.xlu1 %v1105_v22, %s1241_s19  ;;  %v1377_v44 = vld [vmem:[%s1290_s17 + $0x61] sm:$0xff]  ;;  %v1380_v45 = vld [vmem:[%s1290_s17 + $0x71] sm:$0xff]  ;;  %v1145_v46 = vpack.i.bf16 %v966_v43, %v965_v42 }
  0x1f   : > { %1101 = vrot.lane.b32.xlu0 %v1100_v23, %s1243_s21  ;;  %v1140_v47 = vpack.i.bf16 %v1380_v45, %v1377_v44  ;;  %v1387_v48 = vld [vmem:[%s1290_s17 + $0x30] sm:$0xff]  ;;  %v1390_v49 = vld [vmem:[%s1290_s17 + $0x40] sm:$0xff]  ;;  %v1220_v24 = vpack.i.bf16 %v1377_v44, %v1348_v31 }
  0x20   : > { %v1150_v51 = vpack.i.bf16 %v1390_v49, %v1387_v48  ;;  %v973_v52 = vld [vmem:[%s1290_s17 + $0x1f0] sm:$0xff]  ;;  %v974_v53 = vld [vmem:[%s1290_s17 + $0x200] sm:$0xff] }
  0x21   : > { %v967_v57 = vld [vmem:[%s1290_s17 + $0x180] sm:$0xff]  ;;  %v968_v58 = vld [vmem:[%s1290_s17 + $0x190] sm:$0xff]  ;;  %v1165_v61 = vpack.i.bf16 %v974_v53, %v973_v52 }
  0x22   : > { %1116 = vrot.lane.b32.xlu1 %v1115_v28, %s1244_s22  ;;  %v1160_v62 = vpack.i.bf16 %v968_v58, %v967_v57  ;;  %v981_v3 = vld [vmem:[%s1290_s17 + $0x161] sm:$0xff]  ;;  %v982_v4 = vld [vmem:[%s1290_s17 + $0x171] sm:$0xff] }
  0x23   : > { %1111 = vrot.lane.b32.xlu0 %v1110_v29, %s1243_s21  ;;  %v975_v7 = vld [vmem:[%s1290_s17 + $0x210] sm:$0xff]  ;;  %v976_v8 = vld [vmem:[%s1290_s17 + $0x220] sm:$0xff]  ;;  %v1185_v1 = vpack.i.bf16 %v982_v4, %v981_v3 }
  0x24   : > { %v1180_v5 = vpack.i.bf16 %v976_v8, %v975_v7  ;;  %v983_v9 = vld [vmem:[%s1290_s17 + $0x181] sm:$0xff]  ;;  %v984_v10 = vld [vmem:[%s1290_s17 + $0x191] sm:$0xff] }
  0x25   : > { %v1195_v11 = vpack.i.bf16 %v984_v10, %v983_v9  ;;  %v1428_v13 = vld [vmem:[%s1290_s17 + $0x70] sm:$0xff]  ;;  %v992_v14 = vld [vmem:[%s1290_s17 + $0x80] sm:$0xff] }
  0x26   : > { %1126 = vrot.lane.b32.xlu1 %v1125_v34, %s1240_s18  ;;  %v1432_v15 = vld [vmem:[%s1290_s17 + $0x50] sm:$0xff]  ;;  %v1435_v16 = vld [vmem:[%s1290_s17 + $0x60] sm:$0xff]  ;;  %v1205_v17 = vpack.i.bf16 %v992_v14, %v1428_v13 }
  0x27   : > { %1121 = vrot.lane.b32.xlu0 %v1120_v35, %s1241_s19  ;;  %v1200_v18 = vpack.i.bf16 %v1435_v16, %v1432_v15  ;;  %v1000_v20 = vld [vmem:[%s1290_s17 + $0x110] sm:$0xff]  ;;  %v1008_v22 = vld [vmem:[%s1290_s17 + $0x81] sm:$0xff] }
  0x28   : > { %v1215_v6 = vpack.i.bf16 %v1000_v20, %v1354_v33  ;;  %v1225_v23 = vpack.i.bf16 %v1008_v22, %v1380_v45  ;;  %v172_v43 = vld [vmem:[%s1290_s17] sm:$0xff]  ;;  %s170_s17 = scalar_lea.vmem %s1742_s3, %s1020_s14 }
  0x2a   : > { %1136 = vrot.lane.b32.xlu1 %v1135_v40, %s1245_s23 }
  0x2b   : > { %1131 = vrot.lane.b32.xlu0 %v1130_v41, %s1244_s22 }
  0x2e   : > { %1146 = vrot.lane.b32.xlu1 %v1145_v46, %s1242_s20 }
  0x2f   : > { %1141 = vrot.lane.b32.xlu0 %v1140_v47, %s1240_s18 }
  0x32   : > { %1156 = vrot.lane.b32.xlu1 %v1155_v50, %s1247_s26 }
  0x33   : > { %1151 = vrot.lane.b32.xlu0 %v1150_v51, %s1245_s23 }
  0x36   : > { %1166 = vrot.lane.b32.xlu1 %v1165_v61, %s1243_s21 }
  0x37   : > { %1161 = vrot.lane.b32.xlu0 %v1160_v62, %s1242_s20 }
  0x3a   : > { %1176 = vrot.lane.b32.xlu1 %v1175_v0, %s1248_s29 }
  0x3b   : > { %1171 = vrot.lane.b32.xlu0 %v1170_v2, %s1247_s26 }
  0x3e   : > { %1186 = vrot.lane.b32.xlu1 %v1185_v1, %s1244_s22 }
  0x3f   : > { %1181 = vrot.lane.b32.xlu0 %v1180_v5, %s1243_s21 }
  0x42   : > { %1196 = vrot.lane.b32.xlu1 %v1195_v11, %s1244_s22 }
  0x43   : > { %1191 = vrot.lane.b32.xlu0 %v1190_v12, %s1248_s29 }
  0x46   : > { %1206 = vrot.lane.b32.xlu1 %v1205_v17, %s1245_s23 }
  0x47   : > { %1201 = vrot.lane.b32.xlu0 %v1200_v18, %s1245_s23 }
  0x4a   : > { %1216 = vrot.lane.b32.xlu1 %v1215_v6, %s1247_s26 }
  0x4b   : > { %1211 = vrot.lane.b32.xlu0 %v1210_v21, %s1247_s26 }
  0x4e   : > { %1226 = vrot.lane.b32.xlu1 %v1225_v23, %s1248_s29 }
  0x4f   : > { %1221 = vrot.lane.b32.xlu0 %v1220_v24, %s1248_s29 }
  0x84   : > { %v1082_v25 = vpop.permute.xlu1 %1081 }
  0x85   : > { %v1072_v26 = vpop.permute.xlu0 %1071  ;;  %v1084_v45 = vunpack.i.h.bf16 %v1082_v25  ;;  %v1083_v46 = vunpack.i.l.bf16 %v1082_v25 }
  0x86   : > { %v1074_v40 = vunpack.i.h.bf16 %v1072_v26  ;;  %v1073_v41 = vunpack.i.l.bf16 %v1072_v26 }
  0x88   : > { %v1087_v27 = vpop.permute.xlu1 %1086  ;;  %v506_v47 = vsel %vm505_vm2, %v172_v43, %v1073_v41  ;;  %v507_v50 = vsel %vm505_vm2, %v1363_v36, %v1074_v40 }
  0x89   : > { %v1077_v28 = vpop.permute.xlu0 %1076  ;;  %v1089_v55 = vunpack.i.h.bf16 %v1087_v27  ;;  %v1088_v56 = vunpack.i.l.bf16 %v1087_v27  ;;  %v515_v59 = vsel %vm514_vm3, %v506_v47, %v1083_v46  ;;  %v516_v60 = vsel %vm514_vm3, %v507_v50, %v1084_v45 }
  0x8a   : > { %v1079_v51 = vunpack.i.h.bf16 %v1077_v28  ;;  %v1078_v52 = vunpack.i.l.bf16 %v1077_v28 }
  0x8c   : > { %v1453_v29 = vpop.permute.xlu1 %1096  ;;  %v508_v36 = vsel %vm505_vm2, %v1366_v37, %v1078_v52  ;;  %v509_v63 = vsel %vm505_vm2, %v1387_v48, %v1079_v51 }
  0x8d   : > { %v1092_v19 = vpop.permute.xlu0 %1091  ;;  %v1099_v4 = vunpack.i.h.bf16 %v1453_v29  ;;  %v1098_v7 = vunpack.i.l.bf16 %v1453_v29  ;;  %v517_v48 = vsel %vm514_vm3, %v508_v36, %v1088_v56  ;;  %v518_v12 = vsel %vm514_vm3, %v509_v63, %v1089_v55 }
  0x8e   : > { %v1094_v57 = vunpack.i.h.bf16 %v1092_v19  ;;  %v1093_v58 = vunpack.i.l.bf16 %v1092_v19 }
  0x8f   : > { %v527_v47 = vsel %vm523_vm4, %v518_v12, %v1099_v4 }
  0x90   : > { %v1455_v30 = vpop.permute.xlu1 %1106  ;;  %v524_v9 = vsel %vm523_vm4, %v515_v59, %v1093_v58  ;;  %v525_v10 = vsel %vm523_vm4, %v516_v60, %v1094_v57 }
  0x91   : > { %v1102_v32 = vpop.permute.xlu0 %1101  ;;  %v1109_v18 = vunpack.i.h.bf16 %v1455_v30  ;;  %v1108_v20 = vunpack.i.l.bf16 %v1455_v30 }
  0x92   : > { %v1104_v61 = vunpack.i.h.bf16 %v1102_v32  ;;  %v1103_v62 = vunpack.i.l.bf16 %v1102_v32  ;;  %v526_v32 = vsel %vm523_vm4, %v517_v48, %v1098_v7 }
  0x93   : > { %v510_v50 = vsel %vm505_vm2, %v1390_v49, %v1108_v20  ;;  %v511_v51 = vsel %vm505_vm2, %v1432_v15, %v1109_v18 }
  0x94   : > { %v1117_v33 = vpop.permute.xlu1 %1116  ;;  %v533_v14 = vsel %vm532_vm5, %v524_v9, %v1103_v62  ;;  %v534_v17 = vsel %vm532_vm5, %v525_v10, %v1104_v61 }
  0x95   : > { %v1457_v34 = vpop.permute.xlu0 %1111  ;;  %v1119_v0 = vunpack.i.h.bf16 %v1117_v33  ;;  %v1118_v2 = vunpack.i.l.bf16 %v1117_v33 }
  0x96   : > { %v1114_v28 = vunpack.i.h.bf16 %v1457_v34  ;;  %v1113_v29 = vunpack.i.l.bf16 %v1457_v34 }
  0x97   : > { %v542_v6 = vsel %vm541_vm6, %v533_v14, %v1118_v2  ;;  %v543_v21 = vsel %vm541_vm6, %v534_v17, %v1119_v0 }
  0x98   : > { %v1459_v35 = vpop.permute.xlu1 %1126  ;;  %v536_v55 = vsel %vm532_vm5, %v527_v47, %v1114_v28 }
  0x99   : > { %v1461_v38 = vpop.permute.xlu0 %1121  ;;  %v1128_v33 = vunpack.i.l.bf16 %v1459_v35  ;;  %v1129_v41 = vunpack.i.h.bf16 %v1459_v35  ;;  %v535_v35 = vsel %vm532_vm5, %v526_v32, %v1113_v29 }
  0x9a   : > { %v1123_v43 = vunpack.i.l.bf16 %v1461_v38  ;;  %v1124_v49 = vunpack.i.h.bf16 %v1461_v38 }
  0x9b   : > { %v519_v58 = vsel %vm514_vm3, %v510_v50, %v1128_v33  ;;  %v520_v15 = vsel %vm514_vm3, %v511_v51, %v1129_v41 }
  0x9c   : > { %v1137_v31 = vpop.permute.xlu1 %1136 }
  0x9d   : > { %v1463_v39 = vpop.permute.xlu0 %1131  ;;  %v1139_v8 = vunpack.i.h.bf16 %v1137_v31  ;;  %v1138_v1 = vunpack.i.l.bf16 %v1137_v31 }
  0x9e   : > { %v1133_v45 = vunpack.i.l.bf16 %v1463_v39  ;;  %v1134_v52 = vunpack.i.h.bf16 %v1463_v39  ;;  %v512_v39 = vsel %vm505_vm2, %v1435_v16, %v1123_v43 }
  0x9f   : > { %v551_v23 = vsel %vm550_vm7, %v542_v6, %v1138_v1  ;;  %v552_v24 = vsel %vm550_vm7, %v543_v21, %v1139_v8 }
  0xa0   : > { %v1465_v42 = vpop.permute.xlu1 %1146  ;;  %v544_v61 = vsel %vm541_vm6, %v535_v35, %v1133_v45 }
  0xa1   : > { %v1468_v44 = vpop.permute.xlu0 %1141  ;;  %v1148_v62 = vunpack.i.l.bf16 %v1465_v42  ;;  %v1149_v63 = vunpack.i.h.bf16 %v1465_v42  ;;  %v513_v42 = vsel %vm505_vm2, %v1428_v13, %v1124_v49  ;;  %vm845_vm2 = vcmask 130048  }
  0xa2   : > { %v1144_v0 = vunpack.i.h.bf16 %v1468_v44  ;;  %v1143_v38 = vunpack.i.l.bf16 %v1468_v44 }
  0xa3   : > { %v528_v44 = vsel %vm523_vm4, %v519_v58, %v1148_v62  ;;  %v529_v14 = vsel %vm523_vm4, %v520_v15, %v1149_v63 }
  0xa4   : > { %v1157_v53 = vpop.permute.xlu1 %1156  ;;  %v521_v6 = vsel %vm514_vm3, %v512_v39, %v1143_v38  ;;  %v522_v21 = vsel %vm514_vm3, %v513_v42, %v1144_v0  ;;  %vm847_vm3 = vcmask 261120  }
  0xa5   : > { %v1473_v54 = vpop.permute.xlu0 %1151  ;;  %v1159_v37 = vunpack.i.h.bf16 %v1157_v53  ;;  %v1158_v11 = vunpack.i.l.bf16 %v1157_v53 }
  0xa6   : > { %v1154_v56 = vunpack.i.h.bf16 %v1473_v54  ;;  %v1153_v57 = vunpack.i.l.bf16 %v1473_v54  ;;  %v545_v54 = vsel %vm541_vm6, %v536_v55, %v1134_v52 }
  0xa7   : > { %v560_v19 = vsel %vm559_vm8, %v551_v23, %v1158_v11  ;;  %v561_v30 = vsel %vm559_vm8, %v552_v24, %v1159_v37 }
  0xa8   : > { %v1481_v3 = vpop.permute.xlu1 %1166  ;;  %v553_v4 = vsel %vm550_vm7, %v544_v61, %v1153_v57  ;;  %v554_v7 = vsel %vm550_vm7, %v545_v54, %v1154_v56 }
  0xa9   : > { %v1485_v5 = vpop.permute.xlu0 %1161  ;;  %v1169_v1 = vunpack.i.h.bf16 %v1481_v3  ;;  %v1168_v9 = vunpack.i.l.bf16 %v1481_v3 }
  0xaa   : > { %v1164_v17 = vunpack.i.h.bf16 %v1485_v5  ;;  %v1163_v3 = vunpack.i.l.bf16 %v1485_v5 }
  0xab   : > { %v537_v23 = vsel %vm532_vm5, %v528_v44, %v1168_v9  ;;  %v538_v24 = vsel %vm532_vm5, %v529_v14, %v1169_v1 }
  0xac   : > { %v1177_v22 = vpop.permute.xlu1 %1176  ;;  %v531_v32 = vsel %vm523_vm4, %v522_v21, %v1164_v17 }
  0xad   : > { %v1179_v25 = vunpack.i.h.bf16 %v1177_v22  ;;  %v1178_v26 = vunpack.i.l.bf16 %v1177_v22  ;;  %v1172_v27 = vpop.permute.xlu0 %1171 }
  0xae   : > { %v1174_v59 = vunpack.i.h.bf16 %v1172_v27  ;;  %v1173_v60 = vunpack.i.l.bf16 %v1172_v27 }
  0xaf   : > { %v569_v31 = vsel %vm568_vm9, %v560_v19, %v1178_v26  ;;  %v570_v40 = vsel %vm568_vm9, %v561_v30, %v1179_v25  ;;  %v530_v30 = vsel %vm523_vm4, %v521_v6, %v1163_v3  ;;  %vm849_vm4 = vcmask 392192  }
  0xb0   : > { %v1510_v46 = vpop.permute.xlu1 %1186  ;;  %v577_v34 = vpack.c.bf16 %v570_v40, %v569_v31  ;;  %v562_v10 = vsel %vm559_vm8, %v553_v4, %v1173_v60  ;;  %v563_v37 = vsel %vm559_vm8, %v554_v7, %v1174_v59 }
  0xb1   : > { %v1182_v53 = vpop.permute.xlu0 %1181  ;;  %v1189_v27 = vunpack.i.h.bf16 %v1510_v46  ;;  %v1188_v5 = vunpack.i.l.bf16 %v1510_v46 }
  0xb2   : > { %1033 = vmatprep.mubr.msk.bf16.mxu0 %vm603_vm10, %v577_v34  ;;  %v1184_v13 = vunpack.i.h.bf16 %v1182_v53  ;;  %v1183_v22 = vunpack.i.l.bf16 %v1182_v53 }
  0xb3   : > { %v546_v52 = vsel %vm541_vm6, %v537_v23, %v1188_v5  ;;  %v547_v53 = vsel %vm541_vm6, %v538_v24, %v1189_v27 }
  0xb4   : > { %v1197_v36 = vpop.permute.xlu1 %1196  ;;  %v539_v41 = vsel %vm532_vm5, %v530_v30, %v1183_v22  ;;  %v540_v43 = vsel %vm532_vm5, %v531_v32, %v1184_v13  ;;  %vm851_vm5 = vcmask 523264  }
  0xb5   : > { %v1192_v2 = vpop.permute.xlu0 %1191  ;;  %v1199_v25 = vunpack.i.h.bf16 %v1197_v36  ;;  %v1198_v26 = vunpack.i.l.bf16 %v1197_v36 }
  0xb6   : > { %v1194_v8 = vunpack.i.h.bf16 %v1192_v2  ;;  %v1193_v16 = vunpack.i.l.bf16 %v1192_v2 }
  0xb7   : > { %v548_v47 = vsel %vm541_vm6, %v539_v41, %v1198_v26  ;;  %v549_v46 = vsel %vm541_vm6, %v540_v43, %v1199_v25  ;;  %vm853_vm6 = vcmask 654336  }
  0xb8   : > { %v571_v11 = vsel %vm568_vm9, %v562_v10, %v1193_v16  ;;  %v572_v48 = vsel %vm568_vm9, %v563_v37, %v1194_v8  ;;  %v1207_v12 = vpop.permute.xlu1 %1206  ;;  %v1580_v8 = vld [vmem:[%s1741_s2] ss:$0 sm:$0xff] }
  0xb9   : > { %v578_v18 = vpack.c.bf16 %v572_v48, %v571_v11  ;;  %v1202_v20 = vpop.permute.xlu0 %1201  ;;  %v1209_v28 = vunpack.i.h.bf16 %v1207_v12  ;;  %v1208_v29 = vunpack.i.l.bf16 %v1207_v12 }
  0xba   : > { %v1204_v33 = vunpack.i.h.bf16 %v1202_v20  ;;  %v1203_v31 = vunpack.i.l.bf16 %v1202_v20 }
  0xbb   : > { %1034 = vmatmul.mubr.msk.bf16.vlgmr.msra.gmra.mxu0 %vm603_vm10, %v578_v18  ;;  %v557_v35 = vsel %vm550_vm7, %v548_v47, %v1208_v29  ;;  %v558_v55 = vsel %vm550_vm7, %v549_v46, %v1209_v28 }
  0xbc   : > { %v1217_v19 = vpop.permute.xlu1 %1216  ;;  %v555_v57 = vsel %vm550_vm7, %v546_v52, %v1203_v31  ;;  %v556_v58 = vsel %vm550_vm7, %v547_v53, %v1204_v33  ;;  %vm855_vm7 = vcmask 785408  }
  0xbd   : > { %v1212_v40 = vpop.permute.xlu0 %1211  ;;  %v1219_v45 = vunpack.i.h.bf16 %v1217_v19  ;;  %v1218_v34 = vunpack.i.l.bf16 %v1217_v19 }
  0xbe   : > { %v1214_v50 = vunpack.i.h.bf16 %v1212_v40  ;;  %v1213_v51 = vunpack.i.l.bf16 %v1212_v40 }
  0xbf   : > { %v566_v15 = vsel %vm559_vm8, %v557_v35, %v1218_v34  ;;  %v567_v39 = vsel %vm559_vm8, %v558_v55, %v1219_v45 }
  0xc0   : > { %v1227_v56 = vpop.permute.xlu1 %1226  ;;  %v564_v63 = vsel %vm559_vm8, %v555_v57, %v1213_v51  ;;  %v565_v0 = vsel %vm559_vm8, %v556_v58, %v1214_v50  ;;  %vm857_vm8 = vcmask 916480  }
  0xc1   : > { %v1229_v49 = vunpack.i.h.bf16 %v1227_v56  ;;  %v1228_v59 = vunpack.i.l.bf16 %v1227_v56  ;;  %v1222_v60 = vpop.permute.xlu0 %1221 }
  0xc2   : > { %v1224_v61 = vunpack.i.h.bf16 %v1222_v60  ;;  %v1223_v62 = vunpack.i.l.bf16 %v1222_v60 }
  0xc3   : > { %v575_v36 = vsel %vm568_vm9, %v566_v15, %v1228_v59  ;;  %v576_v54 = vsel %vm568_vm9, %v567_v39, %v1229_v49 }
  0xc4   : > { %v580_v38 = vpack.c.bf16 %v576_v54, %v575_v36  ;;  %v573_v2 = vsel %vm568_vm9, %v564_v63, %v1223_v62  ;;  %v574_v4 = vsel %vm568_vm9, %v565_v0, %v1224_v61  ;;  %vm883_vm9 = vcmask 1043456  }
  0xc5   : > { %v579_v7 = vpack.c.bf16 %v574_v4, %v573_v2 }
  0xc7   : > { %1037 = vmatprep.mubr.msk.bf16.mxu1 %vm603_vm10, %v579_v7 }
  0xc8   : > { %1038 = vmatmul.mubr.msk.bf16.vlgmr.msra.gmra.mxu1 %vm603_vm10, %v580_v38  ;;  %vm884_vm10 = vcmask 261124  }
 0x17b   : > { %v1035_v16 = vpop.f32.mrf.mxu0 }
 0x17c   : > { %v666_v1 = vadd.f32 %v1035_v16, %v1580_v8 }
 0x17d   : > { %v657_v9 = vpop.f32.mrf.mxu0 }
 0x17e   : > { %v1583_v10 = vmax.f32 %v666_v1, 0.0  ;;  %v658_v37 = vadd.f32 %v1580_v8, %v657_v9 }
 0x17f   : > { %v1036_v42 = vpop.f32.mrf.mxu0 }
 0x180   : > { %v1586_v44 = vmax.f32 %v658_v37, 0.0  ;;  %v669_v11 = vadd.f32 %v1036_v42, %v1580_v8  ;;  %v730_v12 = vrot.slane %v1583_v10, 7  ;;  %v707_v3 = vrot.slane %v1583_v10, 6 }
 0x181   : > { %v660_v48 = vpop.f32.mrf.mxu0  ;;  %v765_v18 = vrot.slane %v1583_v10, 1  ;;  %v799_v6 = vrot.slane %v1583_v10, 3  ;;  %v782_v21 = vrot.slane %v1583_v10, 2  ;;  %v816_v13 = vrot.slane %v1583_v10, 4 }
 0x182   : > { %v1590_v14 = vmax.f32 %v669_v11, 0.0  ;;  %v661_v17 = vadd.f32 %v1580_v8, %v660_v48  ;;  %v728_v20 = vrot.slane %v1586_v44, 1  ;;  %v762_v23 = vrot.slane %v1586_v44, 3 }
 0x183   : > { %v745_v24 = vrot.slane %v1586_v44, 2  ;;  %v796_v25 = vrot.slane %v1586_v44, 5  ;;  %v779_v5 = vrot.slane %v1586_v44, 4  ;;  %v813_v28 = vrot.slane %v1586_v44, 6 }
 0x184   : > { %v1599_v22 = vmax.f32 %v661_v17, 0.0  ;;  %v732_v26 = vrot.slane %v1590_v14, 6  ;;  %v710_v27 = vrot.slane %v1590_v14, 5  ;;  %v749_v33 = vrot.slane %v1590_v14, 7 }
 0x185   : > { %v801_v40 = vrot.slane %v1590_v14, 2  ;;  %v784_v46 = vrot.slane %v1590_v14, 1  ;;  %v818_v58 = vrot.slane %v1590_v14, 3  ;;  %v830_v54 = vrot.slane %v1586_v44, 7 }
 0x186   : > { %v729_v29 = vsel %vm705_vm11, %v1599_v22, %v728_v20  ;;  %v704_v19 = vrot.slane %v1599_v22, 7  ;;  %v763_v30 = vrot.slane %v1599_v22, 2  ;;  %v746_v32 = vrot.slane %v1599_v22, 1 }
 0x187   : > { %v797_v31 = vrot.slane %v1599_v22, 4  ;;  %v780_v41 = vrot.slane %v1599_v22, 3  ;;  %v731_v51 = vsel %vm708_vm12, %v730_v12, %v729_v29  ;;  %v814_v57 = vrot.slane %v1599_v22, 5 }
 0x188   : > { %v1039_v43 = vpop.f32.mrf.mxu1  ;;  %v706_v45 = vsel %vm705_vm11, %v704_v19, %v1586_v44  ;;  %v764_v34 = vsel %vm705_vm11, %v763_v30, %v762_v23  ;;  %v747_v47 = vsel %vm705_vm11, %v746_v32, %v745_v24  ;;  %v733_v61 = vsel %vm711_vm13, %v732_v26, %v731_v51 }
 0x189   : > { %v682_v50 = vadd.f32 %v1039_v43, %v1580_v8  ;;  %v709_v52 = vsel %vm708_vm12, %v707_v3, %v706_v45  ;;  %v766_v53 = vsel %vm708_vm12, %v765_v18, %v764_v34  ;;  %v748_v55 = vsel %vm708_vm12, %v1583_v10, %v747_v47 }
 0x18a   : > { %v673_v35 = vpop.f32.mrf.mxu1  ;;  %v798_v56 = vsel %vm705_vm11, %v797_v31, %v796_v25  ;;  %v781_v15 = vsel %vm705_vm11, %v780_v41, %v779_v5  ;;  %v712_v62 = vsel %vm711_vm13, %v710_v27, %v709_v52  ;;  %v767_v36 = vsel %vm711_vm13, %v1590_v14, %v766_v53 }
 0x18b   : > { %v1631_v49 = vmax.f32 %v682_v50, 0.0  ;;  %v674_v59 = vadd.f32 %v1580_v8, %v673_v35  ;;  %v800_v60 = vsel %vm708_vm12, %v799_v6, %v798_v56  ;;  %v750_v38 = vsel %vm711_vm13, %v749_v33, %v748_v55 }
 0x18c   : > { %v1040_v39 = vpop.f32.mrf.mxu1  ;;  %v802_v2 = vsel %vm711_vm13, %v801_v40, %v800_v60  ;;  %v783_v16 = vsel %vm708_vm12, %v782_v21, %v781_v15  ;;  %v815_v1 = vsel %vm705_vm11, %v814_v57, %v813_v28  ;;  %v831_v9 = vrot.slane %v1599_v22, 6 }
 0x18d   : > { %v1641_v63 = vmax.f32 %v674_v59, 0.0  ;;  %v685_v0 = vadd.f32 %v1040_v39, %v1580_v8  ;;  %v738_v7 = vrot.slane %v1631_v49, 3  ;;  %v719_v12 = vrot.slane %v1631_v49, 2 }
 0x18e   : > { %v676_v4 = vpop.f32.mrf.mxu1  ;;  %v772_v6 = vrot.slane %v1631_v49, 5  ;;  %v755_v21 = vrot.slane %v1631_v49, 4  ;;  %v806_v34 = vrot.slane %v1631_v49, 7  ;;  %v789_v57 = vrot.slane %v1631_v49, 6 }
 0x18f   : > { %v1650_v37 = vmax.f32 %v685_v0, 0.0  ;;  %v677_v42 = vadd.f32 %v1580_v8, %v676_v4  ;;  %v734_v11 = vrot.slane %v1641_v63, 5  ;;  %v713_v48 = vrot.slane %v1641_v63, 4 }
 0x190   : > { %v768_v17 = vrot.slane %v1641_v63, 7  ;;  %v751_v3 = vrot.slane %v1641_v63, 6  ;;  %v803_v18 = vrot.slane %v1641_v63, 1  ;;  %v785_v8 = vsel %vm711_vm13, %v784_v46, %v783_v16 }
 0x191   : > { %v1659_v20 = vmax.f32 %v677_v42, 0.0  ;;  %v735_v22 = vsel %vm714_vm14, %v734_v11, %v733_v61  ;;  %v740_v23 = vrot.slane %v1650_v37, 2  ;;  %v715_v24 = vsel %vm714_vm14, %v713_v48, %v712_v62 }
 0x192   : > { %v722_v25 = vrot.slane %v1650_v37, 1  ;;  %v769_v29 = vsel %vm714_vm14, %v768_v17, %v767_v36  ;;  %v752_v19 = vsel %vm714_vm14, %v751_v3, %v750_v38  ;;  %v804_v30 = vsel %vm714_vm14, %v803_v18, %v802_v2 }
 0x193   : > { %v736_v26 = vrot.slane %v1659_v20, 4  ;;  %v716_v27 = vrot.slane %v1659_v20, 3  ;;  %v770_v5 = vrot.slane %v1659_v20, 6  ;;  %v753_v28 = vrot.slane %v1659_v20, 5 }
 0x194   : > { %v787_v32 = vrot.slane %v1659_v20, 7  ;;  %v786_v47 = vsel %vm714_vm14, %v1641_v63, %v785_v8  ;;  %v774_v53 = vrot.slane %v1650_v37, 4  ;;  %v757_v35 = vrot.slane %v1650_v37, 3 }
 0x195   : > { %v737_v33 = vsel %vm717_vm15, %v736_v26, %v735_v22  ;;  %v718_v31 = vsel %vm717_vm15, %v716_v27, %v715_v24  ;;  %v771_v40 = vsel %vm717_vm15, %v770_v5, %v769_v29  ;;  %v754_v41 = vsel %vm717_vm15, %v753_v28, %v752_v19 }
 0x196   : > { %v739_v43 = vsel %vm720_vm0, %v738_v7, %v737_v33  ;;  %v721_v45 = vsel %vm720_vm0, %v719_v12, %v718_v31  ;;  %v773_v51 = vsel %vm720_vm0, %v772_v6, %v771_v40  ;;  %v756_v52 = vsel %vm720_vm0, %v755_v21, %v754_v41 }
 0x197   : > { %v741_v46 = vsel %vm723_vm1, %v740_v23, %v739_v43  ;;  %v724_v50 = vsel %vm723_vm1, %v722_v25, %v721_v45  ;;  %v805_v55 = vsel %vm717_vm15, %v1659_v20, %v804_v30  ;;  %v788_v56 = vsel %vm717_vm15, %v787_v32, %v786_v47 }
 0x198   : > { %742 = vrot.lane.b32.xlu1 %v741_v46, %s1249_s5  ;;  %725 = vrot.lane.b32.xlu0 %v724_v50, %s1250_s6  ;;  %v817_v59 = vsel %vm708_vm12, %v816_v13, %v815_v1  ;;  %v820_v60 = vrot.slane %v1641_v63, 2  ;;  %v822_v15 = vrot.slane %v1659_v20, 1  ;;  %v775_v39 = vsel %vm723_vm1, %v774_v53, %v773_v51 }
 0x199   : > { %v758_v61 = vsel %vm723_vm1, %v757_v35, %v756_v52  ;;  %v807_v62 = vsel %vm720_vm0, %v806_v34, %v805_v55  ;;  %v790_v36 = vsel %vm720_vm0, %v789_v57, %v788_v56  ;;  %v819_v0 = vsel %vm711_vm13, %v818_v58, %v817_v59 }
 0x19a   : > { %v832_v13 = vsel %vm705_vm11, %v831_v9, %v830_v54  ;;  %v833_v38 = vrot.slane %v1583_v10, 5  ;;  %v821_v2 = vsel %vm714_vm14, %v820_v60, %v819_v0  ;;  %v835_v4 = vrot.slane %v1590_v14, 4 }
 0x19b   : > { %v837_v7 = vrot.slane %v1641_v63, 3  ;;  %v839_v16 = vrot.slane %v1659_v20, 2  ;;  %v808_v58 = vrot.slane %v1650_v37, 6  ;;  %v791_v44 = vrot.slane %v1650_v37, 5 }
 0x19c   : > { %776 = vrot.lane.b32.xlu1 %v775_v39, %s1251_s7  ;;  %759 = vrot.lane.b32.xlu0 %v758_v61, %s1252_s8  ;;  %v823_v54 = vsel %vm717_vm15, %v822_v15, %v821_v2  ;;  %v834_v10 = vsel %vm708_vm12, %v833_v38, %v832_v13  ;;  %v841_v63 = vrot.slane %v1631_v49, 1  ;;  %v825_v12 = vrot.slane %v1650_v37, 7 }
 0x19d   : > { %v836_v1 = vsel %vm711_vm13, %v835_v4, %v834_v10  ;;  %v809_v9 = vsel %vm723_vm1, %v808_v58, %v807_v62  ;;  %v792_v42 = vsel %vm723_vm1, %v791_v44, %v790_v36  ;;  %v824_v11 = vsel %vm720_vm0, %v1631_v49, %v823_v54  ;;  %vm885_vm13 = vmor %vm884_vm10, %vm883_vm9 }
 0x19e   : > { %v838_v14 = vsel %vm714_vm14, %v837_v7, %v836_v1  ;;  %v826_v18 = vsel %vm723_vm1, %v825_v12, %v824_v11  ;;  %vm866_vm11 = vcmask 1040384   ;;  %vm887_vm12 = vcmask 258052  }
 0x19f   : > { %v840_v48 = vsel %vm717_vm15, %v839_v16, %v838_v14  ;;  %vm888_vm14 = vmor %vm887_vm12, %vm866_vm11 }
 0x1a0   : > { %810 = vrot.lane.b32.xlu1 %v809_v9, %s1253_s9  ;;  %793 = vrot.lane.b32.xlu0 %v792_v42, %s1254_s10  ;;  %v842_v17 = vsel %vm720_vm0, %v841_v63, %v840_v48 }
 0x1a1   : > { %v843_v3 = vsel %vm723_vm1, %v1650_v37, %v842_v17 }
 0x1a2   : > { %v859_v37 = vsel %vm845_vm2, %v843_v3, 0.0 }
 0x1a3   : > { %v863_v5 = vrot.slane %v859_v37, 7 }
 0x1a4   : > { %827 = vrot.lane.b32.xlu0 %v826_v18, %s1255_s11 }
 0x1a5   : > { %v868_v32 = vsel %vm866_vm11, 0.0, %v863_v5  ;;  %v870_v33 = vsel %vm866_vm11, %v863_v5, 0.0 }
 0x20a   : > { %v743_v20 = vpop.permute.xlu1 %742  ;;  %v726_v6 = vpop.permute.xlu0 %725 }
 0x20b   : > { %v846_v21 = vsel %vm845_vm2, 0.0, %v726_v6 }
 0x20c   : > { %v848_v49 = vsel %vm847_vm3, %v846_v21, %v743_v20 }
 0x20e   : > { %v777_v8 = vpop.permute.xlu1 %776  ;;  %v760_v22 = vpop.permute.xlu0 %759 }
 0x20f   : > { %v850_v23 = vsel %vm849_vm4, %v848_v49, %v760_v22 }
 0x210   : > { %v852_v24 = vsel %vm851_vm5, %v850_v23, %v777_v8 }
 0x212   : > { %v794_v25 = vpop.permute.xlu0 %793  ;;  %v811_v26 = vpop.permute.xlu1 %810 }
 0x213   : > { %v854_v27 = vsel %vm853_vm6, %v852_v24, %v794_v25 }
 0x214   : > { %v856_v28 = vsel %vm855_vm7, %v854_v27, %v811_v26 }
 0x216   : > { %v828_v29 = vpop.permute.xlu0 %827 }
 0x217   : > { %v858_v19 = vsel %vm857_vm8, %v856_v28, %v828_v29 }
 0x218   : > { %v862_v30 = vrot.slane %v858_v19, 7 }
 0x21a   : > { %v867_v31 = vsel %vm866_vm11, 0.0, %v862_v30  ;;  %v869_v40 = vsel %vm866_vm11, %v862_v30, 0.0 }
 0x21b   : > { %v1021_v41 = vpack.c.bf16 %v868_v32, %v867_v31  ;;  %v1022_v43 = vpack.c.bf16 %v870_v33, %v869_v40 }
 0x21d   : > { %886 = vst.msk [vmem:[%s170_s17] sm:$0xff] %vm885_vm13, %v1021_v41 }
 0x21e   : > { %889 = vst.msk [vmem:[%s170_s17 + $0x8] sm:$0x11] %vm888_vm14, %v1022_v43 }
 0x21f PF: > { %s13_s12 = sadd.s32 1, %s1238_s12  }
 0x220   : > { %p10_p4 = scmp.ge.s32.totalorder %s13_s12, 4  }
 0x222   :  { %12 = sbr.rel (!%p10_p4) target bundleno = 1 (0x1), region = 67 }

// kernel: stem_block_forward.3
= control target key start
LH: loop header
LB: loop body
LE: loop exit
PB: predicated region body
PF: predicated region fallthrough
CT: control target
= control target key end

     0   :  { %s4950_s24 = smov 0   ;;  %s5872_s0 = inlined_call_operand.vmem [shape: bf16[2,2,2,5,5,16], index: 0, kind: input, shape index: {}]   ;;  %s5873_s1 = inlined_call_operand.vmem [shape: bf16[16,8], index: 1, kind: input, shape index: {}]   ;;  %s5874_s2 = inlined_call_operand.vmem [shape: f32[1,8], index: 2, kind: input, shape index: {}]   ;;  %s5875_s3 = inlined_call_operand.vmem [shape: bf16[72,16], index: 3, kind: input, shape index: {}]   ;;  %s5876_s4 = inlined_call_operand.vmem [shape: f32[1,16], index: 4, kind: input, shape index: {}]   ;;  %s5877_s5 = inlined_call_operand.vmem [shape: bf16[288,16], index: 5, kind: input, shape index: {}]   ;;  %s5878_s6 = inlined_call_operand.vmem [shape: f32[1,16], index: 6, kind: input, shape index: {}]   ;;  %s5879_s7 = inlined_call_operand.vmem [shape: f32[2,4,64], index: 7, kind: output, shape index: {}]  }
   0x1 LB: > { %s4563_s25 = sadd.s32 4294967295, %s4895_s24   ;;  %p4567_p0 = scmp.ge.s32.totalorder %s4895_s24, 1  ;;  %s4895_s24 = sphi %s4950_s24, %s17_s24  }
   0x2   : > { %p237_p1 = scmp.lt.s32.totalorder %s4895_s24, 3 }
   0x4   : > { %p238_p2 = pnand %p4567_p0, %p237_p1 }
   0x5   : > { %p268_p3 = scmp.lt.s32.totalorder (!%p238_p2), %s4563_s25, 1  ;;  %s4899_s9 = smov (!%p238_p2), 8  }
   0x6   : > { %241 = sbr.rel (%p238_p2) target bundleno = 1187 (0x4a3), region = 48  ;;  %s4900_s10 = smov (!%p238_p2), 16  }
   0x7   : > { %s4901_s13 = smov (!%p238_p2), 48   ;;  %s4902_s14 = smov (!%p238_p2), 56  }
   0x8   : > { %s4903_s15 = smov (!%p238_p2), 64   ;;  %s4904_s16 = smov (!%p238_p2), 24  }
   0x9   : > { %s4905_s17 = smov (!%p238_p2), 32   ;;  %s4906_s22 = smov (!%p238_p2), 40  }
   0xa   : > { %s4909_s29 = smov (!%p238_p2), 96  }
   0xb   : > { %v4961_v0 = vld [vmem:[%s5873_s1] sm:$0xff]   ;;  %v297_v1 = vlaneseq  ;;  %s5885_s25 = smov (!%p268_p3, %s4563_s25), 1  ;;  %v4897_v2 = vmov 1966171168   ;;  %vm670_vm0 = vcmask 130048   ;;  %vm3581_vm3 = vcmask 1043456  }
   0xc   : > { %4737 = vmatprep.subr.bf16.mxu0 %v4961_v0  ;;  %4743 = vmatprep.subr.bf16.mxu1 %v4961_v0  ;;  %v295_v3 = vunpack.c.l.s4 %v4897_v2  ;;  %s4783_s28 = smul.u32 80, %s5885_s25  ;;  %vm4907_vm4 = vmmov 0   ;;  %vm3486_vm5 = vcmask 64512   ;;  %vm3495_vm6 = vcmask 195584   ;;  %s4569_s18 = sshll.u32 %s5885_s25, 2 }
   0xd   : > { %v4967_v4 = vshrl.u32 %v297_v1, 7  ;;  %4738 = vmatpush3.bf16.msra.mxu0 %v4961_v0  ;;  %4744 = vmatpush3.bf16.msra.mxu1 %v4961_v0  ;;  %vm3500_vm7 = vcmask 261120   ;;  %vm3505_vm8 = vcmask 326656   ;;  %vm3510_vm9 = vcmask 392192   ;;  %s276_s21 = scalar_lea.vmem %s5879_s7, %s4569_s18 }
   0xe   : > { %v296_v5 = vunpack.c.0.s8 %v295_v3  ;;  %4749 = vmatprep.subr.bf16.mxu0 %v4961_v0  ;;  %4755 = vmatprep.subr.bf16.mxu1 %v4961_v0  ;;  %s4977_s8 = scalar_lea.vmem %s5872_s0, %s4783_s28  ;;  %vm3515_vm10 = vcmask 457728   ;;  %vm3520_vm11 = vcmask 523264   ;;  %vm3577_vm12 = vcmask 588800  }
   0xf   : > { %v278_v7 = vld [vmem:[%s4977_s8] sm:$0x7]  ;;  %v279_v8 = vld [vmem:[%s4977_s8 + $0x4] sm:$0x7]  ;;  %v280_v9 = vld [vmem:[%s4977_s8 + $0x8] sm:$0x7] }
  0x10   : > { %v4980_v6 = vsub.s32 %v296_v5, %v4967_v4  ;;  %v281_v10 = vld [vmem:[%s4977_s8 + $0xc] sm:$0x7]  ;;  %v283_v11 = vunpack.c.l.bf16 %v278_v7  ;;  %v284_v12 = vunpack.c.l.bf16 %v279_v8  ;;  %v285_v13 = vunpack.c.l.bf16 %v280_v9  ;;  %v4580_v14 = vld [vmem:[%s4977_s8 + $0x14] sm:$0x7]  ;;  %v4581_v15 = vld [vmem:[%s4977_s8 + $0x18] sm:$0x7] }
  0x11   : > { %v4988_v16 = vunpack.c.l.bf16 %v281_v10  ;;  %v1111_v17 = vunpack.c.l.bf16 %v4580_v14  ;;  %v4990_v18 = vunpack.c.l.bf16 %v4581_v15  ;;  %v4582_v43 = vld [vmem:[%s4977_s8 + $0x1c] sm:$0x7]  ;;  %v4583_v48 = vld [vmem:[%s4977_s8 + $0x20] sm:$0x7]  ;;  %vm897_vm1 = vcmp.eq.s32.totalorder %v4967_v4, 0 }
  0x12   : > { %v293_v19 = vcombine.high %v283_v11, %v283_v11  ;;  %v300_v20 = vrot.slane %v283_v11, %v4980_v6  ;;  %v332_v21 = vcombine.high %v284_v12, %v284_v12  ;;  %v339_v22 = vrot.slane %v284_v12, %v4980_v6 }
  0x13   : > { %v371_v23 = vcombine.high %v285_v13, %v285_v13  ;;  %v378_v24 = vrot.slane %v285_v13, %v4980_v6  ;;  %v410_v25 = vcombine.high %v4988_v16, %v4988_v16  ;;  %v4999_v26 = vrot.slane %v4988_v16, %v4980_v6 }
  0x14   : > { %v307_v27 = vrot.slane %v293_v19, %v4980_v6  ;;  %v308_v28 = vcombine.high %v300_v20, %v300_v20  ;;  %v315_v29 = vrot.slane %v300_v20, %v4980_v6  ;;  %v346_v30 = vrot.slane %v332_v21, %v4980_v6 }
  0x15   : > { %v347_v31 = vcombine.high %v339_v22, %v339_v22  ;;  %v354_v32 = vrot.slane %v339_v22, %v4980_v6  ;;  %v385_v33 = vrot.slane %v371_v23, %v4980_v6  ;;  %v386_v34 = vcombine.high %v378_v24, %v378_v24 }
  0x16   : > { %v322_v35 = vrot.slane %v307_v27, %v4980_v6  ;;  %v329_v36 = vrot.slane %v308_v28, %v4980_v6  ;;  %v361_v37 = vrot.slane %v346_v30, %v4980_v6  ;;  %v393_v38 = vrot.slane %v378_v24, %v4980_v6 }
  0x17   : > { %v368_v39 = vrot.slane %v347_v31, %v4980_v6  ;;  %v369_v40 = vcombine.high %v354_v32, %v354_v32  ;;  %v400_v41 = vrot.slane %v385_v33, %v4980_v6  ;;  %v407_v42 = vrot.slane %v386_v34, %v4980_v6 }
  0x18   : > { %v425_v44 = vcombine.high %v4999_v26, %v4999_v26  ;;  %v5018_v45 = vrot.slane %v4999_v26, %v4980_v6  ;;  %v488_v46 = vcombine.low %v315_v29, %v329_v36  ;;  %v4570_v47 = vcombine.high %v315_v29, %v329_v36 }
  0x19   : > { %v370_v49 = vcombine.high %v368_v39, %v368_v39  ;;  %v490_v50 = vcombine.low %v322_v35, %v354_v32  ;;  %v491_v51 = vcombine.low %v368_v39, %v369_v40  ;;  %v538_v52 = vcombine.low %v393_v38, %v407_v42 }
  0x1a   : > { %v447_v53 = vcombine.high %v5018_v45, %v5018_v45  ;;  %v498_v54 = vrot.slane %v488_v46, %v4980_v6  ;;  %v505_v55 = vrot.slane %v4570_v47, %v4980_v6  ;;  %v4571_v56 = vcombine.high %v393_v38, %v407_v42 }
  0x1b   : > { %v512_v57 = vrot.slane %v490_v50, %v4980_v6  ;;  %v519_v58 = vrot.slane %v491_v51, %v4980_v6  ;;  %v537_v59 = vcombine.low %v370_v49, %v361_v37  ;;  %v540_v60 = vcombine.low %v400_v41, %v5018_v45 }
  0x1c   : > { %v520_v61 = vcombine.low %v498_v54, %v505_v55  ;;  %v554_v62 = vrot.slane %v538_v52, %v4980_v6  ;;  %v561_v63 = vrot.slane %v4571_v56, %v4980_v6  ;;  %v1113_v1 = vunpack.c.l.bf16 %v4582_v43  ;;  %v282_v54 = vld [vmem:[%s4977_s8 + $0x10] sm:$0x7] }
  0x1d   : > { %v521_v2 = vcombine.low %v512_v57, %v519_v58  ;;  %v547_v3 = vrot.slane %v537_v59, %v4980_v6  ;;  %v568_v5 = vrot.slane %v540_v60, %v4980_v6  ;;  %v5032_v7 = vunpack.c.l.bf16 %v4583_v48 }
  0x1e   : > { %v528_v8 = vrot.slane %v520_v61, %v4980_v6  ;;  %v1121_v9 = vcombine.high %v1111_v17, %v1111_v17  ;;  %v1128_v10 = vrot.slane %v1111_v17, %v4980_v6  ;;  %v1160_v11 = vcombine.high %v4990_v18, %v4990_v18 }
  0x1f   : > { %v535_v12 = vrot.slane %v521_v2, %v4980_v6  ;;  %v569_v13 = vcombine.low %v547_v3, %v554_v62  ;;  %v570_v14 = vcombine.low %v561_v63, %v568_v5  ;;  %v1167_v15 = vrot.slane %v4990_v18, %v4980_v6 }
  0x20   : > { %v1135_v19 = vrot.slane %v1121_v9, %v4980_v6  ;;  %v1136_v20 = vcombine.high %v1128_v10, %v1128_v10  ;;  %v1143_v21 = vrot.slane %v1128_v10, %v4980_v6  ;;  %v1174_v22 = vrot.slane %v1160_v11, %v4980_v6 }
  0x21   : > { %v536_v23 = vcombine.low %v528_v8, %v535_v12  ;;  %v577_v17 = vrot.slane %v569_v13, %v4980_v6  ;;  %v584_v24 = vrot.slane %v570_v14, %v4980_v6  ;;  %v1175_v27 = vcombine.high %v1167_v15, %v1167_v15 }
  0x22   : > { %v1150_v28 = vrot.slane %v1135_v19, %v4980_v6  ;;  %v1157_v29 = vrot.slane %v1136_v20, %v4980_v6  ;;  %v1182_v30 = vrot.slane %v1167_v15, %v4980_v6  ;;  %v1189_v18 = vrot.slane %v1174_v22, %v4980_v6 }
  0x23   : > { %v585_v31 = vcombine.low %v577_v17, %v584_v24  ;;  %v1196_v32 = vrot.slane %v1175_v27, %v4980_v6  ;;  %v1199_v33 = vcombine.high %v1113_v1, %v1113_v1  ;;  %v1206_v34 = vrot.slane %v1113_v1, %v4980_v6  ;;  %v4593_v27 = vld [vmem:[%s4977_s8 + $0x28] sm:$0x7] }
  0x24   : > { %v1197_v35 = vcombine.high %v1182_v30, %v1182_v30  ;;  %v1238_v36 = vcombine.high %v5032_v7, %v5032_v7  ;;  %v1245_v37 = vrot.slane %v5032_v7, %v4980_v6  ;;  %v1316_v38 = vcombine.low %v1143_v21, %v1157_v29 }
  0x25   : > { %v653_v39 = vpack.c.bf16 %v585_v31, %v536_v23  ;;  %v1198_v40 = vcombine.high %v1196_v32, %v1196_v32  ;;  %v1213_v41 = vrot.slane %v1199_v33, %v4980_v6  ;;  %v1214_v42 = vcombine.high %v1206_v34, %v1206_v34  ;;  %v4584_v23 = vld [vmem:[%s4977_s8 + $0x24] sm:$0x7] }
  0x26   : > { %v1221_v43 = vrot.slane %v1206_v34, %v4980_v6  ;;  %v1253_v46 = vcombine.high %v1245_v37, %v1245_v37  ;;  %v5059_v47 = vrot.slane %v1245_v37, %v4980_v6  ;;  %v4585_v48 = vcombine.high %v1143_v21, %v1157_v29 }
  0x27   : > { %4739 = vmatprep.mubr.msk.bf16.mxu0 %vm670_vm0, %v653_v39  ;;  %v1228_v49 = vrot.slane %v1213_v41, %v4980_v6  ;;  %v1235_v50 = vrot.slane %v1214_v42, %v4980_v6  ;;  %v1318_v51 = vcombine.low %v1150_v28, %v1182_v30  ;;  %v1319_v52 = vcombine.low %v1196_v32, %v1197_v35  ;;  %v4594_v42 = vld [vmem:[%s4977_s8 + $0x2c] sm:$0x7] }
  0x28   : > { %v1275_v55 = vcombine.high %v5059_v47, %v5059_v47  ;;  %v1326_v56 = vrot.slane %v1316_v38, %v4980_v6  ;;  %v1333_v57 = vrot.slane %v4585_v48, %v4980_v6  ;;  %v1365_v58 = vcombine.low %v1198_v40, %v1189_v18 }
  0x29   : > { %v1340_v59 = vrot.slane %v1318_v51, %v4980_v6  ;;  %v1347_v60 = vrot.slane %v1319_v52, %v4980_v6  ;;  %v1366_v61 = vcombine.low %v1221_v43, %v1235_v50  ;;  %v4586_v62 = vcombine.high %v1221_v43, %v1235_v50  ;;  %v4595_v52 = vld [vmem:[%s4977_s8 + $0x30] sm:$0x7] }
  0x2a   : > { %v1348_v63 = vcombine.low %v1326_v56, %v1333_v57  ;;  %v1368_v1 = vcombine.low %v1228_v49, %v5059_v47  ;;  %v1375_v2 = vrot.slane %v1365_v58, %v4980_v6  ;;  %v287_v3 = vunpack.c.l.bf16 %v282_v54  ;;  %v4596_v54 = vld [vmem:[%s4977_s8 + $0x34] sm:$0x7] }
  0x2b   : > { %v1349_v5 = vcombine.low %v1340_v59, %v1347_v60  ;;  %v1382_v7 = vrot.slane %v1366_v61, %v4980_v6  ;;  %v1389_v8 = vrot.slane %v4586_v62, %v4980_v6  ;;  %v424_v9 = vrot.slane %v410_v25, %v4980_v6 }
  0x2c   : > { %v1356_v10 = vrot.slane %v1348_v63, %v4980_v6  ;;  %v1396_v11 = vrot.slane %v1368_v1, %v4980_v6  ;;  %v446_v12 = vrot.slane %v425_v44, %v4980_v6  ;;  %v449_v13 = vcombine.high %v287_v3, %v287_v3 }
  0x2d   : > { %v1363_v14 = vrot.slane %v1349_v5, %v4980_v6  ;;  %v1397_v15 = vcombine.low %v1375_v2, %v1382_v7  ;;  %v439_v19 = vrot.slane %v424_v9, %v4980_v6  ;;  %v456_v20 = vrot.slane %v287_v3, %v4980_v6 }
  0x2e   : > { %v1398_v16 = vcombine.low %v1389_v8, %v1396_v11  ;;  %v448_v25 = vcombine.high %v446_v12, %v446_v12  ;;  %v463_v21 = vrot.slane %v449_v13, %v4980_v6  ;;  %v586_v22 = vcombine.low %v446_v12, %v447_v53 }
  0x2f   : > { %v1364_v26 = vcombine.low %v1356_v10, %v1363_v14  ;;  %v1405_v44 = vrot.slane %v1397_v15, %v4980_v6  ;;  %v464_v17 = vcombine.high %v456_v20, %v456_v20  ;;  %v471_v24 = vrot.slane %v456_v20, %v4980_v6 }
  0x30   : > { %v1412_v28 = vrot.slane %v1398_v16, %v4980_v6  ;;  %v478_v29 = vrot.slane %v463_v21, %v4980_v6  ;;  %v587_v30 = vcombine.low %v448_v25, %v439_v19  ;;  %v596_v18 = vrot.slane %v586_v22, %v4980_v6 }
  0x31   : > { %v485_v31 = vrot.slane %v464_v17, %v4980_v6  ;;  %v1115_v45 = vunpack.c.l.bf16 %v4584_v23  ;;  %v1252_v53 = vrot.slane %v1238_v36, %v4980_v6  ;;  %v1274_v32 = vrot.slane %v1253_v46, %v4980_v6 }
  0x32   : > { %v1413_v33 = vcombine.low %v1405_v44, %v1412_v28  ;;  %v603_v34 = vrot.slane %v587_v30, %v4980_v6  ;;  %v641_v35 = vrot.slane %v478_v29, %v4980_v6  ;;  %v1921_v37 = vunpack.c.l.bf16 %v4593_v27 }
  0x33   : > { %v588_v38 = vcombine.low %v471_v24, %v485_v31  ;;  %v4572_v39 = vcombine.high %v471_v24, %v485_v31  ;;  %v1267_v40 = vrot.slane %v1252_v53, %v4980_v6  ;;  %v1276_v41 = vcombine.high %v1274_v32, %v1274_v32 }
  0x34   : > { %v1481_v43 = vpack.c.bf16 %v1413_v33, %v1364_v26  ;;  %v618_v47 = vcombine.low %v596_v18, %v603_v34  ;;  %v648_v36 = vrot.slane %v641_v35, %v4980_v6  ;;  %v1277_v48 = vcombine.high %v1115_v45, %v1115_v45 }
  0x35   : > { %v610_v46 = vrot.slane %v588_v38, %v4980_v6  ;;  %v617_v49 = vrot.slane %v4572_v39, %v4980_v6  ;;  %v1284_v50 = vrot.slane %v1115_v45, %v4980_v6  ;;  %v1414_v51 = vcombine.low %v1274_v32, %v1275_v55 }
  0x36   : > { %4745 = vmatprep.mubr.msk.bf16.mxu1 %vm670_vm0, %v1481_v43  ;;  %v626_v56 = vrot.slane %v618_v47, %v4980_v6  ;;  %v1291_v57 = vrot.slane %v1277_v48, %v4980_v6  ;;  %v1415_v58 = vcombine.low %v1276_v41, %v1267_v40  ;;  %v1922_v59 = vunpack.c.l.bf16 %v4594_v42 }
  0x37   : > { %v619_v60 = vcombine.low %v610_v46, %v617_v49  ;;  %v1292_v61 = vcombine.high %v1284_v50, %v1284_v50  ;;  %v1299_v62 = vrot.slane %v1284_v50, %v4980_v6  ;;  %v1424_v63 = vrot.slane %v1414_v51, %v4980_v6 }
  0x38   : > { %v1306_v1 = vrot.slane %v1291_v57, %v4980_v6  ;;  %v1431_v55 = vrot.slane %v1415_v58, %v4980_v6  ;;  %v1923_v2 = vunpack.c.l.bf16 %v4595_v52  ;;  %v5119_v3 = vunpack.c.l.bf16 %v4596_v54  ;;  %v4597_v54 = vld [vmem:[%s4977_s8 + $0x38] sm:$0x7] }
  0x39   : > { %v633_v5 = vrot.slane %v619_v60, %v4980_v6  ;;  %v1313_v7 = vrot.slane %v1292_v61, %v4980_v6  ;;  %v1931_v8 = vcombine.high %v1921_v37, %v1921_v37  ;;  %v1938_v9 = vrot.slane %v1921_v37, %v4980_v6 }
  0x3a   : > { %v1446_v10 = vcombine.low %v1424_v63, %v1431_v55  ;;  %v1469_v11 = vrot.slane %v1306_v1, %v4980_v6  ;;  %v1970_v12 = vcombine.high %v1922_v59, %v1922_v59  ;;  %v1977_v13 = vrot.slane %v1922_v59, %v4980_v6 }
  0x3b   : > { %v634_v14 = vcombine.low %v626_v56, %v633_v5  ;;  %v1416_v15 = vcombine.low %v1299_v62, %v1313_v7  ;;  %v4587_v19 = vcombine.high %v1299_v62, %v1313_v7  ;;  %v1945_v20 = vrot.slane %v1931_v8, %v4980_v6 }
  0x3c   : > { %v1454_v16 = vrot.slane %v1446_v10, %v4980_v6  ;;  %v1476_v25 = vrot.slane %v1469_v11, %v4980_v6  ;;  %v1946_v21 = vcombine.high %v1938_v9, %v1938_v9  ;;  %v1953_v22 = vrot.slane %v1938_v9, %v4980_v6 }
  0x3d   : > { %v654_v23 = vpack.c.bf16 %v648_v36, %v634_v14  ;;  %v1438_v26 = vrot.slane %v1416_v15, %v4980_v6  ;;  %v1445_v44 = vrot.slane %v4587_v19, %v4980_v6  ;;  %v1960_v17 = vrot.slane %v1945_v20, %v4980_v6 }
  0x3e   : > { %v1967_v24 = vrot.slane %v1946_v21, %v4980_v6  ;;  %v1984_v27 = vrot.slane %v1970_v12, %v4980_v6  ;;  %v1985_v28 = vcombine.high %v1977_v13, %v1977_v13  ;;  %v1992_v29 = vrot.slane %v1977_v13, %v4980_v6 }
  0x3f   : > { %4740 = vmatmul.mubr.msk.bf16.vlgmr.msra.gmra.mxu0 %vm670_vm0, %v654_v23  ;;  %v1447_v30 = vcombine.low %v1438_v26, %v1445_v44  ;;  %v2009_v18 = vcombine.high %v1923_v2, %v1923_v2  ;;  %v2016_v31 = vrot.slane %v1923_v2, %v4980_v6  ;;  %v2048_v45 = vcombine.high %v5119_v3, %v5119_v3  ;;  %v4606_v23 = vld [vmem:[%s4977_s8 + $0x40] sm:$0x7]  ;;  %v4607_v26 = vld [vmem:[%s4977_s8 + $0x44] sm:$0x7] }
  0x40   : > { %4750 = vmatpush3.bf16.msra.mxu0 %v4961_v0  ;;  %v1999_v53 = vrot.slane %v1984_v27, %v4980_v6  ;;  %v2006_v32 = vrot.slane %v1985_v28, %v4980_v6  ;;  %v2007_v33 = vcombine.high %v1992_v29, %v1992_v29  ;;  %v2055_v34 = vrot.slane %v5119_v3, %v4980_v6  ;;  %v4608_v28 = vld [vmem:[%s4977_s8 + $0x48] sm:$0x7] }
  0x41   : > { %v1461_v35 = vrot.slane %v1447_v30, %v4980_v6  ;;  %v2023_v37 = vrot.slane %v2009_v18, %v4980_v6  ;;  %v2024_v38 = vcombine.high %v2016_v31, %v2016_v31  ;;  %v2031_v39 = vrot.slane %v2016_v31, %v4980_v6 }
  0x42   : > { %v2008_v40 = vcombine.high %v2006_v32, %v2006_v32  ;;  %v2063_v41 = vcombine.high %v2055_v34, %v2055_v34  ;;  %v2070_v42 = vrot.slane %v2055_v34, %v4980_v6  ;;  %v2126_v43 = vcombine.low %v1953_v22, %v1967_v24 }
  0x43   : > { %v1462_v47 = vcombine.low %v1454_v16, %v1461_v35  ;;  %v2038_v36 = vrot.slane %v2023_v37, %v4980_v6  ;;  %v2045_v48 = vrot.slane %v2024_v38, %v4980_v6  ;;  %v4598_v46 = vcombine.high %v1953_v22, %v1967_v24  ;;  %v4605_v16 = vld [vmem:[%s4977_s8 + $0x3c] sm:$0x7] }
  0x44   : > { %v2085_v49 = vcombine.high %v2070_v42, %v2070_v42  ;;  %v2128_v50 = vcombine.low %v1960_v17, %v1992_v29  ;;  %v2129_v51 = vcombine.low %v2006_v32, %v2007_v33  ;;  %v2136_v52 = vrot.slane %v2126_v43, %v4980_v6 }
  0x45   : > { %v1482_v56 = vpack.c.bf16 %v1476_v25, %v1462_v47  ;;  %v2143_v57 = vrot.slane %v4598_v46, %v4980_v6  ;;  %v2175_v58 = vcombine.low %v2008_v40, %v1999_v53  ;;  %v2176_v59 = vcombine.low %v2031_v39, %v2045_v48 }
  0x46   : > { %v2150_v60 = vrot.slane %v2128_v50, %v4980_v6  ;;  %v2157_v61 = vrot.slane %v2129_v51, %v4980_v6  ;;  %v4599_v62 = vcombine.high %v2031_v39, %v2045_v48  ;;  %v2178_v63 = vcombine.low %v2038_v36, %v2070_v42 }
  0x47   : > { %4746 = vmatmul.mubr.msk.bf16.vlgmr.msra.gmra.mxu1 %vm670_vm0, %v1482_v56  ;;  %v2158_v1 = vcombine.low %v2136_v52, %v2143_v57  ;;  %v2185_v55 = vrot.slane %v2175_v58, %v4980_v6  ;;  %v2192_v2 = vrot.slane %v2176_v59, %v4980_v6  ;;  %v1925_v3 = vunpack.c.l.bf16 %v4597_v54 }
  0x48   : > { %v2159_v5 = vcombine.low %v2150_v60, %v2157_v61  ;;  %v2199_v7 = vrot.slane %v4599_v62, %v4980_v6  ;;  %v2206_v8 = vrot.slane %v2178_v63, %v4980_v6  ;;  %v2062_v9 = vrot.slane %v2048_v45, %v4980_v6  ;;  %4756 = vmatpush3.bf16.msra.mxu1 %v4961_v0 }
  0x49   : > { %v2166_v10 = vrot.slane %v2158_v1, %v4980_v6  ;;  %v2207_v11 = vcombine.low %v2185_v55, %v2192_v2  ;;  %v2084_v12 = vrot.slane %v2063_v41, %v4980_v6  ;;  %v2087_v13 = vcombine.high %v1925_v3, %v1925_v3 }
  0x4a   : > { %v2173_v14 = vrot.slane %v2159_v5, %v4980_v6  ;;  %v2208_v15 = vcombine.low %v2199_v7, %v2206_v8  ;;  %v2077_v19 = vrot.slane %v2062_v9, %v4980_v6  ;;  %v2094_v20 = vrot.slane %v1925_v3, %v4980_v6 }
  0x4b   : > { %v2215_v25 = vrot.slane %v2207_v11, %v4980_v6  ;;  %v2086_v21 = vcombine.high %v2084_v12, %v2084_v12  ;;  %v2101_v0 = vrot.slane %v2087_v13, %v4980_v6  ;;  %v2224_v22 = vcombine.low %v2084_v12, %v2085_v49 }
  0x4c   : > { %v2174_v44 = vcombine.low %v2166_v10, %v2173_v14  ;;  %v2222_v17 = vrot.slane %v2208_v15, %v4980_v6  ;;  %v2102_v24 = vcombine.high %v2094_v20, %v2094_v20  ;;  %v2109_v27 = vrot.slane %v2094_v20, %v4980_v6 }
  0x4d   : > { %v2116_v29 = vrot.slane %v2101_v0, %v4980_v6  ;;  %v2225_v30 = vcombine.low %v2086_v21, %v2077_v19  ;;  %v2234_v18 = vrot.slane %v2224_v22, %v4980_v6  ;;  %v2645_v31 = vunpack.c.l.bf16 %v4605_v16 }
  0x4e   : > { %v2223_v45 = vcombine.low %v2215_v25, %v2222_v17  ;;  %v2123_v53 = vrot.slane %v2102_v24, %v4980_v6  ;;  %v2646_v32 = vunpack.c.l.bf16 %v4606_v23  ;;  %v2647_v33 = vunpack.c.l.bf16 %v4607_v26  ;;  %v4609_v26 = vld [vmem:[%s4977_s8 + $0x4c] sm:$0x7] }
  0x4f   : > { %v2241_v34 = vrot.slane %v2225_v30, %v4980_v6  ;;  %v2279_v35 = vrot.slane %v2116_v29, %v4980_v6  ;;  %v2648_v37 = vunpack.c.l.bf16 %v4608_v28  ;;  %v2655_v38 = vcombine.high %v2645_v31, %v2645_v31 }
  0x50   : > { %v2291_v39 = vpack.c.bf16 %v2223_v45, %v2174_v44  ;;  %v2226_v40 = vcombine.low %v2109_v27, %v2123_v53  ;;  %v4600_v41 = vcombine.high %v2109_v27, %v2123_v53  ;;  %v2662_v42 = vrot.slane %v2645_v31, %v4980_v6 }
  0x51   : > { %v2256_v43 = vcombine.low %v2234_v18, %v2241_v34  ;;  %v2286_v47 = vrot.slane %v2279_v35, %v4980_v6  ;;  %v2669_v36 = vrot.slane %v2655_v38, %v4980_v6  ;;  %v2694_v48 = vcombine.high %v2646_v32, %v2646_v32 }
  0x52   : > { %4751 = vmatprep.mubr.msk.bf16.mxu0 %vm670_vm0, %v2291_v39  ;;  %v2248_v46 = vrot.slane %v2226_v40, %v4980_v6  ;;  %v2255_v49 = vrot.slane %v4600_v41, %v4980_v6  ;;  %v2670_v50 = vcombine.high %v2662_v42, %v2662_v42  ;;  %v2677_v51 = vrot.slane %v2662_v42, %v4980_v6 }
  0x53   : > { %v2264_v52 = vrot.slane %v2256_v43, %v4980_v6  ;;  %v2684_v54 = vrot.slane %v2669_v36, %v4980_v6  ;;  %v2701_v56 = vrot.slane %v2646_v32, %v4980_v6  ;;  %v2708_v57 = vrot.slane %v2694_v48, %v4980_v6 }
  0x54   : > { %v2257_v58 = vcombine.low %v2248_v46, %v2255_v49  ;;  %v2691_v59 = vrot.slane %v2670_v50, %v4980_v6  ;;  %v2733_v60 = vcombine.high %v2647_v33, %v2647_v33  ;;  %v2740_v61 = vrot.slane %v2647_v33, %v4980_v6 }
  0x55   : > { %v2709_v62 = vcombine.high %v2701_v56, %v2701_v56  ;;  %v2716_v63 = vrot.slane %v2701_v56, %v4980_v6  ;;  %v2723_v1 = vrot.slane %v2708_v57, %v4980_v6  ;;  %v2772_v55 = vcombine.high %v2648_v37, %v2648_v37 }
  0x56   : > { %v2271_v2 = vrot.slane %v2257_v58, %v4980_v6  ;;  %v2747_v3 = vrot.slane %v2733_v60, %v4980_v6  ;;  %v2748_v5 = vcombine.high %v2740_v61, %v2740_v61  ;;  %v2755_v7 = vrot.slane %v2740_v61, %v4980_v6 }
  0x57   : > { %v2730_v8 = vrot.slane %v2709_v62, %v4980_v6  ;;  %v2731_v9 = vcombine.high %v2716_v63, %v2716_v63  ;;  %v2779_v10 = vrot.slane %v2648_v37, %v4980_v6  ;;  %v2850_v11 = vcombine.low %v2677_v51, %v2691_v59 }
  0x58   : > { %v2272_v12 = vcombine.low %v2264_v52, %v2271_v2  ;;  %v2762_v13 = vrot.slane %v2747_v3, %v4980_v6  ;;  %v2769_v14 = vrot.slane %v2748_v5, %v4980_v6  ;;  %v4610_v15 = vcombine.high %v2677_v51, %v2691_v59 }
  0x59   : > { %v2732_v19 = vcombine.high %v2730_v8, %v2730_v8  ;;  %v2787_v20 = vcombine.high %v2779_v10, %v2779_v10  ;;  %v2794_v16 = vrot.slane %v2779_v10, %v4980_v6  ;;  %v2852_v25 = vcombine.low %v2684_v54, %v2716_v63 }
  0x5a   : > { %v2292_v21 = vpack.c.bf16 %v2286_v47, %v2272_v12  ;;  %v2853_v0 = vcombine.low %v2730_v8, %v2731_v9  ;;  %v2860_v22 = vrot.slane %v2850_v11, %v4980_v6  ;;  %v2867_v23 = vrot.slane %v4610_v15, %v4980_v6  ;;  %v5244_v15 = vld [vmem:[%s5874_s2] ss:$0 sm:$0xff] }
  0x5b   : > { %v2809_v44 = vcombine.high %v2794_v16, %v2794_v16  ;;  %v2874_v17 = vrot.slane %v2852_v25, %v4980_v6  ;;  %v2899_v24 = vcombine.low %v2732_v19, %v2723_v1  ;;  %v2900_v27 = vcombine.low %v2755_v7, %v2769_v14 }
  0x5c   : > { %4752 = vmatmul.mubr.msk.bf16.vlgmr.msra.gmra.mxu0 %vm670_vm0, %v2292_v21  ;;  %v2881_v28 = vrot.slane %v2853_v0, %v4980_v6  ;;  %v2882_v29 = vcombine.low %v2860_v22, %v2867_v23  ;;  %v4611_v30 = vcombine.high %v2755_v7, %v2769_v14  ;;  %v2902_v18 = vcombine.low %v2762_v13, %v2794_v16 }
  0x5d   : > { %v2909_v31 = vrot.slane %v2899_v24, %v4980_v6  ;;  %v2916_v45 = vrot.slane %v2900_v27, %v4980_v6  ;;  %v2649_v53 = vunpack.c.l.bf16 %v4609_v26  ;;  %v2786_v32 = vrot.slane %v2772_v55, %v4980_v6 }
  0x5e   : > { %v2883_v33 = vcombine.low %v2874_v17, %v2881_v28  ;;  %v2890_v34 = vrot.slane %v2882_v29, %v4980_v6  ;;  %v2923_v35 = vrot.slane %v4611_v30, %v4980_v6  ;;  %v2930_v37 = vrot.slane %v2902_v18, %v4980_v6 }
  0x5f   : > { %v2931_v38 = vcombine.low %v2909_v31, %v2916_v45  ;;  %v2801_v39 = vrot.slane %v2786_v32, %v4980_v6  ;;  %v2808_v40 = vrot.slane %v2787_v20, %v4980_v6  ;;  %v2811_v41 = vcombine.high %v2649_v53, %v2649_v53 }
  0x60   : > { %v2897_v42 = vrot.slane %v2883_v33, %v4980_v6  ;;  %v2932_v43 = vcombine.low %v2923_v35, %v2930_v37  ;;  %v2818_v47 = vrot.slane %v2649_v53, %v4980_v6  ;;  %v4898_v13 = vmov 0.0  }
  0x61   : > { %v2939_v36 = vrot.slane %v2931_v38, %v4980_v6  ;;  %v2810_v48 = vcombine.high %v2808_v40, %v2808_v40  ;;  %v2825_v46 = vrot.slane %v2811_v41, %v4980_v6  ;;  %v2948_v49 = vcombine.low %v2808_v40, %v2809_v44  ;;  %3367 = vrot.lane.b32.xlu0 %v4898_v13, %s4899_s9 }
  0x62   : > { %v2898_v50 = vcombine.low %v2890_v34, %v2897_v42  ;;  %v2946_v51 = vrot.slane %v2932_v43, %v4980_v6  ;;  %v2826_v52 = vcombine.high %v2818_v47, %v2818_v47  ;;  %v2833_v54 = vrot.slane %v2818_v47, %v4980_v6  ;;  %4761 = vmatprep.subr.bf16.mxu0 %v4898_v13 }
  0x63   : > { %v2949_v56 = vcombine.low %v2810_v48, %v2801_v39  ;;  %v2958_v57 = vrot.slane %v2948_v49, %v4980_v6  ;;  %v2840_v59 = vrot.slane %v2825_v46, %v4980_v6  ;;  %v3383_v14 = vrot.slane %v4898_v13, 1  ;;  %4771 = vmatprep.mubr.msk.bf16.mxu0 %vm4907_vm4, %v4898_v13 }
  0x64   : > { %v2947_v58 = vcombine.low %v2939_v36, %v2946_v51  ;;  %v2847_v60 = vrot.slane %v2826_v52, %v4980_v6  ;;  %vm1707_vm2 = vcmp.eq.s32.totalorder %v4967_v4, 4  ;;  %vm3776_vm13 = vcmask 256000  }
  0x65   : > { %v2965_v61 = vrot.slane %v2949_v56, %v4980_v6  ;;  %v3003_v5 = vrot.slane %v2840_v59, %v4980_v6  ;;  %3387 = vrot.lane.b32.xlu0 %v3383_v14, %s4900_s10  ;;  %vm3832_vm14 = vcmask 124928   ;;  %vm3833_vm15 = vsmask.f32 2306 }
  0x66   : > { %v3015_v62 = vpack.c.bf16 %v2947_v58, %v2898_v50  ;;  %v2950_v63 = vcombine.low %v2833_v54, %v2847_v60  ;;  %v4612_v1 = vcombine.high %v2833_v54, %v2847_v60 }
  0x67   : > { %v2980_v55 = vcombine.low %v2958_v57, %v2965_v61  ;;  %v3010_v10 = vrot.slane %v3003_v5, %v4980_v6 }
  0x68   : > { %4757 = vmatprep.mubr.msk.bf16.mxu1 %vm670_vm0, %v3015_v62  ;;  %v2972_v2 = vrot.slane %v2950_v63, %v4980_v6  ;;  %v2979_v3 = vrot.slane %v4612_v1, %v4980_v6 }
  0x69   : > { %v2988_v8 = vrot.slane %v2980_v55, %v4980_v6 }
  0x6a   : > { %v2981_v7 = vcombine.low %v2972_v2, %v2979_v3 }
  0x6c   : > { %v2995_v9 = vrot.slane %v2981_v7, %v4980_v6 }
  0x6e   : > { %v2996_v11 = vcombine.low %v2988_v8, %v2995_v9 }
  0x70   : > { %v3016_v12 = vpack.c.bf16 %v3010_v10, %v2996_v11 }
  0x72   : > { %4758 = vmatmul.mubr.msk.bf16.vlgmr.msra.gmra.mxu1 %vm670_vm0, %v3016_v12 }
  0xff   : > { %v4741_v19 = vpop.f32.mrf.mxu0 }
 0x100   : > { %v720_v20 = vadd.f32 %v4741_v19, %v5244_v15 }
 0x101   : > { %v711_v16 = vpop.f32.mrf.mxu0 }
 0x102   : > { %v728_v25 = vmax.f32 %v720_v20, 0.0  ;;  %v712_v21 = vadd.f32 %v5244_v15, %v711_v16 }
 0x103   : > { %v4742_v0 = vpop.f32.mrf.mxu0 }
 0x104   : > { %v832_v22 = vcombine.high %v728_v25, %v728_v25  ;;  %v726_v23 = vmax.f32 %v712_v21, 0.0  ;;  %v839_v26 = vrot.slane %v728_v25, %v4980_v6  ;;  %v723_v31 = vadd.f32 %v4742_v0, %v5244_v15 }
 0x105   : > { %v714_v44 = vpop.f32.mrf.mxu0 }
 0x106   : > { %v734_v17 = vcombine.high %v726_v23, %v726_v23  ;;  %v846_v24 = vrot.slane %v832_v22, %v4980_v6  ;;  %v715_v28 = vadd.f32 %v5244_v15, %v714_v44  ;;  %v847_v29 = vcombine.high %v839_v26, %v839_v26 }
 0x107   : > { %v4747_v27 = vpop.f32.mrf.mxu1  ;;  %v5256_v35 = vrot.slane %v839_v26, %v4980_v6  ;;  %v729_v43 = vmax.f32 %v723_v31, 0.0 }
 0x108   : > { %v1532_v30 = vadd.f32 %v4747_v27, %v5244_v15  ;;  %v748_v45 = vrot.slane %v734_v17, %v4980_v6  ;;  %v848_v32 = vcombine.high %v846_v24, %v846_v24  ;;  %v727_v39 = vmax.f32 %v715_v28, 0.0 }
 0x109   : > { %v1523_v18 = vpop.f32.mrf.mxu1  ;;  %v5260_v40 = vrot.slane %v847_v29, %v4980_v6  ;;  %v862_v49 = vrot.slane %v846_v24, %v4980_v6  ;;  %v877_v54 = vcombine.high %v5256_v35, %v5256_v35  ;;  %v887_v61 = vrot.slane %v729_v43, %v4980_v6 }
 0x10a   : > { %v1524_v53 = vadd.f32 %v5244_v15, %v1523_v18  ;;  %v1540_v33 = vmax.f32 %v1532_v30, 0.0  ;;  %v750_v47 = vcombine.high %v748_v45, %v748_v45  ;;  %v764_v36 = vrot.slane %v748_v45, %v4980_v6 }
 0x10b   : > { %v4748_v34 = vpop.f32.mrf.mxu1  ;;  %v876_v50 = vrot.slane %v848_v32, %v4980_v6  ;;  %v783_v58 = vcombine.high %v727_v39, %v727_v39  ;;  %v879_v59 = vcombine.high %v5260_v40, %v5260_v40  ;;  %v790_v8 = vrot.slane %v727_v39, %v4980_v6 }
 0x10c   : > { %v1538_v37 = vmax.f32 %v1524_v53, 0.0  ;;  %v1535_v38 = vadd.f32 %v4748_v34, %v5244_v15  ;;  %v1644_v41 = vcombine.high %v1540_v33, %v1540_v33  ;;  %v1651_v42 = vrot.slane %v1540_v33, %v4980_v6 }
 0x10d   : > { %v778_v1 = vrot.slane %v750_v47, %v4980_v6  ;;  %v780_v55 = vcombine.high %v764_v36, %v764_v36  ;;  %v1056_v3 = vcombine.low %v862_v49, %v876_v50  ;;  %v1526_v9 = vpop.f32.mrf.mxu1  ;;  %v5285_v10 = vcombine.low %v5260_v40, %v877_v54 }
 0x10e   : > { %v1546_v48 = vcombine.high %v1538_v37, %v1538_v37  ;;  %v1541_v46 = vmax.f32 %v1535_v38, 0.0  ;;  %v1658_v51 = vrot.slane %v1644_v41, %v4980_v6  ;;  %v1659_v52 = vcombine.high %v1651_v42, %v1651_v42 }
 0x10f   : > { %v5270_v56 = vrot.slane %v1651_v42, %v4980_v6  ;;  %v797_v14 = vrot.slane %v783_v58, %v4980_v6  ;;  %v4579_v19 = vcombine.high %v862_v49, %v876_v50  ;;  %v894_v16 = vrot.slane %v887_v61, %v4980_v6 }
 0x110   : > { %v1560_v57 = vrot.slane %v1546_v48, %v4980_v6  ;;  %v1660_v60 = vcombine.high %v1658_v51, %v1658_v51  ;;  %v1699_v62 = vrot.slane %v1541_v46, %v4980_v6  ;;  %v1674_v63 = vrot.slane %v1658_v51, %v4980_v6 }
 0x111   : > { %v5280_v5 = vrot.slane %v1659_v52, %v4980_v6  ;;  %v1689_v11 = vcombine.high %v5270_v56, %v5270_v56  ;;  %v5294_v22 = vcombine.low %v778_v1, %v780_v55  ;;  %v1527_v23 = vadd.f32 %v5244_v15, %v1526_v9 }
 0x112   : > { %v1562_v2 = vcombine.high %v1560_v57, %v1560_v57  ;;  %v1688_v7 = vrot.slane %v1660_v60, %v4980_v6  ;;  %v1576_v12 = vrot.slane %v1560_v57, %v4980_v6  ;;  %v1706_v25 = vrot.slane %v1699_v62, %v4980_v6 }
 0x113   : > { %v1691_v26 = vcombine.high %v5280_v5, %v5280_v5  ;;  %v782_v44 = vcombine.high %v778_v1, %v778_v1  ;;  %v798_v17 = vcombine.high %v790_v8, %v790_v8  ;;  %v1064_v24 = vrot.slane %v1056_v3, %v4980_v6 }
 0x114   : > { %v1590_v20 = vrot.slane %v1562_v2, %v4980_v6  ;;  %v1866_v21 = vcombine.low %v1674_v63, %v1688_v7  ;;  %v4592_v0 = vcombine.high %v1674_v63, %v1688_v7  ;;  %v5302_v27 = vcombine.low %v5280_v5, %v1689_v11 }
 0x115   : > { %v1592_v28 = vcombine.high %v1576_v12, %v1576_v12  ;;  %v799_v29 = vcombine.high %v797_v14, %v797_v14  ;;  %v1539_v30 = vmax.f32 %v1527_v23, 0.0  ;;  %v1888_v18 = vrot.slane %v1706_v25, %v4980_v6 }
 0x116   : > { %v1594_v31 = vcombine.high %v1590_v20, %v1590_v20  ;;  %v1071_v45 = vrot.slane %v4579_v19, %v4980_v6  ;;  %v1078_v53 = vrot.slane %v894_v16, %v4980_v6  ;;  %v1874_v34 = vrot.slane %v1866_v21, %v4980_v6 }
 0x117   : > { %v1595_v32 = vcombine.high %v1539_v30, %v1539_v30  ;;  %v1602_v33 = vrot.slane %v1539_v30, %v4980_v6  ;;  %v1881_v37 = vrot.slane %v4592_v0, %v4980_v6  ;;  %v5311_v38 = vrot.slane %v790_v8, %v4980_v6 }
 0x118   : > { %v5314_v39 = vrot.slane %v797_v14, %v4980_v6  ;;  %v5317_v41 = vrot.slane %v798_v17, %v4980_v6  ;;  %v1079_v42 = vcombine.low %v1064_v24, %v1071_v45  ;;  %v1749_v49 = vcombine.low %v1590_v20, %v1592_v28 }
 0x119   : > { %v1609_v43 = vrot.slane %v1595_v32, %v4980_v6  ;;  %v1610_v47 = vcombine.high %v1602_v33, %v1602_v33  ;;  %v5322_v36 = vrot.slane %v1602_v33, %v4980_v6  ;;  %v1889_v46 = vcombine.low %v1874_v34, %v1881_v37 }
 0x11a   : > { %v1086_v51 = vrot.slane %v1079_v42, %v4980_v6  ;;  %v1093_v52 = vrot.slane %v1078_v53, %v4980_v6  ;;  %v5328_v54 = vrot.slane %v799_v29, %v4980_v6  ;;  %v940_v62 = vcombine.low %v782_v44, %v5311_v38 }
 0x11b   : > { %v1611_v57 = vcombine.high %v1609_v43, %v1609_v43  ;;  %v1632_v58 = vrot.slane %v1610_v47, %v4980_v6  ;;  %v1750_v60 = vcombine.low %v1594_v31, %v5322_v36  ;;  %v1625_v2 = vrot.slane %v1609_v43, %v4980_v6 }
 0x11c   : > { %v4753_v48 = vpop.f32.mrf.mxu0  ;;  %v1094_v55 = vcombine.low %v1086_v51, %v1093_v52  ;;  %v1896_v9 = vrot.slane %v1889_v46, %v4980_v6  ;;  %v829_v20 = vcombine.high %v5314_v39, %v5314_v39  ;;  %v4578_v16 = vcombine.high %v5311_v38, %v5317_v41 }
 0x11d   : > { %v2342_v50 = vadd.f32 %v4753_v48, %v5244_v15  ;;  %v5336_v3 = vrot.slane %v1611_v57, %v4980_v6  ;;  %v1764_v7 = vrot.slane %v1750_v60, %v4980_v6  ;;  %v1771_v19 = vrot.slane %v1632_v58, %v4980_v6 }
 0x11e   : > { %v2333_v61 = vpop.f32.mrf.mxu0  ;;  %v5343_v14 = vsel %vm897_vm1, 0.0, %v1094_v55  ;;  %v1757_v21 = vrot.slane %v1749_v49, %v4980_v6  ;;  %v1903_v0 = vrot.slane %v1888_v18, %v4980_v6  ;;  %v954_v23 = vrot.slane %v940_v62, %v4980_v6 }
 0x11f   : > { %v2349_v63 = vmax.f32 %v2342_v50, 0.0  ;;  %v2334_v1 = vadd.f32 %v5244_v15, %v2333_v61  ;;  %3454 = vrot.lane.b32.xlu1 %v5343_v14, %s4901_s13  ;;  %v1789_v44 = vcombine.low %v1625_v2, %v5336_v3  ;;  %v1786_v18 = vrot.slane %v1771_v19, %v4980_v6 }
 0x120   : > { %v4754_v8 = vpop.f32.mrf.mxu0  ;;  %v1772_v30 = vcombine.low %v1757_v21, %v1764_v7  ;;  %v1904_v31 = vcombine.low %v1896_v9, %v1903_v0  ;;  %v979_v42 = vcombine.low %v5314_v39, %v5328_v54  ;;  %v1641_v43 = vcombine.high %v1625_v2, %v1625_v2 }
 0x121   : > { %v2457_v11 = vrot.slane %v2349_v63, %v4980_v6  ;;  %v2347_v12 = vmax.f32 %v2334_v1, 0.0  ;;  %v4591_v47 = vcombine.high %v5322_v36, %v1632_v58  ;;  %v947_v48 = vrot.slane %v5294_v22, %v4980_v6 }
 0x122   : > { %v2336_v25 = vpop.f32.mrf.mxu0  ;;  %v1779_v37 = vrot.slane %v1772_v30, %v4980_v6  ;;  %v1914_v38 = vsel %vm1707_vm2, 0.0, %v1904_v31  ;;  %v1803_v36 = vrot.slane %v1789_v44, %v4980_v6  ;;  %v961_v22 = vrot.slane %v5317_v41, %v4980_v6 }
 0x123   : > { %v2353_v17 = vcombine.high %v2347_v12, %v2347_v12  ;;  %v2360_v24 = vrot.slane %v2347_v12, %v4980_v6  ;;  %v2458_v28 = vcombine.high %v2457_v11, %v2457_v11  ;;  %v2337_v29 = vadd.f32 %v5244_v15, %v2336_v25  ;;  %3467 = vrot.lane.b32.xlu1 %v1914_v38, %s4902_s14 }
 0x124   : > { %v5359_v45 = vrot.slane %v2457_v11, %v4980_v6  ;;  %v1787_v51 = vcombine.low %v1779_v37, %v1786_v18  ;;  %v962_v62 = vcombine.low %v947_v48, %v954_v23  ;;  %v1796_v63 = vrot.slane %v4591_v47, %v4980_v6 }
 0x125   : > { %v2367_v53 = vrot.slane %v2353_v17, %v4980_v6  ;;  %v2368_v32 = vcombine.high %v2360_v24, %v2360_v24  ;;  %v2376_v33 = vrot.slane %v2360_v24, %v4980_v6  ;;  %v2348_v34 = vmax.f32 %v2337_v29, 0.0 }
 0x126   : > { %v5374_v46 = vrot.slane %v2458_v28, %v4980_v6  ;;  %v2473_v52 = vcombine.high %v5359_v45, %v5359_v45  ;;  %v1911_v55 = vsel %vm1707_vm2, 0.0, %v1787_v51  ;;  %v1810_v2 = vrot.slane %v1641_v43, %v4980_v6 }
 0x127   : > { %v2369_v49 = vcombine.high %v2367_v53, %v2367_v53  ;;  %v2390_v50 = vrot.slane %v2368_v32, %v4980_v6  ;;  %v2383_v57 = vrot.slane %v2367_v53, %v4980_v6  ;;  %v2402_v60 = vcombine.high %v2348_v34, %v2348_v34  ;;  %3369 = vrot.lane.b32.xlu0 %v1911_v55, %s4899_s9 }
 0x128   : > { %v2409_v1 = vrot.slane %v2348_v34, %v4980_v6  ;;  %v831_v7 = vcombine.high %v5328_v54, %v5328_v54  ;;  %v986_v8 = vrot.slane %v4578_v16, %v4980_v6  ;;  %v1643_v9 = vcombine.high %v5336_v3, %v5336_v3 }
 0x129   : > { %v2475_v58 = vcombine.low %v2376_v33, %v2390_v50  ;;  %v4603_v61 = vcombine.high %v2376_v33, %v2390_v50  ;;  %v2397_v41 = vrot.slane %v2369_v49, %v4980_v6  ;;  %v5396_v11 = vcombine.low %v5374_v46, %v2473_v52 }
 0x12a   : > { %v2399_v12 = vcombine.high %v2383_v57, %v2383_v57  ;;  %v2416_v19 = vrot.slane %v2402_v60, %v4980_v6  ;;  %v1811_v25 = vcombine.low %v1796_v63, %v1803_v36  ;;  %v969_v16 = vrot.slane %v962_v62, %v4980_v6 }
 0x12b   : > { %v2483_v21 = vrot.slane %v2475_v58, %v4980_v6  ;;  %v2490_v54 = vrot.slane %v4603_v61, %v4980_v6  ;;  %v976_v0 = vrot.slane %v961_v22, %v4980_v6  ;;  %v2417_v3 = vcombine.high %v2409_v1, %v2409_v1 }
 0x12c   : > { %v1818_v23 = vrot.slane %v1811_v25, %v4980_v6  ;;  %v1825_v44 = vrot.slane %v1810_v2, %v4980_v6  ;;  %v993_v17 = vrot.slane %v979_v42, %v4980_v6  ;;  %v2401_v24 = vcombine.high %v2397_v41, %v2397_v41 }
 0x12d   : > { %v5407_v28 = vrot.slane %v2409_v1, %v4980_v6  ;;  %v977_v29 = vcombine.low %v969_v16, %v976_v0  ;;  %v1000_v30 = vrot.slane %v829_v20, %v4980_v6  ;;  %v2418_v31 = vcombine.high %v2416_v19, %v2416_v19 }
 0x12e   : > { %v1826_v53 = vcombine.low %v1818_v23, %v1825_v44  ;;  %v1001_v32 = vcombine.low %v986_v8, %v993_v17  ;;  %v2497_v18 = vrot.slane %v2383_v57, %v4980_v6  ;;  %v5415_v34 = vrot.slane %v2416_v19, %v4980_v6 }
 0x12f   : > { %v5419_v37 = vsel %vm897_vm1, 0.0, %v977_v29  ;;  %v2498_v38 = vcombine.low %v2483_v21, %v2490_v54  ;;  %v1827_v42 = vcombine.low %v1643_v9, %v5270_v56  ;;  %v1015_v47 = vrot.slane %v1000_v30, %v4980_v6 }
 0x130   : > { %v5425_v39 = vsel %vm1707_vm2, 0.0, %v1826_v53  ;;  %3448 = vrot.lane.b32.xlu0 %v5419_v37, %s4901_s13  ;;  %v1008_v20 = vrot.slane %v1001_v32, %v4980_v6  ;;  %v2512_v56 = vrot.slane %v2497_v18, %v4980_v6  ;;  %v1842_v51 = vrot.slane %v5302_v27, %v4980_v6 }
 0x131   : > { %3371 = vrot.lane.b32.xlu1 %v5425_v39, %s4899_s9  ;;  %v2505_v49 = vrot.slane %v2498_v38, %v4980_v6  ;;  %v1835_v50 = vrot.slane %v1827_v42, %v4980_v6  ;;  %v5439_v57 = vcombine.low %v2401_v24, %v5407_v28  ;;  %v5443_v58 = vrot.slane %v2417_v3, %v4980_v6 }
 0x132   : > { %v4759_v33 = vpop.f32.mrf.mxu1  ;;  %v1016_v36 = vcombine.low %v1008_v20, %v1015_v47  ;;  %v3384_v22 = vrot.slane %v5419_v37, 1  ;;  %v1017_v63 = vcombine.low %v831_v7, %v5256_v35  ;;  %v5447_v1 = vcombine.low %v2397_v41, %v2399_v12 }
 0x133   : > { %v3066_v43 = vadd.f32 %v4759_v33, %v5244_v15  ;;  %v1850_v62 = vcombine.low %v1835_v50, %v1842_v51  ;;  %v5450_v27 = vrot.slane %v2418_v31, %v4980_v6  ;;  %v1849_v8 = vrot.slane %v1691_v26, %v4980_v6 }
 0x134   : > { %v3057_v48 = vpop.f32.mrf.mxu1  ;;  %3461 = vrot.lane.b32.xlu0 %v1911_v55, %s4902_s14  ;;  %v2448_v9 = vcombine.high %v5415_v34, %v5415_v34  ;;  %v5462_v35 = vsel %vm897_vm1, 0.0, %v1016_v36  ;;  %v2513_v7 = vcombine.low %v2505_v49, %v2512_v56  ;;  %v1025_v41 = vrot.slane %v1017_v63, %v4980_v6 }
 0x135   : > { %v3073_v52 = vmax.f32 %v3066_v43, 0.0  ;;  %v3058_v60 = vadd.f32 %v5244_v15, %v3057_v48  ;;  %3389 = vrot.lane.b32.xlu1 %v3384_v22, %s4900_s10  ;;  %v2529_v12 = vrot.slane %v5439_v57, %v4980_v6  ;;  %v4604_v25 = vcombine.high %v5407_v28, %v5443_v58 }
 0x136   : > { %v4760_v61 = vpop.f32.mrf.mxu1  ;;  %v1857_v54 = vrot.slane %v1850_v62, %v4980_v6  ;;  %v1032_v16 = vrot.slane %v5285_v10, %v4980_v6  ;;  %v3385_v23 = vrot.slane %v5462_v35, 1  ;;  %v1864_v44 = vrot.slane %v1849_v8, %v4980_v6 }
 0x137   : > { %v3071_v2 = vmax.f32 %v3058_v60, 0.0  ;;  %v3181_v55 = vrot.slane %v3073_v52, %v4980_v6  ;;  %v1039_v53 = vrot.slane %v879_v59, %v4980_v6  ;;  %v2522_v63 = vrot.slane %v5447_v1, %v4980_v6 }
 0x138   : > { %v3060_v19 = vpop.f32.mrf.mxu1  ;;  %3474 = vrot.lane.b32.xlu0 %v3384_v22, %s4903_s15  ;;  %v1040_v10 = vcombine.low %v1025_v41, %v1032_v16  ;;  %v1865_v38 = vcombine.low %v1857_v54, %v1864_v44  ;;  %v2554_v54 = vcombine.low %v5415_v34, %v5450_v27  ;;  %v2474_v28 = vcombine.high %v5374_v46, %v5374_v46 }
 0x139   : > { %v3077_v5 = vcombine.high %v3071_v2, %v3071_v2  ;;  %v3084_v26 = vrot.slane %v3071_v2, %v4980_v6  ;;  %v3061_v21 = vadd.f32 %v5244_v15, %v3060_v19  ;;  %3450 = vrot.lane.b32.xlu1 %v5462_v35, %s4901_s13  ;;  %v5484_v15 = vsel %vm897_vm1, 0.0, %v2513_v7 }
 0x13a   : > { %v3182_v29 = vcombine.high %v3181_v55, %v3181_v55  ;;  %v5494_v42 = vrot.slane %v3181_v55, %v4980_v6  ;;  %v1047_v47 = vrot.slane %v1040_v10, %v4980_v6  ;;  %v1054_v52 = vrot.slane %v1039_v53, %v4980_v6 }
 0x13b   : > { %v3091_v0 = vrot.slane %v3077_v5, %v4980_v6  ;;  %v3092_v3 = vcombine.high %v3084_v26, %v3084_v26  ;;  %v3100_v17 = vrot.slane %v3084_v26, %v4980_v6  ;;  %v3072_v24 = vmax.f32 %v3061_v21, 0.0 }
 0x13c   : > { %3391 = vrot.lane.b32.xlu0 %v3385_v23, %s4900_s10  ;;  %v5509_v61 = vsel %vm1707_vm2, 0.0, %v1865_v38  ;;  %v2536_v7 = vrot.slane %v5443_v58, %v4980_v6  ;;  %v2537_v26 = vcombine.low %v2522_v63, %v2529_v12  ;;  %v3196_v1 = vrot.slane %v3182_v29, %v4980_v6 }
 0x13d   : > { %v3093_v30 = vcombine.high %v3091_v0, %v3091_v0  ;;  %v3107_v31 = vrot.slane %v3091_v0, %v4980_v6  ;;  %v3114_v32 = vrot.slane %v3092_v3, %v4980_v6  ;;  %v3126_v18 = vcombine.high %v3072_v24, %v3072_v24  ;;  %3463 = vrot.lane.b32.xlu1 %v5425_v39, %s4902_s14 }
 0x13e   : > { %v3133_v33 = vrot.slane %v3072_v24, %v4980_v6  ;;  %v1055_v39 = vcombine.low %v1047_v47, %v1054_v52  ;;  %v3197_v21 = vcombine.high %v5494_v42, %v5494_v42  ;;  %v2544_v3 = vrot.slane %v2537_v26, %v4980_v6 }
 0x13f   : > { %v3121_v43 = vrot.slane %v3093_v30, %v4980_v6  ;;  %v3123_v20 = vcombine.high %v3107_v31, %v3107_v31  ;;  %v3199_v48 = vcombine.low %v3100_v17, %v3114_v32  ;;  %v4615_v49 = vcombine.high %v3100_v17, %v3114_v32 }
 0x140   : > { %v3140_v40 = vrot.slane %v3126_v18, %v4980_v6  ;;  %v3221_v59 = vrot.slane %v3107_v31, %v4980_v6  ;;  %v3141_v50 = vcombine.high %v3133_v33, %v3133_v33  ;;  %v3149_v51 = vrot.slane %v3133_v33, %v4980_v6  ;;  %3403 = vrot.lane.b32.xlu0 %v5484_v15, %s4904_s16 }
 0x141   : > { %v3125_v56 = vcombine.high %v3121_v43, %v3121_v43  ;;  %v3207_v57 = vrot.slane %v3199_v48, %v4980_v6  ;;  %v3214_v60 = vrot.slane %v4615_v49, %v4980_v6  ;;  %v3238_v22 = vcombine.low %v3121_v43, %v3123_v20  ;;  %3373 = vrot.lane.b32.xlu1 %v5509_v61, %s4899_s9 }
 0x142   : > { %v3142_v36 = vcombine.high %v3140_v40, %v3140_v40  ;;  %v3156_v2 = vrot.slane %v3140_v40, %v4980_v6  ;;  %v3236_v19 = vrot.slane %v3221_v59, %v4980_v6  ;;  %v3163_v41 = vrot.slane %v3141_v50, %v4980_v6 }
 0x143   : > { %v3239_v62 = vcombine.low %v3125_v56, %v3149_v51  ;;  %v3222_v8 = vcombine.low %v3207_v57, %v3214_v60  ;;  %v5532_v0 = vsel %vm897_vm1, 0.0, %v1055_v39  ;;  %v2551_v44 = vrot.slane %v2536_v7, %v4980_v6 }
 0x144   : > { %v3170_v55 = vrot.slane %v3142_v36, %v4980_v6  ;;  %v3246_v12 = vrot.slane %v3238_v22, %v4980_v6  ;;  %v2450_v17 = vcombine.high %v5450_v27, %v5450_v27  ;;  %v2561_v24 = vrot.slane %v4604_v25, %v4980_v6 }
 0x145   : > { %v3253_v5 = vrot.slane %v3239_v62, %v4980_v6  ;;  %v3229_v16 = vrot.slane %v3222_v8, %v4980_v6  ;;  %3476 = vrot.lane.b32.xlu1 %v3385_v23, %s4903_s15  ;;  %v3260_v29 = vrot.slane %v3163_v41, %v4980_v6  ;;  %v4616_v31 = vcombine.high %v3149_v51, %v3163_v41  ;;  %v4867_v41 = vld [vmem:[%s5875_s3 + $0x18] sm:$0xff]  }
 0x146   : > { %v3174_v30 = vcombine.high %v3170_v55, %v3170_v55  ;;  %v3278_v53 = vcombine.low %v3156_v2, %v3170_v55  ;;  %v3386_v33 = vrot.slane %v5532_v0, 1  ;;  %v2568_v38 = vrot.slane %v2554_v54, %v4980_v6  ;;  %v4868_v54 = vld [vmem:[%s5875_s3 + $0x10] sm:$0xff]  }
 0x147   : > { %v3237_v10 = vcombine.low %v3229_v16, %v3236_v19  ;;  %v3261_v32 = vcombine.low %v3246_v12, %v3253_v5  ;;  %v3275_v27 = vrot.slane %v3260_v29, %v4980_v6  ;;  %v3317_v58 = vcombine.low %v3196_v1, %v3197_v21  ;;  %v4869_v12 = vld [vmem:[%s5875_s3 + $0x8] sm:$0xff]   ;;  %v4624_v29 = vld [vmem:[%s4977_s8 + $0x14] sm:$0x3] }
 0x148   : > { %v2552_v25 = vcombine.low %v2544_v3, %v2551_v44  ;;  %v3198_v43 = vcombine.high %v3196_v1, %v3196_v1  ;;  %v2592_v20 = vcombine.low %v2450_v17, %v5359_v45  ;;  %v2607_v47 = vrot.slane %v5396_v11, %v4980_v6 }
 0x149   : > { %v3359_v18 = vsel %vm1707_vm2, 0.0, %v3237_v10  ;;  %v3268_v23 = vrot.slane %v3261_v32, %v4980_v6  ;;  %3393 = vrot.lane.b32.xlu1 %v3386_v33, %s4900_s10  ;;  %v3172_v48 = vcombine.high %v3156_v2, %v3156_v2  ;;  %v3285_v46 = vrot.slane %v4616_v31, %v4980_v6  ;;  %v3634_v10 = vld [vmem:[%s4977_s8] sm:$0x3] }
 0x14a   : > { %3419 = vrot.lane.b32.xlu0 %v3359_v18, %s4905_s17  ;;  %v2575_v49 = vrot.slane %v2448_v9, %v4980_v6  ;;  %v3316_v40 = vcombine.low %v3174_v30, %v5494_v42  ;;  %v2576_v56 = vcombine.low %v2561_v24, %v2568_v38  ;;  %v3292_v50 = vrot.slane %v3278_v53, %v4980_v6  ;;  %v4866_v42 = vld [vmem:[%s5875_s3 + $0x20] ss:$0 sps:$4 sm:$0xff]   ;;  %v4628_v38 = vld [vmem:[%s4977_s8 + $0x28] sm:$0x3] }
 0x14b   : > { %v3276_v59 = vcombine.low %v3268_v23, %v3275_v27  ;;  %v2600_v51 = vrot.slane %v2592_v20, %v4980_v6  ;;  %v2636_v45 = vsel %vm897_vm1, 0.0, %v2552_v25  ;;  %v2614_v11 = vrot.slane %v2474_v28, %v4980_v6  ;;  %v3654_v30 = vld [vmem:[%s4977_s8] sm:$0x7]  ;;  %v4636_v28 = vld [vmem:[%s4977_s8 + $0x28] sm:$0x7] }
 0x14c   : > { %v3324_v52 = vrot.slane %v3316_v40, %v4980_v6  ;;  %v3331_v34 = vrot.slane %v3317_v58, %v4980_v6  ;;  %v2590_v57 = vrot.slane %v2575_v49, %v4980_v6  ;;  %v3299_v60 = vrot.slane %v3172_v48, %v4980_v6  ;;  %v4870_v53 = vld [vmem:[%s5875_s3] sm:$0xff]   ;;  %v4632_v25 = vld [vmem:[%s4977_s8 + $0x3c] sm:$0x3]  ;;  %v4625_v49 = vld [vmem:[%s4977_s8 + $0x18] sm:$0x3] }
 0x14d   : > { %3405 = vrot.lane.b32.xlu1 %v2636_v45, %s4904_s16  ;;  %v2615_v9 = vcombine.low %v2600_v51, %v2607_v47  ;;  %v3360_v36 = vsel %vm1707_vm2, 0.0, %v3276_v59  ;;  %v2583_v22 = vrot.slane %v2576_v56, %v4980_v6  ;;  %v3300_v62 = vcombine.low %v3285_v46, %v3292_v50  ;;  %v5634_v23 = vld [vmem:[%s4977_s8 + $0x4] sm:$0x3]  ;;  %v4629_v50 = vld [vmem:[%s4977_s8 + $0x2c] sm:$0x3] }
 0x14e   : > { %3452 = vrot.lane.b32.xlu0 %v5532_v0, %s4901_s13  ;;  %v3338_v39 = vrot.slane %v3198_v43, %v4980_v6  ;;  %v2629_v2 = vrot.slane %v2614_v11, %v4980_v6  ;;  %v3339_v8 = vcombine.low %v3324_v52, %v3331_v34  ;;  %v3583_v19 = vsel %vm3581_vm3, %v4866_v42, 0  ;;  %v3635_v46 = vld [vmem:[%s4977_s8 + $0x4] sm:$0x3]  ;;  %v4644_v11 = vld [vmem:[%s4977_s8 + $0x18] sm:$0x3] }
 0x14f   : > { %v2622_v63 = vrot.slane %v2615_v9, %v4980_v6  ;;  %v3431_v7 = vrot.slane %v5484_v15, 1  ;;  %4762 = vmatpush3.bf16.msra.mxu0 %v3583_v19  ;;  %v3432_v55 = vrot.slane %v2636_v45, 1  ;;  %v2591_v5 = vcombine.low %v2583_v22, %v2590_v57  ;;  %v3655_v56 = vld [vmem:[%s4977_s8 + $0x4] sm:$0x7]  ;;  %v4637_v9 = vld [vmem:[%s4977_s8 + $0x2c] sm:$0x7] }
 0x150   : > { %v3314_v26 = vrot.slane %v3299_v60, %v4980_v6  ;;  %4763 = vmatprep.subr.bf16.mxu0 %v4898_v13  ;;  %v3346_v21 = vrot.slane %v3339_v8, %v4980_v6  ;;  %v3353_v15 = vrot.slane %v3338_v39, %v4980_v6  ;;  %v3638_v32 = vunpack.c.l.bf16 %v3634_v10  ;;  %v4648_v52 = vld [vmem:[%s4977_s8 + $0x4] sm:$0x7]  ;;  %v3636_v8 = vld [vmem:[%s4977_s8 + $0x8] sm:$0x3]  ;;  %v4626_v19 = vld [vmem:[%s4977_s8 + $0x1c] sm:$0x3] }
 0x151   : > { %3421 = vrot.lane.b32.xlu1 %v3360_v36, %s4905_s17  ;;  %v2630_v1 = vcombine.low %v2622_v63, %v2629_v2  ;;  %v2637_v16 = vsel %vm897_vm1, 0.0, %v2591_v5  ;;  %v3646_v18 = vunpack.c.l.bf16 %v4624_v29  ;;  %v3658_v27 = vunpack.c.l.bf16 %v3654_v30  ;;  %v4633_v36 = vld [vmem:[%s4977_s8 + $0x40] sm:$0x3] }
 0x152   : > { %3465 = vrot.lane.b32.xlu0 %v5509_v61, %s4902_s14  ;;  %v3307_v61 = vrot.slane %v3300_v62, %v4980_v6  ;;  %v3354_v44 = vcombine.low %v3346_v21, %v3353_v15  ;;  %v3433_v31 = vrot.slane %v2637_v16, 1  ;;  %v3682_v47 = vunpack.c.l.bf16 %v4628_v38  ;;  %v4649_v62 = vld [vmem:[%s4977_s8 + $0x8] sm:$0x7] }
 0x153   : > { %4764 = vmatpush3.bf16.msra.mxu0 %v4867_v41  ;;  %v2638_v6 = vsel %vm897_vm1, 0.0, %v2630_v1  ;;  %v3650_v43 = vmax.f32 %v3638_v32, %v3646_v18  ;;  %v3666_v20 = vrot.slane %v3658_v27, 1  ;;  %v3706_v48 = vunpack.c.l.bf16 %v4636_v28  ;;  %v4641_v15 = vld [vmem:[%s4977_s8 + $0x8] sm:$0x3]  ;;  %v4627_v32 = vld [vmem:[%s4977_s8 + $0x20] sm:$0x3]  ;;  %vm5729_vm1 = vmand %vm3832_vm14, %vm3833_vm15 }
 0x154   : > { %v3315_v3 = vcombine.low %v3307_v61, %v3314_v26  ;;  %4765 = vmatprep.subr.bf16.mxu0 %v4898_v13  ;;  %v3362_v24 = vsel %vm1707_vm2, 0.0, %v3354_v44  ;;  %v3434_v58 = vrot.slane %v2638_v6, 1  ;;  %v3639_v40 = vunpack.c.l.bf16 %v3635_v46  ;;  %v3656_v61 = vld [vmem:[%s4977_s8 + $0x8] sm:$0x7]  ;;  %v4630_v26 = vld [vmem:[%s4977_s8 + $0x30] sm:$0x3] }
 0x155   : > { %3437 = vrot.lane.b32.xlu1 %v3432_v55, %s4906_s22  ;;  %v3647_v59 = vunpack.c.l.bf16 %v4625_v49  ;;  %v3674_v51 = vmax.f32 %v3650_v43, %v3666_v20  ;;  %v3694_v45 = vunpack.c.l.bf16 %v4632_v25  ;;  %v3659_v34 = vunpack.c.l.bf16 %v3655_v56  ;;  %v4645_v44 = vld [vmem:[%s4977_s8 + $0x1c] sm:$0x3]  ;;  %v4650_v20 = vld [vmem:[%s4977_s8 + $0xc] sm:$0x7]  ;;  %v4639_v46 = vld [vmem:[%s4977_s8 + $0x34] sm:$0x7] }
 0x156   : > { %3435 = vrot.lane.b32.xlu0 %v3431_v7, %s4906_s22  ;;  %v3361_v17 = vsel %vm1707_vm2, 0.0, %v3315_v3  ;;  %v3473_v42 = vrot.slane %v5343_v14, 1  ;;  %v3731_v57 = vunpack.c.l.bf16 %v5634_v23  ;;  %v3707_v22 = vunpack.c.l.bf16 %v4637_v9  ;;  %v4638_v3 = vld [vmem:[%s4977_s8 + $0x30] sm:$0x7]  ;;  %v4642_v56 = vld [vmem:[%s4977_s8 + $0xc] sm:$0x3] }
 0x157   : > { %4766 = vmatpush3.bf16.msra.mxu0 %v4868_v54  ;;  %v3651_v60 = vmax.f32 %v3639_v40, %v3647_v59  ;;  %v3686_v39 = vmax.f32 %v3674_v51, %v3682_v47  ;;  %v3714_v63 = vrot.slane %v3706_v48, 1  ;;  %v3667_v2 = vrot.slane %v3659_v34, 1  ;;  %v4631_v48 = vld [vmem:[%s4977_s8 + $0x34] sm:$0x3]  ;;  %v4635_v34 = vld [vmem:[%s4977_s8 + $0x48] sm:$0x3] }
 0x158   : > { %4767 = vmatprep.subr.bf16.mxu0 %v4898_v13  ;;  %v3683_v14 = vunpack.c.l.bf16 %v4629_v50  ;;  %v3744_v7 = vunpack.c.l.bf16 %v4644_v11  ;;  %v3756_v41 = vunpack.c.l.bf16 %v4648_v52  ;;  %v3640_v55 = vunpack.c.l.bf16 %v3636_v8  ;;  %v4646_v9 = vld [vmem:[%s4977_s8 + $0x20] sm:$0x3] }
 0x159   : > { %3409 = vrot.lane.b32.xlu1 %v2638_v6, %s4904_s16  ;;  %v3648_v5 = vunpack.c.l.bf16 %v4626_v19  ;;  %v3698_v1 = vmax.f32 %v3686_v39, %v3694_v45  ;;  %v3695_v21 = vunpack.c.l.bf16 %v4633_v36  ;;  %v3660_v54 = vunpack.c.l.bf16 %v3656_v61 }
 0x15a   : > { %3407 = vrot.lane.b32.xlu0 %v2637_v16, %s4904_s16  ;;  %v4634_v16 = vld [vmem:[%s4977_s8 + $0x44] sm:$0x3]  ;;  %v3715_v6 = vrot.slane %v3707_v22, 1  ;;  %v3764_v18 = vrot.slane %v3756_v41, 1  ;;  %v3732_v27 = vunpack.c.l.bf16 %v4641_v15  ;;  %v3649_v47 = vunpack.c.l.bf16 %v4627_v32 }
 0x15b   : > { %4768 = vmatpush3.bf16.msra.mxu0 %v4869_v12  ;;  %v3757_v12 = vunpack.c.l.bf16 %v4649_v62  ;;  %v3722_v10 = vmax.f32 %v3698_v1, %v3714_v63  ;;  %v3668_v30 = vrot.slane %v3660_v54, 1  ;;  %v3696_v38 = vunpack.c.l.bf16 %v4634_v16  ;;  %v4647_v16 = vld [vmem:[%s4977_s8 + $0x24] sm:$0x3] }
 0x15c   : > { %4769 = vmatprep.subr.bf16.mxu0 %v4898_v13  ;;  %v3745_v49 = vunpack.c.l.bf16 %v4645_v44  ;;  %v3709_v36 = vunpack.c.l.bf16 %v4639_v46  ;;  %v3733_v63 = vunpack.c.l.bf16 %v4642_v56  ;;  %v3746_v41 = vunpack.c.l.bf16 %v4646_v9 }
 0x15d   : > { %3425 = vrot.lane.b32.xlu1 %v3362_v24, %s4905_s17  ;;  %v3708_v24 = vunpack.c.l.bf16 %v4638_v3  ;;  %v3735_v25 = vmax.f32 %v3722_v10, %v3731_v57  ;;  %v3765_v40 = vrot.slane %v3757_v12, 1  ;;  %vm3903_vm2 = vcmask 256128  }
 0x15e   : > { %3423 = vrot.lane.b32.xlu0 %v3361_v17, %s4905_s17  ;;  %v3652_v17 = vmax.f32 %v3640_v55, %v3648_v5  ;;  %v4643_v55 = vld [vmem:[%s4977_s8 + $0x10] sm:$0x3]  ;;  %v3717_v1 = vrot.slane %v3709_v36, 1  ;;  %vm5740_vm3 = vmand %vm3903_vm2, %vm3833_vm15 }
 0x15f   : > { %4770 = vmatpush3.bf16.msra.mxu0 %v4870_v53  ;;  %v3637_v53 = vld [vmem:[%s4977_s8 + $0xc] sm:$0x3]  ;;  %v3716_v59 = vrot.slane %v3708_v24, 1  ;;  %v3748_v51 = vmax.f32 %v3735_v25, %v3744_v7  ;;  %v4651_v5 = vld [vmem:[%s4977_s8 + $0x10] sm:$0x7] }
 0x160   : > { %4775 = vmatprep.subr.bf16.mxu0 %v4898_v13  ;;  %v3641_v28 = vunpack.c.l.bf16 %v3637_v53  ;;  %v3676_v43 = vmax.f32 %v3652_v17, %v3668_v30  ;;  %v3759_v44 = vunpack.c.l.bf16 %v4651_v5 }
 0x161   : > { %3441 = vrot.lane.b32.xlu1 %v3434_v58, %s4906_s22  ;;  %v3657_v58 = vld [vmem:[%s4977_s8 + $0xc] sm:$0x7]  ;;  %v3772_v22 = vmax.f32 %v3748_v51, %v3764_v18 }
 0x162   : > { %3439 = vrot.lane.b32.xlu0 %v3433_v31, %s4906_s22  ;;  %v3684_v31 = vunpack.c.l.bf16 %v4630_v26  ;;  %v3661_v50 = vunpack.c.l.bf16 %v3657_v58  ;;  %v3653_v52 = vmax.f32 %v3641_v28, %v3649_v47 }
 0x163   : > { %v4690_v8 = vpack.c.bf16 %v3772_v22, %v3772_v22 }
 0x164   : > { %v3688_v11 = vmax.f32 %v3676_v43, %v3684_v31  ;;  %v3669_v57 = vrot.slane %v3661_v50, 1  ;;  %v3368_v50 = vpop.permute.xlu0 %3367 }
 0x165   : > { %3480 = vrot.lane.b32.xlu1 %v3473_v42, %s4903_s15  ;;  %v3758_v42 = vunpack.c.l.bf16 %v4650_v20 }
 0x166   : > { %3478 = vrot.lane.b32.xlu0 %v3386_v33, %s4903_s15  ;;  %v3675_v33 = vmax.f32 %v3651_v60, %v3667_v2  ;;  %v3685_v60 = vunpack.c.l.bf16 %v4631_v48  ;;  %v3700_v39 = vmax.f32 %v3688_v11, %v3696_v38  ;;  %v3677_v2 = vmax.f32 %v3653_v52, %v3669_v57 }
 0x167   : > { %v3766_v61 = vrot.slane %v3758_v42, 1 }
 0x168   : > { %v3687_v29 = vmax.f32 %v3675_v33, %v3683_v14  ;;  %v3697_v14 = vunpack.c.l.bf16 %v4635_v34  ;;  %v3724_v7 = vmax.f32 %v3700_v39, %v3716_v59  ;;  %v3689_v26 = vmax.f32 %v3677_v2, %v3685_v60  ;;  %v3388_v51 = vpop.permute.xlu0 %3387 }
 0x169   : > { %v3864_v33 = vshrl.u32 %v4690_v8, 16 }
 0x16a   : > { %v3699_v23 = vmax.f32 %v3687_v29, %v3695_v21  ;;  %v3867_v21 = vshll.u32 %v4690_v8, 16  ;;  %v3737_v54 = vmax.f32 %v3724_v7, %v3733_v63  ;;  %v3701_v3 = vmax.f32 %v3689_v26, %v3697_v14 }
 0x16b   : > { %v3866_v12 = vrot.slane %v3864_v33, 7  ;;  %v3747_v29 = vunpack.c.l.bf16 %v4647_v16  ;;  %v3487_v26 = vsel %vm3486_vm5, 0.0, %v3368_v50 }
 0x16c   : > { %v3723_v45 = vmax.f32 %v3699_v23, %v3715_v6  ;;  %v3734_v6 = vunpack.c.l.bf16 %v4643_v55  ;;  %v3750_v24 = vmax.f32 %v3737_v54, %v3746_v41  ;;  %v3725_v10 = vmax.f32 %v3701_v3, %v3717_v1 }
 0x16d   : > { %v3869_v30 = vor.u32 %v3867_v21, %v3866_v12  ;;  %v3491_v16 = vsel %vm670_vm0, %v3487_v26, %v3388_v51 }
 0x16e   : > { %v3736_v62 = vmax.f32 %v3723_v45, %v3732_v27  ;;  %v3774_v32 = vmax.f32 %v3750_v24, %v3766_v61  ;;  %v3738_v18 = vmax.f32 %v3725_v10, %v3734_v6  ;;  %v3767_v27 = vrot.slane %v3759_v44, 1 }
 0x16f   : > { %3891 = vrot.lane.b32.xlu0 %v3869_v30, %s4900_s10 }
 0x170   : > { %v3749_v19 = vmax.f32 %v3736_v62, %v3745_v49  ;;  %v4692_v28 = vpack.c.bf16 %v3774_v32, %v3774_v32  ;;  %v3751_v58 = vmax.f32 %v3738_v18, %v3747_v29 }
 0x172   : > { %v3773_v15 = vmax.f32 %v3749_v19, %v3765_v40  ;;  %v3878_v23 = vshrl.u32 %v4692_v28, 16  ;;  %v3881_v43 = vshll.u32 %v4692_v28, 16  ;;  %v3775_v20 = vmax.f32 %v3751_v58, %v3767_v27 }
 0x174   : > { %v4691_v17 = vpack.c.bf16 %v3773_v15, %v3773_v15  ;;  %v3880_v47 = vrot.slane %v3878_v23, 7  ;;  %v4693_v48 = vpack.c.bf16 %v3775_v20, %v3775_v20 }
 0x176   : > { %v3871_v31 = vshrl.u32 %v4691_v17, 16  ;;  %v3874_v53 = vshll.u32 %v4691_v17, 16  ;;  %v3883_v46 = vor.u32 %v3881_v43, %v3880_v47  ;;  %v3885_v49 = vshrl.u32 %v4693_v48, 16 }
 0x177   : > { %v3888_v40 = vshll.u32 %v4693_v48, 16 }
 0x178   : > { %v3873_v38 = vrot.slane %v3871_v31, 7  ;;  %3895 = vrot.lane.b32.xlu0 %v3883_v46, %s4900_s10  ;;  %v3887_v59 = vrot.slane %v3885_v49, 7 }
 0x17a   : > { %v3876_v25 = vor.u32 %v3874_v53, %v3873_v38  ;;  %v3890_v56 = vor.u32 %v3888_v40, %v3887_v59 }
 0x17c   : > { %3893 = vrot.lane.b32.xlu1 %v3876_v25, %s4900_s10 }
 0x180   : > { %3897 = vrot.lane.b32.xlu1 %v3890_v56, %s4900_s10 }
 0x191   : > { %v3455_v45 = vpop.permute.xlu1 %3454 }
 0x195   : > { %v3468_v52 = vpop.permute.xlu1 %3467 }
 0x199   : > { %v3370_v11 = vpop.permute.xlu0 %3369 }
 0x19a   : > { %v3488_v1 = vsel %vm3486_vm5, %v5419_v37, %v3370_v11 }
 0x1a2   : > { %v3449_v34 = vpop.permute.xlu0 %3448 }
 0x1a3   : > { %v3372_v9 = vpop.permute.xlu1 %3371 }
 0x1a4   : > { %v3489_v17 = vsel %vm3486_vm5, %v5462_v35, %v3372_v9 }
 0x1a6   : > { %v3462_v42 = vpop.permute.xlu0 %3461 }
 0x1a7   : > { %v3390_v57 = vpop.permute.xlu1 %3389 }
 0x1a8   : > { %v3492_v33 = vsel %vm670_vm0, %v3488_v1, %v3390_v57  ;;  %v4873_v57 = vld [vmem:[%s5877_s5 + $0x78] sm:$0xff]  }
 0x1a9   : > { %4712 = vmatprep.subr.bf16.mxu1 %v4873_v57 }
 0x1aa   : > { %v3475_v60 = vpop.permute.xlu0 %3474 }
 0x1ab   : > { %v3451_v36 = vpop.permute.xlu1 %3450 }
 0x1ae   : > { %v3392_v22 = vpop.permute.xlu0 %3391 }
 0x1af   : > { %v3464_v62 = vpop.permute.xlu1 %3463  ;;  %v3493_v29 = vsel %vm670_vm0, %v3489_v17, %v3392_v22 }
 0x1b2   : > { %v3404_v63 = vpop.permute.xlu0 %3403 }
 0x1b3   : > { %v3374_v39 = vpop.permute.xlu1 %3373  ;;  %v3496_v6 = vsel %vm3495_vm6, %v3491_v16, %v3404_v63 }
 0x1b4   : > { %v3490_v30 = vsel %vm3486_vm5, %v5532_v0, %v3374_v39  ;;  %vm4432_vm5 = vcmask 1041409  }
 0x1b7   : > { %v3477_v2 = vpop.permute.xlu1 %3476 }
 0x1bb   : > { %v3394_v8 = vpop.permute.xlu1 %3393 }
 0x1bc   : > { %v3420_v14 = vpop.permute.xlu0 %3419  ;;  %v3494_v53 = vsel %vm670_vm0, %v3490_v30, %v3394_v8 }
 0x1bd   : > { %v3501_v12 = vsel %vm3500_vm7, %v3496_v6, %v3420_v14 }
 0x1bf   : > { %v3406_v7 = vpop.permute.xlu1 %3405 }
 0x1c0   : > { %v3453_v19 = vpop.permute.xlu0 %3452  ;;  %v3497_v15 = vsel %vm3495_vm6, %v3492_v33, %v3406_v7 }
 0x1c3   : > { %v3422_v55 = vpop.permute.xlu1 %3421 }
 0x1c4   : > { %v3466_v41 = vpop.permute.xlu0 %3465  ;;  %v3502_v3 = vsel %vm3500_vm7, %v3497_v15, %v3422_v55 }
 0x1c7   : > { %v3438_v61 = vpop.permute.xlu1 %3437 }
 0x1c8   : > { %v3436_v5 = vpop.permute.xlu0 %3435  ;;  %v3507_v44 = vsel %vm3505_vm8, %v3502_v3, %v3438_v61 }
 0x1c9   : > { %v3506_v24 = vsel %vm3505_vm8, %v3501_v12, %v3436_v5  ;;  %v3512_v31 = vsel %vm3510_vm9, %v3507_v44, %v3451_v36 }
 0x1ca   : > { %v3511_v18 = vsel %vm3510_vm9, %v3506_v24, %v3449_v34  ;;  %v3517_v28 = vsel %vm3515_vm10, %v3512_v31, %v3464_v62 }
 0x1cb   : > { %v3410_v54 = vpop.permute.xlu1 %3409  ;;  %v3516_v20 = vsel %vm3515_vm10, %v3511_v18, %v3462_v42  ;;  %v3522_v40 = vsel %vm3520_vm11, %v3517_v28, %v3477_v2  ;;  %v4872_v42 = vld [vmem:[%s5877_s5 + $0x80] sm:$0xff]  }
 0x1cc   : > { %v3408_v21 = vpop.permute.xlu0 %3407  ;;  %v3499_v27 = vsel %vm3495_vm6, %v3494_v53, %v3410_v54  ;;  %v3521_v50 = vsel %vm3520_vm11, %v3516_v20, %v3475_v60  ;;  %v4617_v60 = vld [vmem:[%s5876_s4] ss:$0 sm:$0xff] }
 0x1cd   : > { %v3498_v32 = vsel %vm3495_vm6, %v3493_v29, %v3408_v21  ;;  %v3529_v11 = vcombine.low %v3521_v50, %v3522_v40  ;;  %v4874_v40 = vld [vmem:[%s5877_s5 + $0x38] sm:$0xff]   ;;  %vm4434_vm6 = vcmask 1042434  }
 0x1ce   : > { %4713 = vmatpush3.bf16.msra.mxu1 %v4874_v40 }
 0x1cf   : > { %v3426_v10 = vpop.permute.xlu1 %3425 }
 0x1d0   : > { %v3424_v37 = vpop.permute.xlu0 %3423  ;;  %v3504_v0 = vsel %vm3500_vm7, %v3499_v27, %v3426_v10 }
 0x1d1   : > { %v3503_v35 = vsel %vm3500_vm7, %v3498_v32, %v3424_v37 }
 0x1d3   : > { %v3442_v25 = vpop.permute.xlu1 %3441 }
 0x1d4   : > { %v3440_v38 = vpop.permute.xlu0 %3439  ;;  %v3509_v43 = vsel %vm3505_vm8, %v3504_v0, %v3442_v25 }
 0x1d5   : > { %v3508_v58 = vsel %vm3505_vm8, %v3503_v35, %v3440_v38  ;;  %v3514_v48 = vsel %vm3510_vm9, %v3509_v43, %v3455_v45  ;;  %v4908_v45 = vmov 0   ;;  %vm4436_vm8 = vcmask 1043459  }
 0x1d6   : > { %v3513_v23 = vsel %vm3510_vm9, %v3508_v58, %v3453_v19  ;;  %v3519_v49 = vsel %vm3515_vm10, %v3514_v48, %v3468_v52  ;;  %3777 = vst.msk [vmem:[#allocation2] sm:$0x7] %vm3776_vm13, %v4908_v45  ;;  %3778 = vst.msk [vmem:[#allocation2 + $0x4] sm:$0x7] %vm3776_vm13, %v4908_v45  ;;  %v4871_v52 = vld [vmem:[%s5877_s5 + $0x88] sm:$0xff]  }
 0x1d7   : > { %v3518_v47 = vsel %vm3515_vm10, %v3513_v23, %v3466_v41  ;;  %v3481_v59 = vpop.permute.xlu1 %3480  ;;  %3782 = vst.msk [vmem:[#allocation2 + $0x14] sm:$0x7] %vm3776_vm13, %v4908_v45  ;;  %3779 = vst.msk [vmem:[#allocation2 + $0x8] sm:$0x7] %vm3776_vm13, %v4908_v45  ;;  %vm4508_vm10 = vcmask 519168  }
 0x1d8   : > { %v3479_v46 = vpop.permute.xlu0 %3478  ;;  %v3524_v51 = vsel %vm3520_vm11, %v3519_v49, %v3481_v59  ;;  %3780 = vst.msk [vmem:[#allocation2 + $0xc] sm:$0x7] %vm3776_vm13, %v4908_v45  ;;  %3781 = vst.msk [vmem:[#allocation2 + $0x10] sm:$0x7] %vm3776_vm13, %v4908_v45  ;;  %v4875_v59 = vld [vmem:[%s5877_s5 + $0x70] sm:$0xff]  }
 0x1d9   : > { %v3523_v56 = vsel %vm3520_vm11, %v3518_v47, %v3479_v46  ;;  %4714 = vmatprep.subr.bf16.mxu1 %v4875_v59 }
 0x1da   : > { %v3530_v34 = vcombine.low %v3523_v56, %v3524_v51 }
 0x1dc   : > { %v3533_v9 = vpack.c.bf16 %v3530_v34, %v3529_v11 }
 0x1dd   : > { %v3835_v21 = vld [vmem:[#allocation2 + $0x4] sm:$0x7]  ;;  %v3925_v48 = vld [vmem:[#allocation2] sm:$0x7] }
 0x1de   : > { %4772 = vmatmul.mubr.msk.bf16.vlgmr.msra.gmra.mxu0 %vm3577_vm12, %v3533_v9  ;;  %v3838_v44 = vld [vmem:[#allocation2 + $0x8] sm:$0x7]  ;;  %v3929_v51 = vunpack.c.l.bf16 %v3925_v48  ;;  %v3933_v11 = vld [vmem:[#allocation2] sm:$0x6] }
 0x1df   : > { %4779 = vmatprep.mubr.msk.bf16.mxu0 %vm4907_vm4, %v4898_v13  ;;  %4776 = vmatpush3.bf16.msra.mxu0 %v4871_v52  ;;  %v3841_v53 = vld [vmem:[#allocation2 + $0xc] sm:$0x7]  ;;  %v3844_v18 = vld [vmem:[#allocation2 + $0x10] sm:$0x7]  ;;  %v3937_v52 = vunpack.c.l.bf16 %v3933_v11  ;;  %v4881_v11 = vld [vmem:[%s5877_s5 + $0x58] sm:$0xff]   ;;  %vm4130_vm4 = vcmask 785408  }
 0x1e0   : > { %4777 = vmatprep.subr.bf16.mxu0 %v4898_v13 }
 0x1e1   : > { %v3892_v27 = vpop.permute.xlu0 %3891 }
 0x1e3   : > { %4778 = vmatpush3.bf16.msra.mxu0 %v4872_v42  ;;  %v3985_v42 = vld [vmem:[#allocation2 + $0x14] sm:$0x6] }
 0x1ea   : > { %v3896_v47 = vpop.permute.xlu0 %3895 }
 0x1ee   : > { %v3894_v58 = vpop.permute.xlu1 %3893 }
 0x1f2   : > { %v3898_v46 = vpop.permute.xlu1 %3897 }
 0x29e   : > { %v3619_v36 = vpop.f32.mrf.mxu0 }
 0x29f   : > { %v3620_v22 = vadd.f32 %v4617_v60, %v3619_v36 }
 0x2a0   : > { %v4773_v62 = vpop.f32.mrf.mxu0 }
 0x2a1   : > { %v3626_v39 = vmax.f32 %v3620_v22, 0.0  ;;  %v4876_v22 = vld [vmem:[%s5877_s5 + $0x30] sm:$0xff]  }
 0x2a2   : > { %v3622_v63 = vpop.f32.mrf.mxu0  ;;  %4715 = vmatpush3.bf16.msra.mxu1 %v4876_v22 }
 0x2a3   : > { %v3630_v13 = vcombine.high %v3626_v39, %v3626_v39  ;;  %v4686_v2 = vpack.c.bf16 %v3626_v39, %v3626_v39  ;;  %v3623_v14 = vadd.f32 %v4617_v60, %v3622_v63  ;;  %v3994_v60 = vrot.slane %v3929_v51, 1 }
 0x2a4   : > { %v4774_v8 = vpop.f32.mrf.mxu0 }
 0x2a5   : > { %v4687_v19 = vpack.c.bf16 %v3630_v13, %v3630_v13  ;;  %v3800_v7 = vshrl.u32 %v4686_v2, 16  ;;  %v3627_v41 = vmax.f32 %v3623_v14, 0.0  ;;  %v3803_v5 = vshll.u32 %v4686_v2, 16 }
 0x2a6   : > { %v3989_v2 = vunpack.c.l.bf16 %v3985_v42  ;;  %v4014_v14 = vrot.slane %v3937_v52, 2 }
 0x2a7   : > { %v3802_v55 = vrot.slane %v3800_v7, 7  ;;  %v3807_v61 = vshrl.u32 %v4687_v19, 16  ;;  %v3631_v26 = vcombine.high %v3627_v41, %v3627_v41  ;;  %v4688_v1 = vpack.c.bf16 %v3627_v41, %v3627_v41  ;;  %v4877_v7 = vld [vmem:[%s5877_s5 + $0x68] sm:$0xff]  }
 0x2a8   : > { %v3810_v16 = vshll.u32 %v4687_v19, 16  ;;  %4716 = vmatprep.subr.bf16.mxu1 %v4877_v7 }
 0x2a9   : > { %v3805_v15 = vor.u32 %v3803_v5, %v3802_v55  ;;  %v3809_v54 = vrot.slane %v3807_v61, 7  ;;  %v4689_v3 = vpack.c.bf16 %v3631_v26, %v3631_v26  ;;  %v3814_v6 = vshrl.u32 %v4688_v1, 16 }
 0x2aa   : > { %v3817_v10 = vshll.u32 %v4688_v1, 16 }
 0x2ab   : > { %v3812_v12 = vor.u32 %v3810_v16, %v3809_v54  ;;  %v3821_v37 = vshrl.u32 %v4689_v3, 16  ;;  %v3836_v17 = vsel %vm5729_vm1, %v3805_v15, %v3835_v21  ;;  %v3816_v24 = vrot.slane %v3814_v6, 7  ;;  %v3969_v54 = vld [vmem:[#allocation2 + $0x14] sm:$0x3] }
 0x2ac   : > { %3837 = vst [vmem:[#allocation2 + $0x4] sm:$0x7] %v3836_v17  ;;  %v3824_v30 = vshll.u32 %v4689_v3, 16  ;;  %v4121_v6 = vrot.slane %v3989_v2, 2 }
 0x2ad   : > { %v3823_v29 = vrot.slane %v3821_v37, 7  ;;  %v3839_v31 = vsel %vm5729_vm1, %v3812_v12, %v3838_v44  ;;  %v3819_v32 = vor.u32 %v3817_v10, %v3816_v24 }
 0x2ae   : > { %3840 = vst [vmem:[#allocation2 + $0x8] sm:$0x7] %v3839_v31 }
 0x2af   : > { %v3826_v35 = vor.u32 %v3824_v30, %v3823_v29  ;;  %v3842_v38 = vsel %vm5729_vm1, %v3819_v32, %v3841_v53 }
 0x2b0   : > { %3843 = vst [vmem:[#allocation2 + $0xc] sm:$0x7] %v3842_v38 }
 0x2b1   : > { %v3845_v0 = vsel %vm5729_vm1, %v3826_v35, %v3844_v18  ;;  %v3973_v35 = vunpack.c.l.bf16 %v3969_v54 }
 0x2b2   : > { %3846 = vst [vmem:[#allocation2 + $0x10] sm:$0x7] %v3845_v0 }
 0x2b3   : > { %v3905_v25 = vld [vmem:[#allocation2 + $0x4] sm:$0x7] }
 0x2b4   : > { %v3906_v23 = vsel %vm5740_vm3, %v3892_v27, %v3905_v25 }
 0x2b5   : > { %3907 = vst [vmem:[#allocation2 + $0x4] sm:$0x7] %v3906_v23  ;;  %v3908_v43 = vld [vmem:[#allocation2 + $0x8] sm:$0x7] }
 0x2b6   : > { %v3909_v20 = vsel %vm5740_vm3, %v3894_v58, %v3908_v43  ;;  %v4878_v58 = vld [vmem:[%s5877_s5 + $0x28] sm:$0xff]  }
 0x2b7   : > { %3910 = vst [vmem:[#allocation2 + $0x8] sm:$0x7] %v3909_v20  ;;  %v3911_v49 = vld [vmem:[#allocation2 + $0xc] sm:$0x7]  ;;  %v4879_v20 = vld [vmem:[%s5877_s5 + $0x60] sm:$0xff]   ;;  %4717 = vmatpush3.bf16.msra.mxu1 %v4878_v58 }
 0x2b8   : > { %v3912_v56 = vsel %vm5740_vm3, %v3896_v47, %v3911_v49  ;;  %v4880_v49 = vld [vmem:[%s5877_s5 + $0x20] sm:$0xff]   ;;  %4718 = vmatprep.subr.bf16.mxu1 %v4879_v20 }
 0x2b9   : > { %v3914_v50 = vld [vmem:[#allocation2 + $0x10] sm:$0x7]  ;;  %3913 = vst [vmem:[#allocation2 + $0xc] sm:$0x7] %v3912_v56 }
 0x2ba   : > { %v3915_v34 = vsel %vm5740_vm3, %v3898_v46, %v3914_v50 }
 0x2bb   : > { %3916 = vst [vmem:[#allocation2 + $0x10] sm:$0x7] %v3915_v34  ;;  %4719 = vmatpush3.bf16.msra.mxu1 %v4880_v49 }
 0x2bc   : > { %v3926_v9 = vld [vmem:[#allocation2 + $0x4] sm:$0x7]  ;;  %4720 = vmatprep.subr.bf16.mxu1 %v4881_v11 }
 0x2bd   : > { %v3934_v45 = vld [vmem:[#allocation2 + $0x4] sm:$0x6]  ;;  %v3930_v57 = vunpack.c.l.bf16 %v3926_v9 }
 0x2be   : > { %v3938_v36 = vunpack.c.l.bf16 %v3934_v45  ;;  %v3927_v62 = vld [vmem:[#allocation2 + $0x8] sm:$0x7]  ;;  %v3957_v19 = vld [vmem:[#allocation2 + $0x4] sm:$0x6] }
 0x2bf   : > { %v3958_v39 = vld [vmem:[#allocation2 + $0x8] sm:$0x6]  ;;  %v3995_v13 = vrot.slane %v3930_v57, 1  ;;  %v3931_v8 = vunpack.c.l.bf16 %v3927_v62  ;;  %v3961_v16 = vunpack.c.l.bf16 %v3957_v19  ;;  %v4882_v62 = vld [vmem:[%s5877_s5 + $0x18] sm:$0xff]  }
 0x2c0   : > { %v3982_v63 = vld [vmem:[#allocation2 + $0x8] sm:$0x6]  ;;  %v4015_v55 = vrot.slane %v3938_v36, 2  ;;  %v3928_v5 = vld [vmem:[#allocation2 + $0xc] sm:$0x7]  ;;  %v3962_v61 = vunpack.c.l.bf16 %v3958_v39  ;;  %4721 = vmatpush3.bf16.msra.mxu1 %v4882_v62 }
 0x2c1   : > { %v4805_v41 = vpack.i.bf16 %v3995_v13, %v3994_v60  ;;  %v3983_v26 = vld [vmem:[#allocation2 + $0xc] sm:$0x6]  ;;  %v3986_v1 = vunpack.c.l.bf16 %v3982_v63  ;;  %v3932_v33 = vunpack.c.l.bf16 %v3928_v5  ;;  %v3996_v37 = vrot.slane %v3931_v8, 1  ;;  %v3935_v53 = vld [vmem:[#allocation2 + $0x8] sm:$0x6]  ;;  %v4883_v13 = vld [vmem:[%s5877_s5 + $0x50] sm:$0xff]  }
 0x2c2   : > { %v3984_v21 = vld [vmem:[#allocation2 + $0x10] sm:$0x6]  ;;  %v3987_v15 = vunpack.c.l.bf16 %v3983_v26  ;;  %v3936_v12 = vld [vmem:[#allocation2 + $0xc] sm:$0x6]  ;;  %v4810_v10 = vpack.i.bf16 %v4015_v55, %v4014_v14  ;;  %v4063_v29 = vrot.slane %v3962_v61, 2  ;;  %v4062_v0 = vrot.slane %v3961_v16, 2  ;;  %4722 = vmatprep.subr.bf16.mxu1 %v4883_v13 }
 0x2c3   : > { %4806 = vrot.lane.b32.xlu0 %v4805_v41, %s4905_s17  ;;  %v3988_v3 = vunpack.c.l.bf16 %v3984_v21  ;;  %v3968_v44 = vld [vmem:[#allocation2 + $0x10] sm:$0x3]  ;;  %v3997_v17 = vrot.slane %v3932_v33, 1  ;;  %v4118_v30 = vrot.slane %v3986_v1, 2  ;;  %v3967_v27 = vld [vmem:[#allocation2 + $0xc] sm:$0x3]  ;;  %v3940_v38 = vunpack.c.l.bf16 %v3936_v12 }
 0x2c4   : > { %v4119_v24 = vrot.slane %v3987_v15, 2  ;;  %v3972_v18 = vunpack.c.l.bf16 %v3968_v44  ;;  %v3975_v28 = vld [vmem:[#allocation2 + $0xc] sm:$0x7]  ;;  %v3960_v43 = vld [vmem:[#allocation2 + $0x10] sm:$0x6]  ;;  %v3939_v48 = vunpack.c.l.bf16 %v3935_v53  ;;  %v4815_v40 = vpack.i.bf16 %v4063_v29, %v4062_v0  ;;  %v4888_v29 = vld [vmem:[%s5877_s5] sm:$0xff]  }
 0x2c5   : > { %v4120_v31 = vrot.slane %v3988_v3, 2  ;;  %v4825_v32 = vpack.i.bf16 %v3997_v17, %v3996_v37  ;;  %v3966_v47 = vld [vmem:[#allocation2 + $0x8] sm:$0x3]  ;;  %v3971_v56 = vunpack.c.l.bf16 %v3967_v27  ;;  %v3979_v50 = vunpack.c.l.bf16 %v3975_v28  ;;  %v3959_v51 = vld [vmem:[#allocation2 + $0xc] sm:$0x6]  ;;  %v4884_v61 = vld [vmem:[%s5877_s5 + $0x10] sm:$0xff]  }
 0x2c6   : > { %v4161_v25 = vcombine.low %v4118_v30, %v4119_v24  ;;  %v3974_v46 = vld [vmem:[#allocation2 + $0x8] sm:$0x7]  ;;  %v4830_v34 = vpack.i.bf16 %v3973_v35, %v3972_v18  ;;  %v4017_v9 = vrot.slane %v3940_v38, 2  ;;  %v3964_v45 = vunpack.c.l.bf16 %v3960_v43  ;;  %v3976_v57 = vld [vmem:[#allocation2 + $0x10] sm:$0x7]  ;;  %4723 = vmatpush3.bf16.msra.mxu1 %v4884_v61  ;;  %v4887_v37 = vld [vmem:[%s5877_s5 + $0x40] sm:$0xff]  }
 0x2c7   : > { %4811 = vrot.lane.b32.xlu0 %v4810_v10, %s4903_s15  ;;  %v4164_v23 = vcombine.low %v4120_v31, %v4121_v6  ;;  %4826 = vrot.lane.b32.xlu1 %v4825_v32, %s4905_s17  ;;  %v3970_v52 = vunpack.c.l.bf16 %v3966_v47  ;;  %v3978_v42 = vunpack.c.l.bf16 %v3974_v46  ;;  %v3977_v60 = vld [vmem:[#allocation2 + $0x14] sm:$0x7]  ;;  %v4016_v36 = vrot.slane %v3939_v48, 2  ;;  %v3942_v8 = vld [vmem:[#allocation2 + $0x8] sm:$0x3] }
 0x2c8   : > { %v3963_v22 = vunpack.c.l.bf16 %v3959_v51  ;;  %v4099_v63 = vrot.slane %v3979_v50, 1  ;;  %v4065_v14 = vrot.slane %v3964_v45, 2  ;;  %v3980_v19 = vunpack.c.l.bf16 %v3976_v57  ;;  %v3941_v5 = vld [vmem:[#allocation2 + $0x4] sm:$0x3]  ;;  %v4885_v33 = vld [vmem:[%s5877_s5 + $0x48] sm:$0xff]  }
 0x2c9   : > { %v4173_v59 = vpack.c.bf16 %v4164_v23, %v4161_v25  ;;  %v4820_v39 = vpack.i.bf16 %v3971_v56, %v3970_v52  ;;  %v4835_v2 = vpack.i.bf16 %v4017_v9, %v4016_v36  ;;  %v3981_v7 = vunpack.c.l.bf16 %v3977_v60  ;;  %v3944_v3 = vld [vmem:[#allocation2 + $0x10] sm:$0x3]  ;;  %v4886_v6 = vld [vmem:[%s5877_s5 + $0x8] sm:$0xff]   ;;  %4724 = vmatprep.subr.bf16.mxu1 %v4885_v33  ;;  %v3949_v18 = vld [vmem:[#allocation2 + $0x4] sm:$0x7] }
 0x2ca   : > { %v4098_v41 = vrot.slane %v3978_v42, 1  ;;  %v4064_v55 = vrot.slane %v3963_v22, 2  ;;  %v3946_v1 = vunpack.c.l.bf16 %v3942_v8  ;;  %v4100_v15 = vrot.slane %v3980_v19, 1  ;;  %v3943_v12 = vld [vmem:[#allocation2 + $0xc] sm:$0x3]  ;;  %4725 = vmatpush3.bf16.msra.mxu1 %v4886_v6 }
 0x2cb   : > { %4816 = vrot.lane.b32.xlu0 %v4815_v40, %s4905_s17  ;;  %4780 = vmatmul.mubr.msk.bf16.vlgmr.msra.gmra.mxu0 %vm3500_vm7, %v4173_v59  ;;  %v4101_v54 = vrot.slane %v3981_v7, 1  ;;  %v3945_v16 = vunpack.c.l.bf16 %v3941_v5  ;;  %v3948_v24 = vunpack.c.l.bf16 %v3944_v3  ;;  %v3947_v10 = vunpack.c.l.bf16 %v3943_v12  ;;  %v3950_v27 = vld [vmem:[#allocation2 + $0x8] sm:$0x7]  ;;  %v3951_v28 = vld [vmem:[#allocation2 + $0xc] sm:$0x7] }
 0x2cc   : > { %4831 = vrot.lane.b32.xlu1 %v4830_v34, %s4903_s15  ;;  %v4840_v26 = vpack.i.bf16 %v4099_v63, %v4098_v41  ;;  %v4850_v21 = vpack.i.bf16 %v4065_v14, %v4064_v55  ;;  %4726 = vmatprep.subr.bf16.mxu1 %v4887_v37  ;;  %v3952_v58 = vld [vmem:[#allocation2 + $0x10] sm:$0x7]  ;;  %v3917_v0 = vld [vmem:[#allocation2] sm:$0x3]  ;;  %v3918_v25 = vld [vmem:[#allocation2 + $0x4] sm:$0x3]  ;;  %v3953_v20 = vunpack.c.l.bf16 %v3949_v18  ;;  %v3954_v47 = vunpack.c.l.bf16 %v3950_v27 }
 0x2cd   : > { %v4845_v44 = vpack.i.bf16 %v3946_v1, %v3945_v16  ;;  %v4855_v17 = vpack.i.bf16 %v4101_v54, %v4100_v15  ;;  %v4860_v30 = vpack.i.bf16 %v3948_v24, %v3947_v10  ;;  %v3919_v23 = vld [vmem:[#allocation2 + $0x8] sm:$0x3]  ;;  %v3920_v43 = vld [vmem:[#allocation2 + $0xc] sm:$0x3]  ;;  %v3955_v46 = vunpack.c.l.bf16 %v3951_v28 }
 0x2ce   : > { %4727 = vmatpush3.bf16.msra.mxu1 %v4888_v29  ;;  %v3956_v49 = vunpack.c.l.bf16 %v3952_v58  ;;  %v3921_v40 = vunpack.c.l.bf16 %v3917_v0  ;;  %v3922_v51 = vunpack.c.l.bf16 %v3918_v25  ;;  %v3923_v11 = vunpack.c.l.bf16 %v3919_v23 }
 0x2cf   : > { %4821 = vrot.lane.b32.xlu0 %v4820_v39, %s4903_s15  ;;  %v3924_v34 = vunpack.c.l.bf16 %v3920_v43  ;;  %v4050_v9 = vrot.slane %v3953_v20, 1  ;;  %v4051_v42 = vrot.slane %v3954_v47, 1  ;;  %v4052_v22 = vrot.slane %v3955_v46, 1 }
 0x2d0   : > { %4836 = vrot.lane.b32.xlu1 %v4835_v2, %s4903_s15  ;;  %v4053_v62 = vrot.slane %v3956_v49, 1 }
 0x2d3   : > { %4841 = vrot.lane.b32.xlu0 %v4840_v26, %s4909_s29 }
 0x2d4   : > { %4851 = vrot.lane.b32.xlu1 %v4850_v21, %s4905_s17 }
 0x2d7   : > { %4846 = vrot.lane.b32.xlu0 %v4845_v44, %s4909_s29 }
 0x2d8   : > { %4856 = vrot.lane.b32.xlu1 %v4855_v17, %s4909_s29 }
 0x2dc   : > { %4861 = vrot.lane.b32.xlu1 %v4860_v30, %s4909_s29 }
 0x335   : > { %v4807_v31 = vpop.permute.xlu0 %4806 }
 0x336   : > { %v4809_v59 = vunpack.i.h.bf16 %v4807_v31  ;;  %v4808_v56 = vunpack.i.l.bf16 %v4807_v31 }
 0x338   : > { %v4122_v39 = vsel %vm3500_vm7, %v3921_v40, %v4808_v56  ;;  %v4123_v63 = vsel %vm3500_vm7, %v3922_v51, %v4809_v59 }
 0x339   : > { %v5808_v53 = vpop.permute.xlu0 %4811  ;;  %v5810_v32 = vpop.permute.xlu1 %4826 }
 0x33a   : > { %v4814_v8 = vunpack.i.h.bf16 %v5808_v53  ;;  %v4813_v19 = vunpack.i.l.bf16 %v5808_v53  ;;  %v4829_v55 = vunpack.i.h.bf16 %v5810_v32  ;;  %v4828_v5 = vunpack.i.l.bf16 %v5810_v32 }
 0x33c   : > { %v4126_v32 = vsel %vm3520_vm11, %v4122_v39, %v4813_v19  ;;  %v4127_v18 = vsel %vm3520_vm11, %v4123_v63, %v4814_v8  ;;  %v4124_v28 = vsel %vm3500_vm7, %v3923_v11, %v4828_v5  ;;  %v4441_v8 = vsub.s32 1, %v4967_v4 }
 0x33d   : > { %v4817_v35 = vpop.permute.xlu0 %4816  ;;  %v4485_v19 = vsub.s32 3, %v4967_v4 }
 0x33e   : > { %v4832_v38 = vpop.permute.xlu1 %4831  ;;  %v4819_v45 = vunpack.i.h.bf16 %v4817_v35  ;;  %v4818_v52 = vunpack.i.l.bf16 %v4817_v35 }
 0x33f   : > { %v4834_v16 = vunpack.i.h.bf16 %v4832_v38  ;;  %v4833_v3 = vunpack.i.l.bf16 %v4832_v38  ;;  %v4125_v38 = vsel %vm3500_vm7, %v3924_v34, %v4829_v55 }
 0x340   : > { %v4135_v61 = vsel %vm3500_vm7, %v4050_v9, %v4818_v52  ;;  %v4136_v26 = vsel %vm3500_vm7, %v4051_v42, %v4819_v45  ;;  %v4664_v42 = vld [vmem:[%s5878_s6] ss:$0 sm:$0xff] }
 0x341   : > { %v4822_v48 = vpop.permute.xlu0 %4821 }
 0x342   : > { %v4837_v50 = vpop.permute.xlu1 %4836  ;;  %v4824_v57 = vunpack.i.h.bf16 %v4822_v48  ;;  %v4823_v60 = vunpack.i.l.bf16 %v4822_v48 }
 0x343   : > { %v4839_v29 = vunpack.i.h.bf16 %v4837_v50  ;;  %v4838_v30 = vunpack.i.l.bf16 %v4837_v50 }
 0x344   : > { %v4139_v1 = vsel %vm3520_vm11, %v4135_v61, %v4823_v60  ;;  %v4140_v33 = vsel %vm3520_vm11, %v4136_v26, %v4824_v57 }
 0x345   : > { %v4842_v36 = vpop.permute.xlu0 %4841  ;;  %v4128_v48 = vsel %vm3520_vm11, %v4124_v28, %v4838_v30  ;;  %v4129_v46 = vsel %vm3520_vm11, %v4125_v38, %v4839_v29 }
 0x346   : > { %v4844_v13 = vunpack.i.h.bf16 %v4842_v36  ;;  %v4843_v2 = vunpack.i.l.bf16 %v4842_v36  ;;  %v4852_v14 = vpop.permute.xlu1 %4851 }
 0x347   : > { %v4854_v7 = vunpack.i.h.bf16 %v4852_v14  ;;  %v4853_v41 = vunpack.i.l.bf16 %v4852_v14 }
 0x348   : > { %v4143_v6 = vsel %vm4130_vm4, %v4139_v1, %v4843_v2  ;;  %v4144_v44 = vsel %vm4130_vm4, %v4140_v33, %v4844_v13  ;;  %v4463_v13 = vsub.s32 2, %v4967_v4 }
 0x349   : > { %v4138_v21 = vsel %vm3500_vm7, %v4053_v62, %v4854_v7  ;;  %v4137_v15 = vsel %vm3500_vm7, %v4052_v22, %v4853_v41  ;;  %v4847_v54 = vpop.permute.xlu0 %4846  ;;  %v4661_v0 = vcombine.low %v4143_v6, %v4144_v44  ;;  %v4418_v7 = vsub.s32 0, %v4967_v4 }
 0x34a   : > { %v4857_v12 = vpop.permute.xlu1 %4856  ;;  %v4849_v37 = vunpack.i.h.bf16 %v4847_v54  ;;  %v4848_v17 = vunpack.i.l.bf16 %v4847_v54  ;;  %v4141_v31 = vsel %vm3520_vm11, %v4137_v15, %v4833_v3  ;;  %v4142_v53 = vsel %vm3520_vm11, %v4138_v21, %v4834_v16 }
 0x34b   : > { %v4859_v24 = vunpack.i.h.bf16 %v4857_v12  ;;  %v4858_v10 = vunpack.i.l.bf16 %v4857_v12 }
 0x34c   : > { %v4132_v23 = vsel %vm4130_vm4, %v4127_v18, %v4849_v37  ;;  %v4131_v43 = vsel %vm4130_vm4, %v4126_v32, %v4848_v17 }
 0x34d   : > { %v4145_v35 = vsel %vm4130_vm4, %v4141_v31, %v4858_v10  ;;  %v4146_v27 = vsel %vm4130_vm4, %v4142_v53, %v4859_v24  ;;  %v4660_v56 = vcombine.low %v4131_v43, %v4132_v23 }
 0x34e   : > { %v4862_v58 = vpop.permute.xlu1 %4861  ;;  %v4663_v25 = vcombine.low %v4145_v35, %v4146_v27 }
 0x34f   : > { %v4864_v20 = vunpack.i.h.bf16 %v4862_v58  ;;  %v4863_v47 = vunpack.i.l.bf16 %v4862_v58 }
 0x350   : > { %v4172_v49 = vpack.c.bf16 %v4663_v25, %v4661_v0 }
 0x351   : > { %v4133_v40 = vsel %vm4130_vm4, %v4128_v48, %v4863_v47  ;;  %v4134_v59 = vsel %vm4130_vm4, %v4129_v46, %v4864_v20 }
 0x352   : > { %v4662_v50 = vcombine.low %v4133_v40, %v4134_v59  ;;  %4360 = vmatprep.mubr.bf16.mxu1 %v4172_v49 }
 0x354   : > { %v4171_v51 = vpack.c.bf16 %v4662_v50, %v4660_v56 }
 0x356   : > { %4361 = vmatmul.mubr.bf16.vlgmr.msra.gmra.mxu1 %v4171_v51 }
 0x38b   : > { %v4403_v11 = vpop.f32.mrf.mxu0 }
 0x38d   : > { %v4781_v34 = vpop.f32.mrf.mxu0 }
 0x38f   : > { %v4406_v9 = vpop.f32.mrf.mxu0 }
 0x391   : > { %v4782_v45 = vpop.f32.mrf.mxu0 }
 0x416   : > { %v4728_v52 = vpop.f32.mrf.mxu1 }
 0x418   : > { %v4729_v57 = vpop.f32.mrf.mxu1 }
 0x419   : > { %v4730_v60 = vadd.f32 %v4729_v57, %v4728_v52 }
 0x41a   : > { %v4731_v36 = vpop.f32.mrf.mxu1 }
 0x41b   : > { %v4363_v22 = vadd.f32 %v4730_v60, %v4664_v42 }
 0x41c   : > { %v4732_v62 = vpop.f32.mrf.mxu1 }
 0x41d   : > { %v4404_v39 = vadd.f32 %v4403_v11, %v4363_v22  ;;  %v4733_v63 = vadd.f32 %v4732_v62, %v4731_v36 }
 0x41f   : > { %v4410_v2 = vmax.f32 %v4404_v39, 0.0  ;;  %v4366_v14 = vadd.f32 %v4733_v63, %v4664_v42 }
 0x421   : > { %v4414_v41 = vcombine.high %v4410_v2, %v4410_v2  ;;  %v4407_v55 = vadd.f32 %v4406_v9, %v4366_v14  ;;  %v4464_v5 = vrot.slane %v4410_v2, %v4463_v13  ;;  %v4442_v21 = vrot.slane %v4410_v2, %v4441_v8 }
 0x422   : > { %v4486_v15 = vrot.slane %v4410_v2, %v4485_v19  ;;  %v4419_v54 = vrot.slane %v4410_v2, %v4418_v7 }
 0x423   : > { %v4411_v61 = vmax.f32 %v4407_v55, 0.0  ;;  %v4468_v26 = vrot.slane %v4414_v41, %v4463_v13  ;;  %v4446_v1 = vrot.slane %v4414_v41, %v4441_v8  ;;  %v4490_v33 = vrot.slane %v4414_v41, %v4485_v19 }
 0x424   : > { %v4423_v16 = vrot.slane %v4414_v41, %v4418_v7 }
 0x425   : > { %v4415_v3 = vcombine.high %v4411_v61, %v4411_v61  ;;  %v4472_v6 = vrot.slane %v4411_v61, %v4463_v13  ;;  %v4477_v44 = vsel %vm4432_vm5, %v4468_v26, %v4464_v5  ;;  %v4450_v12 = vrot.slane %v4411_v61, %v4441_v8 }
 0x426   : > { %v4455_v4 = vsel %vm4432_vm5, %v4446_v1, %v4442_v21  ;;  %v4494_v37 = vrot.slane %v4411_v61, %v4485_v19  ;;  %v4499_v17 = vsel %vm4432_vm5, %v4490_v33, %v4486_v15  ;;  %v4427_v24 = vrot.slane %v4411_v61, %v4418_v7 }
 0x427   : > { %v4476_v10 = vrot.slane %v4415_v3, %v4463_v13  ;;  %v4478_v29 = vsel %vm4434_vm6, %v4472_v6, %v4477_v44  ;;  %v4454_v30 = vrot.slane %v4415_v3, %v4441_v8  ;;  %v4456_v31 = vsel %vm4434_vm6, %v4450_v12, %v4455_v4 }
 0x428   : > { %v4431_v53 = vrot.slane %v4415_v3, %v4418_v7  ;;  %v4433_v32 = vsel %vm4432_vm5, %v4423_v16, %v4419_v54  ;;  %v4498_v27 = vrot.slane %v4415_v3, %v4485_v19  ;;  %v4500_v28 = vsel %vm4434_vm6, %v4494_v37, %v4499_v17 }
 0x429   : > { %v4479_v18 = vsel %vm4436_vm8, %v4476_v10, %v4478_v29  ;;  %v4457_v35 = vsel %vm4436_vm8, %v4454_v30, %v4456_v31  ;;  %v4435_v38 = vsel %vm4434_vm6, %v4427_v24, %v4433_v32 }
 0x42a   : > { %4480 = vrot.lane.b32.xlu1 %v4479_v18, %s4905_s17  ;;  %4458 = vrot.lane.b32.xlu0 %v4457_v35, %s4900_s10  ;;  %v4437_v58 = vsel %vm4436_vm8, %v4431_v53, %v4435_v38  ;;  %v4501_v0 = vsel %vm4436_vm8, %v4498_v27, %v4500_v28 }
 0x42e   : > { %4502 = vrot.lane.b32.xlu0 %v4501_v0, %s4901_s13 }
 0x49c   : > { %v4459_v25 = vpop.permute.xlu0 %4458  ;;  %v4481_v23 = vpop.permute.xlu1 %4480 }
 0x49d   : > { %v4505_v43 = vsel %vm670_vm0, %v4437_v58, %v4459_v25 }
 0x49e   : > { %v4506_v47 = vsel %vm3500_vm7, %v4505_v43, %v4481_v23 }
 0x4a0   : > { %v4503_v20 = vpop.permute.xlu0 %4502 }
 0x4a1   : > { %v4507_v48 = vsel %vm3510_vm9, %v4506_v47, %v4503_v20 }
 0x4a2   : > { %4509 = vst.msk [vmem:[%s276_s21] sm:$0xf] %vm4508_vm10, %v4507_v48 }
 0x4a3 PF: > { %s17_s24 = sadd.s32 1, %s4895_s24  }
 0x4a4   : > { %p14_p4 = scmp.ge.s32.totalorder %s17_s24, 4  }
 0x4a6   :  { %16 = sbr.rel (!%p14_p4) target bundleno = 1 (0x1), region = 85 }

</bundles_post_ra>
